<compile_context>
chip_gen: v6e
topology: v6e:2x2x1
jax: 0.10.0
libtpu: 0.0.40
codegen_flags: <defaults>
</compile_context>

<pallas_src>
import jax
import jax.numpy as jnp
from jax import lax
from jax.experimental import pallas as pl
from jax.experimental.pallas import tpu as pltpu

# ---- small, module-consistent shapes -------------------------------------
S, B, D = 8, 2, 32          # seq, batch, d_model
NHEAD = 4
HD = D // NHEAD             # head dim = 8
H = 2 * D                   # LSTM hidden per direction (d_model * 2) = 64
EPS = 1e-5                  # LayerNorm eps (PyTorch default)


def _layer_norm(y, gamma, beta):
    mu = jnp.mean(y, axis=-1, keepdims=True)
    var = jnp.mean((y - mu) ** 2, axis=-1, keepdims=True)
    return (y - mu) * lax.rsqrt(var + EPS) * gamma + beta


# ---------------------------------------------------------------------------
# ONE fused kernel: MHA + add&norm1  ->  BiLSTM  ->  PReLU + Linear2 + add&norm2
# x_ref holds the input already flattened to (B*S, D), rows ordered batch-major.
# ---------------------------------------------------------------------------
def fused_encoder_kernel(x_ref, win_ref, bin_ref, wo_ref, bo_ref, g1_ref, b1_ref,
                         wih_ref, bih_ref, whh_ref, a_ref, w2_ref, b2_ref,
                         g2_ref, bn2_ref,
                         o_ref,
                         gxf_ref, gxb_ref, z_ref):
    f32 = jnp.float32
    x = x_ref[...]                                   # (B*S, D) = (16, 32)

    # ---- stage 1: multi-head self-attention (batched over B) ----------------
    # one fused QKV projection for all batches; q-scale pre-folded into win/bin
    qkv = jnp.dot(x, win_ref[...], preferred_element_type=f32) + bin_ref[...]  # (16, 3D)
    q = qkv[:, 0:D]
    k = qkv[:, D:2 * D]
    v = qkv[:, 2 * D:3 * D]

    # per-(batch, head) score matmuls (unavoidably small), but a SINGLE softmax
    # over the stacked (B*NHEAD*S, S) score tensor.
    s_list = []
    for b in range(B):                               # B = 2, static unroll
        rs = slice(b * S, (b + 1) * S)
        for h in range(NHEAD):                       # NHEAD = 4, static unroll
            cs = slice(h * HD, (h + 1) * HD)
            s_list.append(lax.dot_general(q[rs, cs], k[rs, cs],
                                          (((1,), (1,)), ((), ())),
                                          preferred_element_type=f32))          # (S, S)
    s_all = jnp.concatenate(s_list, axis=0)                                      # (64, 8)
    s_all = s_all - jnp.max(s_all, axis=-1, keepdims=True)
    p_all = jnp.exp(s_all)
    p_all = p_all / jnp.sum(p_all, axis=-1, keepdims=True)   # exact divide (no approx)

    # PV matmuls, heads packed back into lanes -> ONE (B*S,D)@(D,D) out-projection
    ctx_rows = []
    for b in range(B):
        rs = slice(b * S, (b + 1) * S)
        heads = []
        for h in range(NHEAD):
            r0 = (b * NHEAD + h) * S
            heads.append(jnp.dot(p_all[r0:r0 + S, :], v[rs, h * HD:(h + 1) * HD],
                                 preferred_element_type=f32))                    # (S, HD)
        ctx_rows.append(jnp.concatenate(heads, axis=-1))                         # (S, D)
    ctx = jnp.concatenate(ctx_rows, axis=0)                                      # (B*S, D)
    attn = jnp.dot(ctx, wo_ref[...], preferred_element_type=f32) + bo_ref[...]

    # residual + LayerNorm1, once on the stacked tensor (dropout1 = id)
    y1 = _layer_norm(x + attn, g1_ref[...], b1_ref[...])                         # (B*S, D)

    # hoisted BiLSTM input projection: ONE (B*S, D)@(D, 8H) matmul
    gx = jnp.dot(y1, wih_ref[...], preferred_element_type=f32) + bih_ref[...]    # (16, 8H)
    gxf_ref[...] = gx[:, 0:4 * H].reshape(B, S, 4 * H)       # dense (S,4H) row blocks
    gxb_ref[...] = gx[:, 4 * H:8 * H].reshape(B, S, 4 * H)

    # ---- stage 2: bidirectional LSTM ----------------------------------------
    # carries are lane-stacked [fwd | bwd]: h,c of shape (B, 2H) = (2, 128);
    # one block-diagonal recurrence matmul (K = 2H = 128) per step; gate columns
    # were host-reordered to [i, f, o, g] so nonlinearities batch into 3 wide calls.
    whh_blk = whh_ref[...]                                   # (2H, 8H) block-diag
    hcat = jnp.zeros((B, 2 * H), f32)
    ccat = jnp.zeros((B, 2 * H), f32)
    for t in range(S):                                       # S = 8; serial chain anyway,
        tb = S - 1 - t                                       # static indices everywhere
        rec = jnp.dot(hcat, whh_blk, preferred_element_type=f32)      # (2, 8H)
        gf = gxf_ref[:, t, :] + rec[:, 0:4 * H]                        # (2, 4H) fwd gates
        gb = gxb_ref[:, tb, :] + rec[:, 4 * H:8 * H]                   # (2, 4H) bwd gates
        sg = jax.nn.sigmoid(jnp.concatenate([gf[:, 0:3 * H], gb[:, 0:3 * H]], axis=-1))
        tg = jnp.tanh(jnp.concatenate([gf[:, 3 * H:4 * H], gb[:, 3 * H:4 * H]], axis=-1))
        i2 = jnp.concatenate([sg[:, 0:H],         sg[:, 3 * H:4 * H]], axis=-1)  # (2, 2H)
        f2 = jnp.concatenate([sg[:, H:2 * H],     sg[:, 4 * H:5 * H]], axis=-1)
        o2 = jnp.concatenate([sg[:, 2 * H:3 * H], sg[:, 5 * H:6 * H]], axis=-1)
        ccat = f2 * ccat + i2 * tg
        hcat = o2 * jnp.tanh(ccat)
        z_ref[:, t, 0:H] = hcat[:, 0:H]           # fwd output at time t
        z_ref[:, tb, H:2 * H] = hcat[:, H:2 * H]  # bwd output at time S-1-t

    # ---- stage 3: PReLU + Linear(2H -> D) + residual + LayerNorm2 ------------
    zmat = z_ref[...].reshape(B * S, 2 * H)                  # (16, 128), no concat needed
    a = a_ref[...]                                           # (1, 1) PReLU slope
    zmat = jnp.where(zmat >= 0, zmat, a * zmat)
    ffn = jnp.dot(zmat, w2_ref[...], preferred_element_type=f32) + b2_ref[...]   # (16, D)
    y2 = _layer_norm(y1 + ffn, g2_ref[...], bn2_ref[...])    # residual (dropout2 = id)
    o_ref[...] = y2.astype(o_ref.dtype)                      # one dense (B*S, D) store


# ---------------------------------------------------------------------------
# Wrapper: one fused pallas_call, no grid, everything resident in VMEM.
# The (S,B,D)<->(B*S,D) transpose/reshape is wrapper-side layout plumbing so the
# kernel only ever touches lane/sublane-dense slabs.
# ---------------------------------------------------------------------------
def transformer_encoder_layer(src, p):
    x2 = jnp.transpose(src, (1, 0, 2)).reshape(B * S, D)     # batch-major rows
    out = pl.pallas_call(
        fused_encoder_kernel,
        out_shape=jax.ShapeDtypeStruct((B * S, D), jnp.float32),
        scratch_shapes=[
            pltpu.VMEM((B, S, 4 * H), jnp.float32),   # fwd LSTM gate pre-activations
            pltpu.VMEM((B, S, 4 * H), jnp.float32),   # bwd LSTM gate pre-activations
            pltpu.VMEM((B, S, 2 * H), jnp.float32),   # BiLSTM outputs [fwd | bwd]
        ],
        # advisory estimate so XLA can overlap the ~350 KB weight DMA with neighbors
        cost_estimate=pl.CostEstimate(flops=3_200_000, transcendentals=12_000,
                                      bytes_accessed=400_000),
    )(x2, p["w_in_t"], p["b_in"], p["wo_t"], p["bo"], p["g1"], p["b1"],
      p["w_ih"], p["b_ih"], p["whh_blk"], p["prelu_a"], p["w2t"], p["b2"],
      p["g2"], p["bn2"])
    return jnp.transpose(out.reshape(B, S, D), (1, 0, 2))    # back to (S, B, D)


# ---------------------------------------------------------------------------
# Raw (PyTorch-layout) parameters + host-side prep into kernel layout.
# ---------------------------------------------------------------------------
def init_params(key):
    ks = jax.random.split(key, 18)
    rn = lambda k, shape: 0.1 * jax.random.normal(k, shape, jnp.float32)
    return dict(
        in_proj_w=rn(ks[0], (3 * D, D)), in_proj_b=rn(ks[1], (3 * D,)),
        out_proj_w=rn(ks[2], (D, D)), out_proj_b=rn(ks[3], (D,)),
        # LSTM(D, 2D, bidirectional): PyTorch layout (4H, in), gate order i, f, g, o
        wih_f=rn(ks[4], (4 * H, D)), whh_f=rn(ks[5], (4 * H, H)),
        bih_f=rn(ks[6], (4 * H,)), bhh_f=rn(ks[7], (4 * H,)),
        wih_b=rn(ks[8], (4 * H, D)), whh_b=rn(ks[9], (4 * H, H)),
        bih_b=rn(ks[10], (4 * H,)), bhh_b=rn(ks[11], (4 * H,)),
        w2=rn(ks[12], (D, 2 * H)), b2=rn(ks[13], (D,)),
        g1=1.0 + rn(ks[14], (D,)), b1=rn(ks[15], (D,)),
        g2=1.0 + rn(ks[16], (D,)), bn2=rn(ks[17], (D,)),
        prelu_a=jnp.float32(0.25),                     # nn.PReLU default
    )


def prep_params(raw):
    scale = 1.0 / (HD ** 0.5)
    # fused QKV projection, pre-transposed; fold the q-scale into W_q / b_q
    w_in_t = raw["in_proj_w"].T
    w_in_t = w_in_t.at[:, 0:D].multiply(scale)
    b_in = raw["in_proj_b"].at[0:D].multiply(scale)

    # reorder LSTM gate columns from PyTorch [i, f, g, o] to [i, f, o, g]
    # (sigmoid gates contiguous, tanh gate last) -- pure host-side index shuffle.
    perm = jnp.concatenate([jnp.arange(0, 2 * H),
                            jnp.arange(3 * H, 4 * H),
                            jnp.arange(2 * H, 3 * H)])

    wihf_t = raw["wih_f"].T[:, perm]                   # (D, 4H)
    wihb_t = raw["wih_b"].T[:, perm]
    bihf = (raw["bih_f"] + raw["bhh_f"])[perm]
    bihb = (raw["bih_b"] + raw["bhh_b"])[perm]

    # block-diagonal recurrence weight: [hf | hb] @ whh_blk = [gf_rec | gb_rec]
    whh_blk = jnp.zeros((2 * H, 8 * H), jnp.float32)
    whh_blk = whh_blk.at[0:H, 0:4 * H].set(raw["whh_f"].T[:, perm])
    whh_blk = whh_blk.at[H:2 * H, 4 * H:8 * H].set(raw["whh_b"].T[:, perm])

    return dict(
        w_in_t=w_in_t, b_in=b_in.reshape(1, 3 * D),
        wo_t=raw["out_proj_w"].T, bo=raw["out_proj_b"].reshape(1, D),
        g1=raw["g1"].reshape(1, D), b1=raw["b1"].reshape(1, D),
        w_ih=jnp.concatenate([wihf_t, wihb_t], axis=1),          # (D, 8H)
        b_ih=jnp.concatenate([bihf, bihb]).reshape(1, 8 * H),
        whh_blk=whh_blk,                                         # (2H, 8H)
        prelu_a=jnp.full((1, 1), raw["prelu_a"], jnp.float32),
        w2t=raw["w2"].T, b2=raw["b2"].reshape(1, D),
        g2=raw["g2"].reshape(1, D), bn2=raw["bn2"].reshape(1, D),
    )


# ---------------------------------------------------------------------------
# Pure-JAX reference written directly against the raw PyTorch-layout params.
# ---------------------------------------------------------------------------
def reference(src, raw):
    scale = 1.0 / (HD ** 0.5)
    wq, wk, wv = (raw["in_proj_w"][0:D], raw["in_proj_w"][D:2 * D],
                  raw["in_proj_w"][2 * D:3 * D])
    bq, bk, bv = (raw["in_proj_b"][0:D], raw["in_proj_b"][D:2 * D],
                  raw["in_proj_b"][2 * D:3 * D])

    def attn_one(xb):                                  # (S, D)
        q = (xb @ wq.T + bq) * scale
        k = xb @ wk.T + bk
        v = xb @ wv.T + bv
        outs = []
        for h in range(NHEAD):
            sl = slice(h * HD, (h + 1) * HD)
            s = q[:, sl] @ k[:, sl].T
            outs.append(jax.nn.softmax(s, axis=-1) @ v[:, sl])
        return jnp.concatenate(outs, axis=-1) @ raw["out_proj_w"].T + raw["out_proj_b"]

    attn = jax.vmap(attn_one, in_axes=1, out_axes=1)(src)
    y1 = _layer_norm(src + attn, raw["g1"], raw["b1"])

    def run_dir(xs, wih, whh, b):
        def cell(carry, xt):
            h, c = carry
            g = xt @ wih.T + h @ whh.T + b
            i = jax.nn.sigmoid(g[:, 0:H]); f = jax.nn.sigmoid(g[:, H:2 * H])
            gg = jnp.tanh(g[:, 2 * H:3 * H]); o = jax.nn.sigmoid(g[:, 3 * H:4 * H])
            c = f * c + i * gg
            h = o * jnp.tanh(c)
            return (h, c), h
        z0 = jnp.zeros((B, H), jnp.float32)
        _, hs = lax.scan(cell, (z0, z0), xs)
        return hs

    hf = run_dir(y1, raw["wih_f"], raw["whh_f"], raw["bih_f"] + raw["bhh_f"])
    hb = run_dir(y1[::-1], raw["wih_b"], raw["whh_b"], raw["bih_b"] + raw["bhh_b"])[::-1]
    z = jnp.concatenate([hf, hb], axis=-1)             # (S, B, 2H)
    z = jnp.where(z >= 0, z, raw["prelu_a"] * z)
    s2 = z @ raw["w2"].T + raw["b2"]
    return _layer_norm(y1 + s2, raw["g2"], raw["bn2"])


if __name__ == "__main__":
    key = jax.random.PRNGKey(0)
    kp, kx = jax.random.split(key)
    raw = init_params(kp)
    params = prep_params(raw)
    src = jax.random.normal(kx, (S, B, D), jnp.float32)

    out = jax.jit(lambda x: transformer_encoder_layer(x, params))(src)
    out = jax.block_until_ready(out)

    ref = reference(src, raw)
    assert out.shape == (S, B, D)
    err = float(jnp.max(jnp.abs(out - ref)))
    # all-f32 path with exact softmax divide; tolerance covers MXU default-precision
    # accumulation-order differences vs the XLA reference.
    if not jnp.allclose(out, ref, rtol=1e-2, atol=1e-2):
        raise AssertionError(f"mismatch vs reference, max abs err = {err}")
    print("KERNEL_OK")
</pallas_src>

<mosaic_0001>
module attributes {stable_mosaic.version = 11 : i64} {
  func.func @fused_encoder_kernel(%arg0: memref<16x32xf32, #tpu.memory_space<vmem>>, %arg1: memref<32x96xf32, #tpu.memory_space<vmem>>, %arg2: memref<1x96xf32, #tpu.memory_space<vmem>>, %arg3: memref<32x32xf32, #tpu.memory_space<vmem>>, %arg4: memref<1x32xf32, #tpu.memory_space<vmem>>, %arg5: memref<1x32xf32, #tpu.memory_space<vmem>>, %arg6: memref<1x32xf32, #tpu.memory_space<vmem>>, %arg7: memref<32x512xf32, #tpu.memory_space<vmem>>, %arg8: memref<1x512xf32, #tpu.memory_space<vmem>>, %arg9: memref<128x512xf32, #tpu.memory_space<vmem>>, %arg10: memref<1x1xf32, #tpu.memory_space<vmem>>, %arg11: memref<128x32xf32, #tpu.memory_space<vmem>>, %arg12: memref<1x32xf32, #tpu.memory_space<vmem>>, %arg13: memref<1x32xf32, #tpu.memory_space<vmem>>, %arg14: memref<1x32xf32, #tpu.memory_space<vmem>>, %arg15: memref<16x32xf32, #tpu.memory_space<vmem>>, %arg16: memref<2x8x256xf32, #tpu.memory_space<vmem>>, %arg17: memref<2x8x256xf32, #tpu.memory_space<vmem>>, %arg18: memref<2x8x128xf32, #tpu.memory_space<vmem>>) attributes {dimension_semantics = [], scalar_prefetch = 0 : i64, scratch_operands = 3 : i64, tpu.core_type = #tpu.core_type<tc>} {
    %c0 = arith.constant 0 : index
    %c0_0 = arith.constant 0 : index
    %0 = vector.load %arg0[%c0, %c0_0] : memref<16x32xf32, #tpu.memory_space<vmem>>, vector<16x32xf32>
    %c0_1 = arith.constant 0 : index
    %c0_2 = arith.constant 0 : index
    %1 = vector.load %arg1[%c0_1, %c0_2] : memref<32x96xf32, #tpu.memory_space<vmem>>, vector<32x96xf32>
    %cst = arith.constant dense<0.000000e+00> : vector<16x96xf32>
    %2 = tpu.matmul %0, %1, %cst {dimension_numbers = #tpu.dot_dimension_numbers<[1], [0], [0], [1], [0, 0, 1, 1], [], []>} : vector<16x32xf32>, vector<32x96xf32>, vector<16x96xf32> -> vector<16x96xf32>
    %c0_3 = arith.constant 0 : index
    %c0_4 = arith.constant 0 : index
    %3 = vector.load %arg2[%c0_3, %c0_4] : memref<1x96xf32, #tpu.memory_space<vmem>>, vector<1x96xf32>
    %4 = vector.broadcast %3 : vector<1x96xf32> to vector<16x96xf32>
    %5 = arith.addf %2, %4 : vector<16x96xf32>
    %6 = vector.extract_strided_slice %5 {offsets = [0, 0], sizes = [16, 32], strides = [1, 1]} : vector<16x96xf32> to vector<16x32xf32>
    %7 = vector.extract_strided_slice %5 {offsets = [0, 32], sizes = [16, 32], strides = [1, 1]} : vector<16x96xf32> to vector<16x32xf32>
    %8 = vector.extract_strided_slice %5 {offsets = [0, 64], sizes = [16, 32], strides = [1, 1]} : vector<16x96xf32> to vector<16x32xf32>
    %9 = vector.extract_strided_slice %6 {offsets = [0, 0], sizes = [8, 8], strides = [1, 1]} : vector<16x32xf32> to vector<8x8xf32>
    %10 = vector.extract_strided_slice %7 {offsets = [0, 0], sizes = [8, 8], strides = [1, 1]} : vector<16x32xf32> to vector<8x8xf32>
    %cst_5 = arith.constant dense<0.000000e+00> : vector<8x8xf32>
    %11 = tpu.matmul %9, %10, %cst_5 {dimension_numbers = #tpu.dot_dimension_numbers<[1], [1], [0], [0], [0, 0, 1, 0], [], []>} : vector<8x8xf32>, vector<8x8xf32>, vector<8x8xf32> -> vector<8x8xf32>
    %12 = vector.extract_strided_slice %6 {offsets = [0, 8], sizes = [8, 8], strides = [1, 1]} : vector<16x32xf32> to vector<8x8xf32>
    %13 = vector.extract_strided_slice %7 {offsets = [0, 8], sizes = [8, 8], strides = [1, 1]} : vector<16x32xf32> to vector<8x8xf32>
    %cst_6 = arith.constant dense<0.000000e+00> : vector<8x8xf32>
    %14 = tpu.matmul %12, %13, %cst_6 {dimension_numbers = #tpu.dot_dimension_numbers<[1], [1], [0], [0], [0, 0, 1, 0], [], []>} : vector<8x8xf32>, vector<8x8xf32>, vector<8x8xf32> -> vector<8x8xf32>
    %15 = vector.extract_strided_slice %6 {offsets = [0, 16], sizes = [8, 8], strides = [1, 1]} : vector<16x32xf32> to vector<8x8xf32>
    %16 = vector.extract_strided_slice %7 {offsets = [0, 16], sizes = [8, 8], strides = [1, 1]} : vector<16x32xf32> to vector<8x8xf32>
    %cst_7 = arith.constant dense<0.000000e+00> : vector<8x8xf32>
    %17 = tpu.matmul %15, %16, %cst_7 {dimension_numbers = #tpu.dot_dimension_numbers<[1], [1], [0], [0], [0, 0, 1, 0], [], []>} : vector<8x8xf32>, vector<8x8xf32>, vector<8x8xf32> -> vector<8x8xf32>
    %18 = vector.extract_strided_slice %6 {offsets = [0, 24], sizes = [8, 8], strides = [1, 1]} : vector<16x32xf32> to vector<8x8xf32>
    %19 = vector.extract_strided_slice %7 {offsets = [0, 24], sizes = [8, 8], strides = [1, 1]} : vector<16x32xf32> to vector<8x8xf32>
    %cst_8 = arith.constant dense<0.000000e+00> : vector<8x8xf32>
    %20 = tpu.matmul %18, %19, %cst_8 {dimension_numbers = #tpu.dot_dimension_numbers<[1], [1], [0], [0], [0, 0, 1, 0], [], []>} : vector<8x8xf32>, vector<8x8xf32>, vector<8x8xf32> -> vector<8x8xf32>
    %21 = vector.extract_strided_slice %6 {offsets = [8, 0], sizes = [8, 8], strides = [1, 1]} : vector<16x32xf32> to vector<8x8xf32>
    %22 = vector.extract_strided_slice %7 {offsets = [8, 0], sizes = [8, 8], strides = [1, 1]} : vector<16x32xf32> to vector<8x8xf32>
    %cst_9 = arith.constant dense<0.000000e+00> : vector<8x8xf32>
    %23 = tpu.matmul %21, %22, %cst_9 {dimension_numbers = #tpu.dot_dimension_numbers<[1], [1], [0], [0], [0, 0, 1, 0], [], []>} : vector<8x8xf32>, vector<8x8xf32>, vector<8x8xf32> -> vector<8x8xf32>
    %24 = vector.extract_strided_slice %6 {offsets = [8, 8], sizes = [8, 8], strides = [1, 1]} : vector<16x32xf32> to vector<8x8xf32>
    %25 = vector.extract_strided_slice %7 {offsets = [8, 8], sizes = [8, 8], strides = [1, 1]} : vector<16x32xf32> to vector<8x8xf32>
    %cst_10 = arith.constant dense<0.000000e+00> : vector<8x8xf32>
    %26 = tpu.matmul %24, %25, %cst_10 {dimension_numbers = #tpu.dot_dimension_numbers<[1], [1], [0], [0], [0, 0, 1, 0], [], []>} : vector<8x8xf32>, vector<8x8xf32>, vector<8x8xf32> -> vector<8x8xf32>
    %27 = vector.extract_strided_slice %6 {offsets = [8, 16], sizes = [8, 8], strides = [1, 1]} : vector<16x32xf32> to vector<8x8xf32>
    %28 = vector.extract_strided_slice %7 {offsets = [8, 16], sizes = [8, 8], strides = [1, 1]} : vector<16x32xf32> to vector<8x8xf32>
    %cst_11 = arith.constant dense<0.000000e+00> : vector<8x8xf32>
    %29 = tpu.matmul %27, %28, %cst_11 {dimension_numbers = #tpu.dot_dimension_numbers<[1], [1], [0], [0], [0, 0, 1, 0], [], []>} : vector<8x8xf32>, vector<8x8xf32>, vector<8x8xf32> -> vector<8x8xf32>
    %30 = vector.extract_strided_slice %6 {offsets = [8, 24], sizes = [8, 8], strides = [1, 1]} : vector<16x32xf32> to vector<8x8xf32>
    %31 = vector.extract_strided_slice %7 {offsets = [8, 24], sizes = [8, 8], strides = [1, 1]} : vector<16x32xf32> to vector<8x8xf32>
    %cst_12 = arith.constant dense<0.000000e+00> : vector<8x8xf32>
    %32 = tpu.matmul %30, %31, %cst_12 {dimension_numbers = #tpu.dot_dimension_numbers<[1], [1], [0], [0], [0, 0, 1, 0], [], []>} : vector<8x8xf32>, vector<8x8xf32>, vector<8x8xf32> -> vector<8x8xf32>
    %33 = tpu.concatenate %11, %14, %17, %20, %23, %26, %29, %32 in 0 : vector<8x8xf32>, vector<8x8xf32>, vector<8x8xf32>, vector<8x8xf32>, vector<8x8xf32>, vector<8x8xf32>, vector<8x8xf32>, vector<8x8xf32> -> vector<64x8xf32>
    %cst_13 = arith.constant dense<0xFF800000> : vector<64xf32>
    %34 = vector.multi_reduction <maximumf>, %33, %cst_13 [1] : vector<64x8xf32> to vector<64xf32>
    %35 = vector.shape_cast %34 : vector<64xf32> to vector<64x1xf32>
    %36 = vector.broadcast %35 : vector<64x1xf32> to vector<64x8xf32>
    %37 = arith.subf %33, %36 : vector<64x8xf32>
    %38 = math.exp %37 : vector<64x8xf32>
    %cst_14 = arith.constant dense<0.000000e+00> : vector<64xf32>
    %39 = vector.multi_reduction <add>, %38, %cst_14 [1] : vector<64x8xf32> to vector<64xf32>
    %40 = vector.shape_cast %39 : vector<64xf32> to vector<64x1xf32>
    %41 = vector.broadcast %40 : vector<64x1xf32> to vector<64x8xf32>
    %42 = arith.divf %38, %41 : vector<64x8xf32>
    %43 = vector.extract_strided_slice %42 {offsets = [0, 0], sizes = [8, 8], strides = [1, 1]} : vector<64x8xf32> to vector<8x8xf32>
    %44 = vector.extract_strided_slice %8 {offsets = [0, 0], sizes = [8, 8], strides = [1, 1]} : vector<16x32xf32> to vector<8x8xf32>
    %cst_15 = arith.constant dense<0.000000e+00> : vector<8x8xf32>
    %45 = tpu.matmul %43, %44, %cst_15 {dimension_numbers = #tpu.dot_dimension_numbers<[1], [0], [0], [1], [0, 0, 1, 1], [], []>} : vector<8x8xf32>, vector<8x8xf32>, vector<8x8xf32> -> vector<8x8xf32>
    %46 = vector.extract_strided_slice %42 {offsets = [8, 0], sizes = [8, 8], strides = [1, 1]} : vector<64x8xf32> to vector<8x8xf32>
    %47 = vector.extract_strided_slice %8 {offsets = [0, 8], sizes = [8, 8], strides = [1, 1]} : vector<16x32xf32> to vector<8x8xf32>
    %cst_16 = arith.constant dense<0.000000e+00> : vector<8x8xf32>
    %48 = tpu.matmul %46, %47, %cst_16 {dimension_numbers = #tpu.dot_dimension_numbers<[1], [0], [0], [1], [0, 0, 1, 1], [], []>} : vector<8x8xf32>, vector<8x8xf32>, vector<8x8xf32> -> vector<8x8xf32>
    %49 = vector.extract_strided_slice %42 {offsets = [16, 0], sizes = [8, 8], strides = [1, 1]} : vector<64x8xf32> to vector<8x8xf32>
    %50 = vector.extract_strided_slice %8 {offsets = [0, 16], sizes = [8, 8], strides = [1, 1]} : vector<16x32xf32> to vector<8x8xf32>
    %cst_17 = arith.constant dense<0.000000e+00> : vector<8x8xf32>
    %51 = tpu.matmul %49, %50, %cst_17 {dimension_numbers = #tpu.dot_dimension_numbers<[1], [0], [0], [1], [0, 0, 1, 1], [], []>} : vector<8x8xf32>, vector<8x8xf32>, vector<8x8xf32> -> vector<8x8xf32>
    %52 = vector.extract_strided_slice %42 {offsets = [24, 0], sizes = [8, 8], strides = [1, 1]} : vector<64x8xf32> to vector<8x8xf32>
    %53 = vector.extract_strided_slice %8 {offsets = [0, 24], sizes = [8, 8], strides = [1, 1]} : vector<16x32xf32> to vector<8x8xf32>
    %cst_18 = arith.constant dense<0.000000e+00> : vector<8x8xf32>
    %54 = tpu.matmul %52, %53, %cst_18 {dimension_numbers = #tpu.dot_dimension_numbers<[1], [0], [0], [1], [0, 0, 1, 1], [], []>} : vector<8x8xf32>, vector<8x8xf32>, vector<8x8xf32> -> vector<8x8xf32>
    %55 = tpu.concatenate %45, %48, %51, %54 in 1 : vector<8x8xf32>, vector<8x8xf32>, vector<8x8xf32>, vector<8x8xf32> -> vector<8x32xf32>
    %56 = vector.extract_strided_slice %42 {offsets = [32, 0], sizes = [8, 8], strides = [1, 1]} : vector<64x8xf32> to vector<8x8xf32>
    %57 = vector.extract_strided_slice %8 {offsets = [8, 0], sizes = [8, 8], strides = [1, 1]} : vector<16x32xf32> to vector<8x8xf32>
    %cst_19 = arith.constant dense<0.000000e+00> : vector<8x8xf32>
    %58 = tpu.matmul %56, %57, %cst_19 {dimension_numbers = #tpu.dot_dimension_numbers<[1], [0], [0], [1], [0, 0, 1, 1], [], []>} : vector<8x8xf32>, vector<8x8xf32>, vector<8x8xf32> -> vector<8x8xf32>
    %59 = vector.extract_strided_slice %42 {offsets = [40, 0], sizes = [8, 8], strides = [1, 1]} : vector<64x8xf32> to vector<8x8xf32>
    %60 = vector.extract_strided_slice %8 {offsets = [8, 8], sizes = [8, 8], strides = [1, 1]} : vector<16x32xf32> to vector<8x8xf32>
    %cst_20 = arith.constant dense<0.000000e+00> : vector<8x8xf32>
    %61 = tpu.matmul %59, %60, %cst_20 {dimension_numbers = #tpu.dot_dimension_numbers<[1], [0], [0], [1], [0, 0, 1, 1], [], []>} : vector<8x8xf32>, vector<8x8xf32>, vector<8x8xf32> -> vector<8x8xf32>
    %62 = vector.extract_strided_slice %42 {offsets = [48, 0], sizes = [8, 8], strides = [1, 1]} : vector<64x8xf32> to vector<8x8xf32>
    %63 = vector.extract_strided_slice %8 {offsets = [8, 16], sizes = [8, 8], strides = [1, 1]} : vector<16x32xf32> to vector<8x8xf32>
    %cst_21 = arith.constant dense<0.000000e+00> : vector<8x8xf32>
    %64 = tpu.matmul %62, %63, %cst_21 {dimension_numbers = #tpu.dot_dimension_numbers<[1], [0], [0], [1], [0, 0, 1, 1], [], []>} : vector<8x8xf32>, vector<8x8xf32>, vector<8x8xf32> -> vector<8x8xf32>
    %65 = vector.extract_strided_slice %42 {offsets = [56, 0], sizes = [8, 8], strides = [1, 1]} : vector<64x8xf32> to vector<8x8xf32>
    %66 = vector.extract_strided_slice %8 {offsets = [8, 24], sizes = [8, 8], strides = [1, 1]} : vector<16x32xf32> to vector<8x8xf32>
    %cst_22 = arith.constant dense<0.000000e+00> : vector<8x8xf32>
    %67 = tpu.matmul %65, %66, %cst_22 {dimension_numbers = #tpu.dot_dimension_numbers<[1], [0], [0], [1], [0, 0, 1, 1], [], []>} : vector<8x8xf32>, vector<8x8xf32>, vector<8x8xf32> -> vector<8x8xf32>
    %68 = tpu.concatenate %58, %61, %64, %67 in 1 : vector<8x8xf32>, vector<8x8xf32>, vector<8x8xf32>, vector<8x8xf32> -> vector<8x32xf32>
    %69 = tpu.concatenate %55, %68 in 0 : vector<8x32xf32>, vector<8x32xf32> -> vector<16x32xf32>
    %c0_23 = arith.constant 0 : index
    %c0_24 = arith.constant 0 : index
    %70 = vector.load %arg3[%c0_23, %c0_24] : memref<32x32xf32, #tpu.memory_space<vmem>>, vector<32x32xf32>
    %cst_25 = arith.constant dense<0.000000e+00> : vector<16x32xf32>
    %71 = tpu.matmul %69, %70, %cst_25 {dimension_numbers = #tpu.dot_dimension_numbers<[1], [0], [0], [1], [0, 0, 1, 1], [], []>} : vector<16x32xf32>, vector<32x32xf32>, vector<16x32xf32> -> vector<16x32xf32>
    %c0_26 = arith.constant 0 : index
    %c0_27 = arith.constant 0 : index
    %72 = vector.load %arg4[%c0_26, %c0_27] : memref<1x32xf32, #tpu.memory_space<vmem>>, vector<1x32xf32>
    %73 = vector.broadcast %72 : vector<1x32xf32> to vector<16x32xf32>
    %74 = arith.addf %71, %73 : vector<16x32xf32>
    %75 = arith.addf %0, %74 : vector<16x32xf32>
    %c0_28 = arith.constant 0 : index
    %c0_29 = arith.constant 0 : index
    %76 = vector.load %arg5[%c0_28, %c0_29] : memref<1x32xf32, #tpu.memory_space<vmem>>, vector<1x32xf32>
    %c0_30 = arith.constant 0 : index
    %c0_31 = arith.constant 0 : index
    %77 = vector.load %arg6[%c0_30, %c0_31] : memref<1x32xf32, #tpu.memory_space<vmem>>, vector<1x32xf32>
    %cst_32 = arith.constant dense<0.000000e+00> : vector<16xf32>
    %78 = vector.multi_reduction <add>, %75, %cst_32 [1] : vector<16x32xf32> to vector<16xf32>
    %79 = vector.shape_cast %78 : vector<16xf32> to vector<16x1xf32>
    %cst_33 = arith.constant 3.200000e+01 : f32
    %80 = vector.broadcast %cst_33 : f32 to vector<16x1xf32>
    %81 = arith.divf %79, %80 : vector<16x1xf32>
    %82 = vector.broadcast %81 : vector<16x1xf32> to vector<16x32xf32>
    %83 = arith.subf %75, %82 : vector<16x32xf32>
    %84 = arith.mulf %83, %83 : vector<16x32xf32>
    %cst_34 = arith.constant dense<0.000000e+00> : vector<16xf32>
    %85 = vector.multi_reduction <add>, %84, %cst_34 [1] : vector<16x32xf32> to vector<16xf32>
    %86 = vector.shape_cast %85 : vector<16xf32> to vector<16x1xf32>
    %cst_35 = arith.constant 3.200000e+01 : f32
    %87 = vector.broadcast %cst_35 : f32 to vector<16x1xf32>
    %88 = arith.divf %86, %87 : vector<16x1xf32>
    %89 = vector.broadcast %81 : vector<16x1xf32> to vector<16x32xf32>
    %90 = arith.subf %75, %89 : vector<16x32xf32>
    %cst_36 = arith.constant 9.99999974E-6 : f32
    %91 = vector.broadcast %cst_36 : f32 to vector<16x1xf32>
    %92 = arith.addf %88, %91 : vector<16x1xf32>
    %93 = math.rsqrt %92 : vector<16x1xf32>
    %94 = vector.broadcast %93 : vector<16x1xf32> to vector<16x32xf32>
    %95 = arith.mulf %90, %94 : vector<16x32xf32>
    %96 = vector.broadcast %76 : vector<1x32xf32> to vector<16x32xf32>
    %97 = arith.mulf %95, %96 : vector<16x32xf32>
    %98 = vector.broadcast %77 : vector<1x32xf32> to vector<16x32xf32>
    %99 = arith.addf %97, %98 : vector<16x32xf32>
    %c0_37 = arith.constant 0 : index
    %c0_38 = arith.constant 0 : index
    %100 = vector.load %arg7[%c0_37, %c0_38] : memref<32x512xf32, #tpu.memory_space<vmem>>, vector<32x512xf32>
    %cst_39 = arith.constant dense<0.000000e+00> : vector<16x512xf32>
    %101 = tpu.matmul %99, %100, %cst_39 {dimension_numbers = #tpu.dot_dimension_numbers<[1], [0], [0], [1], [0, 0, 1, 1], [], []>} : vector<16x32xf32>, vector<32x512xf32>, vector<16x512xf32> -> vector<16x512xf32>
    %c0_40 = arith.constant 0 : index
    %c0_41 = arith.constant 0 : index
    %102 = vector.load %arg8[%c0_40, %c0_41] : memref<1x512xf32, #tpu.memory_space<vmem>>, vector<1x512xf32>
    %103 = vector.broadcast %102 : vector<1x512xf32> to vector<16x512xf32>
    %104 = arith.addf %101, %103 : vector<16x512xf32>
    %105 = vector.extract_strided_slice %104 {offsets = [0, 0], sizes = [16, 256], strides = [1, 1]} : vector<16x512xf32> to vector<16x256xf32>
    %106 = vector.shape_cast %105 : vector<16x256xf32> to vector<2x8x256xf32>
    %c0_42 = arith.constant 0 : index
    %c0_43 = arith.constant 0 : index
    %c0_44 = arith.constant 0 : index
    %107 = vector.load %arg16[%c0_42, %c0_43, %c0_44] : memref<2x8x256xf32, #tpu.memory_space<vmem>>, vector<2x8x256xf32>
    tpu.vector_store %arg16[%c0_42, %c0_43, %c0_44], %106 {strides = array<i32>} : memref<2x8x256xf32, #tpu.memory_space<vmem>>, vector<2x8x256xf32>,
    %108 = vector.extract_strided_slice %104 {offsets = [0, 256], sizes = [16, 256], strides = [1, 1]} : vector<16x512xf32> to vector<16x256xf32>
    %109 = vector.shape_cast %108 : vector<16x256xf32> to vector<2x8x256xf32>
    %c0_45 = arith.constant 0 : index
    %c0_46 = arith.constant 0 : index
    %c0_47 = arith.constant 0 : index
    %110 = vector.load %arg17[%c0_45, %c0_46, %c0_47] : memref<2x8x256xf32, #tpu.memory_space<vmem>>, vector<2x8x256xf32>
    tpu.vector_store %arg17[%c0_45, %c0_46, %c0_47], %109 {strides = array<i32>} : memref<2x8x256xf32, #tpu.memory_space<vmem>>, vector<2x8x256xf32>,
    %c0_48 = arith.constant 0 : index
    %c0_49 = arith.constant 0 : index
    %111 = vector.load %arg9[%c0_48, %c0_49] : memref<128x512xf32, #tpu.memory_space<vmem>>, vector<128x512xf32>
    %cst_50 = arith.constant 0.000000e+00 : f32
    %112 = vector.broadcast %cst_50 : f32 to vector<2x128xf32>
    %cst_51 = arith.constant 0.000000e+00 : f32
    %113 = vector.broadcast %cst_51 : f32 to vector<2x128xf32>
    %cst_52 = arith.constant dense<0.000000e+00> : vector<2x512xf32>
    %114 = tpu.matmul %112, %111, %cst_52 {dimension_numbers = #tpu.dot_dimension_numbers<[1], [0], [0], [1], [0, 0, 1, 1], [], []>} : vector<2x128xf32>, vector<128x512xf32>, vector<2x512xf32> -> vector<2x512xf32>
    %c0_53 = arith.constant 0 : index
    %c0_54 = arith.constant 0 : index
    %c0_55 = arith.constant 0 : index
    %115 = vector.load %arg16[%c0_53, %c0_54, %c0_55] : memref<2x8x256xf32, #tpu.memory_space<vmem>>, vector<2x1x256xf32>
    %116 = vector.shape_cast %115 : vector<2x1x256xf32> to vector<2x256xf32>
    %117 = vector.extract_strided_slice %114 {offsets = [0, 0], sizes = [2, 256], strides = [1, 1]} : vector<2x512xf32> to vector<2x256xf32>
    %118 = arith.addf %116, %117 : vector<2x256xf32>
    %c0_56 = arith.constant 0 : index
    %c7 = arith.constant 7 : index
    %c0_57 = arith.constant 0 : index
    %119 = vector.load %arg17[%c0_56, %c7, %c0_57] : memref<2x8x256xf32, #tpu.memory_space<vmem>>, vector<2x1x256xf32>
    %120 = vector.shape_cast %119 : vector<2x1x256xf32> to vector<2x256xf32>
    %121 = vector.extract_strided_slice %114 {offsets = [0, 256], sizes = [2, 256], strides = [1, 1]} : vector<2x512xf32> to vector<2x256xf32>
    %122 = arith.addf %120, %121 : vector<2x256xf32>
    %123 = vector.extract_strided_slice %118 {offsets = [0, 0], sizes = [2, 192], strides = [1, 1]} : vector<2x256xf32> to vector<2x192xf32>
    %124 = vector.extract_strided_slice %122 {offsets = [0, 0], sizes = [2, 192], strides = [1, 1]} : vector<2x256xf32> to vector<2x192xf32>
    %125 = tpu.concatenate %123, %124 in 1 : vector<2x192xf32>, vector<2x192xf32> -> vector<2x384xf32>
    %126 = arith.negf %125 : vector<2x384xf32>
    %127 = math.exp %126 : vector<2x384xf32>
    %cst_58 = arith.constant 1.000000e+00 : f32
    %128 = vector.broadcast %cst_58 : f32 to vector<2x384xf32>
    %129 = arith.addf %128, %127 : vector<2x384xf32>
    %130 = arith.divf %128, %129 : vector<2x384xf32>
    %131 = vector.extract_strided_slice %118 {offsets = [0, 192], sizes = [2, 64], strides = [1, 1]} : vector<2x256xf32> to vector<2x64xf32>
    %132 = vector.extract_strided_slice %122 {offsets = [0, 192], sizes = [2, 64], strides = [1, 1]} : vector<2x256xf32> to vector<2x64xf32>
    %133 = tpu.concatenate %131, %132 in 1 : vector<2x64xf32>, vector<2x64xf32> -> vector<2x128xf32>
    %134 = math.tanh %133 : vector<2x128xf32>
    %135 = vector.extract_strided_slice %130 {offsets = [0, 0], sizes = [2, 64], strides = [1, 1]} : vector<2x384xf32> to vector<2x64xf32>
    %136 = vector.extract_strided_slice %130 {offsets = [0, 192], sizes = [2, 64], strides = [1, 1]} : vector<2x384xf32> to vector<2x64xf32>
    %137 = tpu.concatenate %135, %136 in 1 : vector<2x64xf32>, vector<2x64xf32> -> vector<2x128xf32>
    %138 = vector.extract_strided_slice %130 {offsets = [0, 64], sizes = [2, 64], strides = [1, 1]} : vector<2x384xf32> to vector<2x64xf32>
    %139 = vector.extract_strided_slice %130 {offsets = [0, 256], sizes = [2, 64], strides = [1, 1]} : vector<2x384xf32> to vector<2x64xf32>
    %140 = tpu.concatenate %138, %139 in 1 : vector<2x64xf32>, vector<2x64xf32> -> vector<2x128xf32>
    %141 = vector.extract_strided_slice %130 {offsets = [0, 128], sizes = [2, 64], strides = [1, 1]} : vector<2x384xf32> to vector<2x64xf32>
    %142 = vector.extract_strided_slice %130 {offsets = [0, 320], sizes = [2, 64], strides = [1, 1]} : vector<2x384xf32> to vector<2x64xf32>
    %143 = tpu.concatenate %141, %142 in 1 : vector<2x64xf32>, vector<2x64xf32> -> vector<2x128xf32>
    %144 = arith.mulf %140, %113 : vector<2x128xf32>
    %145 = arith.mulf %137, %134 : vector<2x128xf32>
    %146 = arith.addf %144, %145 : vector<2x128xf32>
    %147 = math.tanh %146 : vector<2x128xf32>
    %148 = arith.mulf %143, %147 : vector<2x128xf32>
    %149 = vector.extract_strided_slice %148 {offsets = [0, 0], sizes = [2, 64], strides = [1, 1]} : vector<2x128xf32> to vector<2x64xf32>
    %c0_59 = arith.constant 0 : index
    %c0_60 = arith.constant 0 : index
    %c0_61 = arith.constant 0 : index
    %150 = vector.load %arg18[%c0_59, %c0_60, %c0_61] : memref<2x8x128xf32, #tpu.memory_space<vmem>>, vector<2x1x64xf32>
    %151 = vector.shape_cast %150 : vector<2x1x64xf32> to vector<2x64xf32>
    %152 = vector.shape_cast %149 : vector<2x64xf32> to vector<2x1x64xf32>
    tpu.vector_store %arg18[%c0_59, %c0_60, %c0_61], %152 {strides = array<i32>} : memref<2x8x128xf32, #tpu.memory_space<vmem>>, vector<2x1x64xf32>,
    %153 = vector.extract_strided_slice %148 {offsets = [0, 64], sizes = [2, 64], strides = [1, 1]} : vector<2x128xf32> to vector<2x64xf32>
    %c0_62 = arith.constant 0 : index
    %c7_63 = arith.constant 7 : index
    %c64 = arith.constant 64 : index
    %154 = vector.load %arg18[%c0_62, %c7_63, %c64] : memref<2x8x128xf32, #tpu.memory_space<vmem>>, vector<2x1x64xf32>
    %155 = vector.shape_cast %154 : vector<2x1x64xf32> to vector<2x64xf32>
    %156 = vector.shape_cast %153 : vector<2x64xf32> to vector<2x1x64xf32>
    tpu.vector_store %arg18[%c0_62, %c7_63, %c64], %156 {strides = array<i32>} : memref<2x8x128xf32, #tpu.memory_space<vmem>>, vector<2x1x64xf32>,
    %cst_64 = arith.constant dense<0.000000e+00> : vector<2x512xf32>
    %157 = tpu.matmul %148, %111, %cst_64 {dimension_numbers = #tpu.dot_dimension_numbers<[1], [0], [0], [1], [0, 0, 1, 1], [], []>} : vector<2x128xf32>, vector<128x512xf32>, vector<2x512xf32> -> vector<2x512xf32>
    %c0_65 = arith.constant 0 : index
    %c1 = arith.constant 1 : index
    %c0_66 = arith.constant 0 : index
    %158 = vector.load %arg16[%c0_65, %c1, %c0_66] : memref<2x8x256xf32, #tpu.memory_space<vmem>>, vector<2x1x256xf32>
    %159 = vector.shape_cast %158 : vector<2x1x256xf32> to vector<2x256xf32>
    %160 = vector.extract_strided_slice %157 {offsets = [0, 0], sizes = [2, 256], strides = [1, 1]} : vector<2x512xf32> to vector<2x256xf32>
    %161 = arith.addf %159, %160 : vector<2x256xf32>
    %c0_67 = arith.constant 0 : index
    %c6 = arith.constant 6 : index
    %c0_68 = arith.constant 0 : index
    %162 = vector.load %arg17[%c0_67, %c6, %c0_68] : memref<2x8x256xf32, #tpu.memory_space<vmem>>, vector<2x1x256xf32>
    %163 = vector.shape_cast %162 : vector<2x1x256xf32> to vector<2x256xf32>
    %164 = vector.extract_strided_slice %157 {offsets = [0, 256], sizes = [2, 256], strides = [1, 1]} : vector<2x512xf32> to vector<2x256xf32>
    %165 = arith.addf %163, %164 : vector<2x256xf32>
    %166 = vector.extract_strided_slice %161 {offsets = [0, 0], sizes = [2, 192], strides = [1, 1]} : vector<2x256xf32> to vector<2x192xf32>
    %167 = vector.extract_strided_slice %165 {offsets = [0, 0], sizes = [2, 192], strides = [1, 1]} : vector<2x256xf32> to vector<2x192xf32>
    %168 = tpu.concatenate %166, %167 in 1 : vector<2x192xf32>, vector<2x192xf32> -> vector<2x384xf32>
    %169 = arith.negf %168 : vector<2x384xf32>
    %170 = math.exp %169 : vector<2x384xf32>
    %cst_69 = arith.constant 1.000000e+00 : f32
    %171 = vector.broadcast %cst_69 : f32 to vector<2x384xf32>
    %172 = arith.addf %171, %170 : vector<2x384xf32>
    %173 = arith.divf %171, %172 : vector<2x384xf32>
    %174 = vector.extract_strided_slice %161 {offsets = [0, 192], sizes = [2, 64], strides = [1, 1]} : vector<2x256xf32> to vector<2x64xf32>
    %175 = vector.extract_strided_slice %165 {offsets = [0, 192], sizes = [2, 64], strides = [1, 1]} : vector<2x256xf32> to vector<2x64xf32>
    %176 = tpu.concatenate %174, %175 in 1 : vector<2x64xf32>, vector<2x64xf32> -> vector<2x128xf32>
    %177 = math.tanh %176 : vector<2x128xf32>
    %178 = vector.extract_strided_slice %173 {offsets = [0, 0], sizes = [2, 64], strides = [1, 1]} : vector<2x384xf32> to vector<2x64xf32>
    %179 = vector.extract_strided_slice %173 {offsets = [0, 192], sizes = [2, 64], strides = [1, 1]} : vector<2x384xf32> to vector<2x64xf32>
    %180 = tpu.concatenate %178, %179 in 1 : vector<2x64xf32>, vector<2x64xf32> -> vector<2x128xf32>
    %181 = vector.extract_strided_slice %173 {offsets = [0, 64], sizes = [2, 64], strides = [1, 1]} : vector<2x384xf32> to vector<2x64xf32>
    %182 = vector.extract_strided_slice %173 {offsets = [0, 256], sizes = [2, 64], strides = [1, 1]} : vector<2x384xf32> to vector<2x64xf32>
    %183 = tpu.concatenate %181, %182 in 1 : vector<2x64xf32>, vector<2x64xf32> -> vector<2x128xf32>
    %184 = vector.extract_strided_slice %173 {offsets = [0, 128], sizes = [2, 64], strides = [1, 1]} : vector<2x384xf32> to vector<2x64xf32>
    %185 = vector.extract_strided_slice %173 {offsets = [0, 320], sizes = [2, 64], strides = [1, 1]} : vector<2x384xf32> to vector<2x64xf32>
    %186 = tpu.concatenate %184, %185 in 1 : vector<2x64xf32>, vector<2x64xf32> -> vector<2x128xf32>
    %187 = arith.mulf %183, %146 : vector<2x128xf32>
    %188 = arith.mulf %180, %177 : vector<2x128xf32>
    %189 = arith.addf %187, %188 : vector<2x128xf32>
    %190 = math.tanh %189 : vector<2x128xf32>
    %191 = arith.mulf %186, %190 : vector<2x128xf32>
    %192 = vector.extract_strided_slice %191 {offsets = [0, 0], sizes = [2, 64], strides = [1, 1]} : vector<2x128xf32> to vector<2x64xf32>
    %c0_70 = arith.constant 0 : index
    %c1_71 = arith.constant 1 : index
    %c0_72 = arith.constant 0 : index
    %193 = vector.load %arg18[%c0_70, %c1_71, %c0_72] : memref<2x8x128xf32, #tpu.memory_space<vmem>>, vector<2x1x64xf32>
    %194 = vector.shape_cast %193 : vector<2x1x64xf32> to vector<2x64xf32>
    %195 = vector.shape_cast %192 : vector<2x64xf32> to vector<2x1x64xf32>
    tpu.vector_store %arg18[%c0_70, %c1_71, %c0_72], %195 {strides = array<i32>} : memref<2x8x128xf32, #tpu.memory_space<vmem>>, vector<2x1x64xf32>,
    %196 = vector.extract_strided_slice %191 {offsets = [0, 64], sizes = [2, 64], strides = [1, 1]} : vector<2x128xf32> to vector<2x64xf32>
    %c0_73 = arith.constant 0 : index
    %c6_74 = arith.constant 6 : index
    %c64_75 = arith.constant 64 : index
    %197 = vector.load %arg18[%c0_73, %c6_74, %c64_75] : memref<2x8x128xf32, #tpu.memory_space<vmem>>, vector<2x1x64xf32>
    %198 = vector.shape_cast %197 : vector<2x1x64xf32> to vector<2x64xf32>
    %199 = vector.shape_cast %196 : vector<2x64xf32> to vector<2x1x64xf32>
    tpu.vector_store %arg18[%c0_73, %c6_74, %c64_75], %199 {strides = array<i32>} : memref<2x8x128xf32, #tpu.memory_space<vmem>>, vector<2x1x64xf32>,
    %cst_76 = arith.constant dense<0.000000e+00> : vector<2x512xf32>
    %200 = tpu.matmul %191, %111, %cst_76 {dimension_numbers = #tpu.dot_dimension_numbers<[1], [0], [0], [1], [0, 0, 1, 1], [], []>} : vector<2x128xf32>, vector<128x512xf32>, vector<2x512xf32> -> vector<2x512xf32>
    %c0_77 = arith.constant 0 : index
    %c2 = arith.constant 2 : index
    %c0_78 = arith.constant 0 : index
    %201 = vector.load %arg16[%c0_77, %c2, %c0_78] : memref<2x8x256xf32, #tpu.memory_space<vmem>>, vector<2x1x256xf32>
    %202 = vector.shape_cast %201 : vector<2x1x256xf32> to vector<2x256xf32>
    %203 = vector.extract_strided_slice %200 {offsets = [0, 0], sizes = [2, 256], strides = [1, 1]} : vector<2x512xf32> to vector<2x256xf32>
    %204 = arith.addf %202, %203 : vector<2x256xf32>
    %c0_79 = arith.constant 0 : index
    %c5 = arith.constant 5 : index
    %c0_80 = arith.constant 0 : index
    %205 = vector.load %arg17[%c0_79, %c5, %c0_80] : memref<2x8x256xf32, #tpu.memory_space<vmem>>, vector<2x1x256xf32>
    %206 = vector.shape_cast %205 : vector<2x1x256xf32> to vector<2x256xf32>
    %207 = vector.extract_strided_slice %200 {offsets = [0, 256], sizes = [2, 256], strides = [1, 1]} : vector<2x512xf32> to vector<2x256xf32>
    %208 = arith.addf %206, %207 : vector<2x256xf32>
    %209 = vector.extract_strided_slice %204 {offsets = [0, 0], sizes = [2, 192], strides = [1, 1]} : vector<2x256xf32> to vector<2x192xf32>
    %210 = vector.extract_strided_slice %208 {offsets = [0, 0], sizes = [2, 192], strides = [1, 1]} : vector<2x256xf32> to vector<2x192xf32>
    %211 = tpu.concatenate %209, %210 in 1 : vector<2x192xf32>, vector<2x192xf32> -> vector<2x384xf32>
    %212 = arith.negf %211 : vector<2x384xf32>
    %213 = math.exp %212 : vector<2x384xf32>
    %cst_81 = arith.constant 1.000000e+00 : f32
    %214 = vector.broadcast %cst_81 : f32 to vector<2x384xf32>
    %215 = arith.addf %214, %213 : vector<2x384xf32>
    %216 = arith.divf %214, %215 : vector<2x384xf32>
    %217 = vector.extract_strided_slice %204 {offsets = [0, 192], sizes = [2, 64], strides = [1, 1]} : vector<2x256xf32> to vector<2x64xf32>
    %218 = vector.extract_strided_slice %208 {offsets = [0, 192], sizes = [2, 64], strides = [1, 1]} : vector<2x256xf32> to vector<2x64xf32>
    %219 = tpu.concatenate %217, %218 in 1 : vector<2x64xf32>, vector<2x64xf32> -> vector<2x128xf32>
    %220 = math.tanh %219 : vector<2x128xf32>
    %221 = vector.extract_strided_slice %216 {offsets = [0, 0], sizes = [2, 64], strides = [1, 1]} : vector<2x384xf32> to vector<2x64xf32>
    %222 = vector.extract_strided_slice %216 {offsets = [0, 192], sizes = [2, 64], strides = [1, 1]} : vector<2x384xf32> to vector<2x64xf32>
    %223 = tpu.concatenate %221, %222 in 1 : vector<2x64xf32>, vector<2x64xf32> -> vector<2x128xf32>
    %224 = vector.extract_strided_slice %216 {offsets = [0, 64], sizes = [2, 64], strides = [1, 1]} : vector<2x384xf32> to vector<2x64xf32>
    %225 = vector.extract_strided_slice %216 {offsets = [0, 256], sizes = [2, 64], strides = [1, 1]} : vector<2x384xf32> to vector<2x64xf32>
    %226 = tpu.concatenate %224, %225 in 1 : vector<2x64xf32>, vector<2x64xf32> -> vector<2x128xf32>
    %227 = vector.extract_strided_slice %216 {offsets = [0, 128], sizes = [2, 64], strides = [1, 1]} : vector<2x384xf32> to vector<2x64xf32>
    %228 = vector.extract_strided_slice %216 {offsets = [0, 320], sizes = [2, 64], strides = [1, 1]} : vector<2x384xf32> to vector<2x64xf32>
    %229 = tpu.concatenate %227, %228 in 1 : vector<2x64xf32>, vector<2x64xf32> -> vector<2x128xf32>
    %230 = arith.mulf %226, %189 : vector<2x128xf32>
    %231 = arith.mulf %223, %220 : vector<2x128xf32>
    %232 = arith.addf %230, %231 : vector<2x128xf32>
    %233 = math.tanh %232 : vector<2x128xf32>
    %234 = arith.mulf %229, %233 : vector<2x128xf32>
    %235 = vector.extract_strided_slice %234 {offsets = [0, 0], sizes = [2, 64], strides = [1, 1]} : vector<2x128xf32> to vector<2x64xf32>
    %c0_82 = arith.constant 0 : index
    %c2_83 = arith.constant 2 : index
    %c0_84 = arith.constant 0 : index
    %236 = vector.load %arg18[%c0_82, %c2_83, %c0_84] : memref<2x8x128xf32, #tpu.memory_space<vmem>>, vector<2x1x64xf32>
    %237 = vector.shape_cast %236 : vector<2x1x64xf32> to vector<2x64xf32>
    %238 = vector.shape_cast %235 : vector<2x64xf32> to vector<2x1x64xf32>
    tpu.vector_store %arg18[%c0_82, %c2_83, %c0_84], %238 {strides = array<i32>} : memref<2x8x128xf32, #tpu.memory_space<vmem>>, vector<2x1x64xf32>,
    %239 = vector.extract_strided_slice %234 {offsets = [0, 64], sizes = [2, 64], strides = [1, 1]} : vector<2x128xf32> to vector<2x64xf32>
    %c0_85 = arith.constant 0 : index
    %c5_86 = arith.constant 5 : index
    %c64_87 = arith.constant 64 : index
    %240 = vector.load %arg18[%c0_85, %c5_86, %c64_87] : memref<2x8x128xf32, #tpu.memory_space<vmem>>, vector<2x1x64xf32>
    %241 = vector.shape_cast %240 : vector<2x1x64xf32> to vector<2x64xf32>
    %242 = vector.shape_cast %239 : vector<2x64xf32> to vector<2x1x64xf32>
    tpu.vector_store %arg18[%c0_85, %c5_86, %c64_87], %242 {strides = array<i32>} : memref<2x8x128xf32, #tpu.memory_space<vmem>>, vector<2x1x64xf32>,
    %cst_88 = arith.constant dense<0.000000e+00> : vector<2x512xf32>
    %243 = tpu.matmul %234, %111, %cst_88 {dimension_numbers = #tpu.dot_dimension_numbers<[1], [0], [0], [1], [0, 0, 1, 1], [], []>} : vector<2x128xf32>, vector<128x512xf32>, vector<2x512xf32> -> vector<2x512xf32>
    %c0_89 = arith.constant 0 : index
    %c3 = arith.constant 3 : index
    %c0_90 = arith.constant 0 : index
    %244 = vector.load %arg16[%c0_89, %c3, %c0_90] : memref<2x8x256xf32, #tpu.memory_space<vmem>>, vector<2x1x256xf32>
    %245 = vector.shape_cast %244 : vector<2x1x256xf32> to vector<2x256xf32>
    %246 = vector.extract_strided_slice %243 {offsets = [0, 0], sizes = [2, 256], strides = [1, 1]} : vector<2x512xf32> to vector<2x256xf32>
    %247 = arith.addf %245, %246 : vector<2x256xf32>
    %c0_91 = arith.constant 0 : index
    %c4 = arith.constant 4 : index
    %c0_92 = arith.constant 0 : index
    %248 = vector.load %arg17[%c0_91, %c4, %c0_92] : memref<2x8x256xf32, #tpu.memory_space<vmem>>, vector<2x1x256xf32>
    %249 = vector.shape_cast %248 : vector<2x1x256xf32> to vector<2x256xf32>
    %250 = vector.extract_strided_slice %243 {offsets = [0, 256], sizes = [2, 256], strides = [1, 1]} : vector<2x512xf32> to vector<2x256xf32>
    %251 = arith.addf %249, %250 : vector<2x256xf32>
    %252 = vector.extract_strided_slice %247 {offsets = [0, 0], sizes = [2, 192], strides = [1, 1]} : vector<2x256xf32> to vector<2x192xf32>
    %253 = vector.extract_strided_slice %251 {offsets = [0, 0], sizes = [2, 192], strides = [1, 1]} : vector<2x256xf32> to vector<2x192xf32>
    %254 = tpu.concatenate %252, %253 in 1 : vector<2x192xf32>, vector<2x192xf32> -> vector<2x384xf32>
    %255 = arith.negf %254 : vector<2x384xf32>
    %256 = math.exp %255 : vector<2x384xf32>
    %cst_93 = arith.constant 1.000000e+00 : f32
    %257 = vector.broadcast %cst_93 : f32 to vector<2x384xf32>
    %258 = arith.addf %257, %256 : vector<2x384xf32>
    %259 = arith.divf %257, %258 : vector<2x384xf32>
    %260 = vector.extract_strided_slice %247 {offsets = [0, 192], sizes = [2, 64], strides = [1, 1]} : vector<2x256xf32> to vector<2x64xf32>
    %261 = vector.extract_strided_slice %251 {offsets = [0, 192], sizes = [2, 64], strides = [1, 1]} : vector<2x256xf32> to vector<2x64xf32>
    %262 = tpu.concatenate %260, %261 in 1 : vector<2x64xf32>, vector<2x64xf32> -> vector<2x128xf32>
    %263 = math.tanh %262 : vector<2x128xf32>
    %264 = vector.extract_strided_slice %259 {offsets = [0, 0], sizes = [2, 64], strides = [1, 1]} : vector<2x384xf32> to vector<2x64xf32>
    %265 = vector.extract_strided_slice %259 {offsets = [0, 192], sizes = [2, 64], strides = [1, 1]} : vector<2x384xf32> to vector<2x64xf32>
    %266 = tpu.concatenate %264, %265 in 1 : vector<2x64xf32>, vector<2x64xf32> -> vector<2x128xf32>
    %267 = vector.extract_strided_slice %259 {offsets = [0, 64], sizes = [2, 64], strides = [1, 1]} : vector<2x384xf32> to vector<2x64xf32>
    %268 = vector.extract_strided_slice %259 {offsets = [0, 256], sizes = [2, 64], strides = [1, 1]} : vector<2x384xf32> to vector<2x64xf32>
    %269 = tpu.concatenate %267, %268 in 1 : vector<2x64xf32>, vector<2x64xf32> -> vector<2x128xf32>
    %270 = vector.extract_strided_slice %259 {offsets = [0, 128], sizes = [2, 64], strides = [1, 1]} : vector<2x384xf32> to vector<2x64xf32>
    %271 = vector.extract_strided_slice %259 {offsets = [0, 320], sizes = [2, 64], strides = [1, 1]} : vector<2x384xf32> to vector<2x64xf32>
    %272 = tpu.concatenate %270, %271 in 1 : vector<2x64xf32>, vector<2x64xf32> -> vector<2x128xf32>
    %273 = arith.mulf %269, %232 : vector<2x128xf32>
    %274 = arith.mulf %266, %263 : vector<2x128xf32>
    %275 = arith.addf %273, %274 : vector<2x128xf32>
    %276 = math.tanh %275 : vector<2x128xf32>
    %277 = arith.mulf %272, %276 : vector<2x128xf32>
    %278 = vector.extract_strided_slice %277 {offsets = [0, 0], sizes = [2, 64], strides = [1, 1]} : vector<2x128xf32> to vector<2x64xf32>
    %c0_94 = arith.constant 0 : index
    %c3_95 = arith.constant 3 : index
    %c0_96 = arith.constant 0 : index
    %279 = vector.load %arg18[%c0_94, %c3_95, %c0_96] : memref<2x8x128xf32, #tpu.memory_space<vmem>>, vector<2x1x64xf32>
    %280 = vector.shape_cast %279 : vector<2x1x64xf32> to vector<2x64xf32>
    %281 = vector.shape_cast %278 : vector<2x64xf32> to vector<2x1x64xf32>
    tpu.vector_store %arg18[%c0_94, %c3_95, %c0_96], %281 {strides = array<i32>} : memref<2x8x128xf32, #tpu.memory_space<vmem>>, vector<2x1x64xf32>,
    %282 = vector.extract_strided_slice %277 {offsets = [0, 64], sizes = [2, 64], strides = [1, 1]} : vector<2x128xf32> to vector<2x64xf32>
    %c0_97 = arith.constant 0 : index
    %c4_98 = arith.constant 4 : index
    %c64_99 = arith.constant 64 : index
    %283 = vector.load %arg18[%c0_97, %c4_98, %c64_99] : memref<2x8x128xf32, #tpu.memory_space<vmem>>, vector<2x1x64xf32>
    %284 = vector.shape_cast %283 : vector<2x1x64xf32> to vector<2x64xf32>
    %285 = vector.shape_cast %282 : vector<2x64xf32> to vector<2x1x64xf32>
    tpu.vector_store %arg18[%c0_97, %c4_98, %c64_99], %285 {strides = array<i32>} : memref<2x8x128xf32, #tpu.memory_space<vmem>>, vector<2x1x64xf32>,
    %cst_100 = arith.constant dense<0.000000e+00> : vector<2x512xf32>
    %286 = tpu.matmul %277, %111, %cst_100 {dimension_numbers = #tpu.dot_dimension_numbers<[1], [0], [0], [1], [0, 0, 1, 1], [], []>} : vector<2x128xf32>, vector<128x512xf32>, vector<2x512xf32> -> vector<2x512xf32>
    %c0_101 = arith.constant 0 : index
    %c4_102 = arith.constant 4 : index
    %c0_103 = arith.constant 0 : index
    %287 = vector.load %arg16[%c0_101, %c4_102, %c0_103] : memref<2x8x256xf32, #tpu.memory_space<vmem>>, vector<2x1x256xf32>
    %288 = vector.shape_cast %287 : vector<2x1x256xf32> to vector<2x256xf32>
    %289 = vector.extract_strided_slice %286 {offsets = [0, 0], sizes = [2, 256], strides = [1, 1]} : vector<2x512xf32> to vector<2x256xf32>
    %290 = arith.addf %288, %289 : vector<2x256xf32>
    %c0_104 = arith.constant 0 : index
    %c3_105 = arith.constant 3 : index
    %c0_106 = arith.constant 0 : index
    %291 = vector.load %arg17[%c0_104, %c3_105, %c0_106] : memref<2x8x256xf32, #tpu.memory_space<vmem>>, vector<2x1x256xf32>
    %292 = vector.shape_cast %291 : vector<2x1x256xf32> to vector<2x256xf32>
    %293 = vector.extract_strided_slice %286 {offsets = [0, 256], sizes = [2, 256], strides = [1, 1]} : vector<2x512xf32> to vector<2x256xf32>
    %294 = arith.addf %292, %293 : vector<2x256xf32>
    %295 = vector.extract_strided_slice %290 {offsets = [0, 0], sizes = [2, 192], strides = [1, 1]} : vector<2x256xf32> to vector<2x192xf32>
    %296 = vector.extract_strided_slice %294 {offsets = [0, 0], sizes = [2, 192], strides = [1, 1]} : vector<2x256xf32> to vector<2x192xf32>
    %297 = tpu.concatenate %295, %296 in 1 : vector<2x192xf32>, vector<2x192xf32> -> vector<2x384xf32>
    %298 = arith.negf %297 : vector<2x384xf32>
    %299 = math.exp %298 : vector<2x384xf32>
    %cst_107 = arith.constant 1.000000e+00 : f32
    %300 = vector.broadcast %cst_107 : f32 to vector<2x384xf32>
    %301 = arith.addf %300, %299 : vector<2x384xf32>
    %302 = arith.divf %300, %301 : vector<2x384xf32>
    %303 = vector.extract_strided_slice %290 {offsets = [0, 192], sizes = [2, 64], strides = [1, 1]} : vector<2x256xf32> to vector<2x64xf32>
    %304 = vector.extract_strided_slice %294 {offsets = [0, 192], sizes = [2, 64], strides = [1, 1]} : vector<2x256xf32> to vector<2x64xf32>
    %305 = tpu.concatenate %303, %304 in 1 : vector<2x64xf32>, vector<2x64xf32> -> vector<2x128xf32>
    %306 = math.tanh %305 : vector<2x128xf32>
    %307 = vector.extract_strided_slice %302 {offsets = [0, 0], sizes = [2, 64], strides = [1, 1]} : vector<2x384xf32> to vector<2x64xf32>
    %308 = vector.extract_strided_slice %302 {offsets = [0, 192], sizes = [2, 64], strides = [1, 1]} : vector<2x384xf32> to vector<2x64xf32>
    %309 = tpu.concatenate %307, %308 in 1 : vector<2x64xf32>, vector<2x64xf32> -> vector<2x128xf32>
    %310 = vector.extract_strided_slice %302 {offsets = [0, 64], sizes = [2, 64], strides = [1, 1]} : vector<2x384xf32> to vector<2x64xf32>
    %311 = vector.extract_strided_slice %302 {offsets = [0, 256], sizes = [2, 64], strides = [1, 1]} : vector<2x384xf32> to vector<2x64xf32>
    %312 = tpu.concatenate %310, %311 in 1 : vector<2x64xf32>, vector<2x64xf32> -> vector<2x128xf32>
    %313 = vector.extract_strided_slice %302 {offsets = [0, 128], sizes = [2, 64], strides = [1, 1]} : vector<2x384xf32> to vector<2x64xf32>
    %314 = vector.extract_strided_slice %302 {offsets = [0, 320], sizes = [2, 64], strides = [1, 1]} : vector<2x384xf32> to vector<2x64xf32>
    %315 = tpu.concatenate %313, %314 in 1 : vector<2x64xf32>, vector<2x64xf32> -> vector<2x128xf32>
    %316 = arith.mulf %312, %275 : vector<2x128xf32>
    %317 = arith.mulf %309, %306 : vector<2x128xf32>
    %318 = arith.addf %316, %317 : vector<2x128xf32>
    %319 = math.tanh %318 : vector<2x128xf32>
    %320 = arith.mulf %315, %319 : vector<2x128xf32>
    %321 = vector.extract_strided_slice %320 {offsets = [0, 0], sizes = [2, 64], strides = [1, 1]} : vector<2x128xf32> to vector<2x64xf32>
    %c0_108 = arith.constant 0 : index
    %c4_109 = arith.constant 4 : index
    %c0_110 = arith.constant 0 : index
    %322 = vector.load %arg18[%c0_108, %c4_109, %c0_110] : memref<2x8x128xf32, #tpu.memory_space<vmem>>, vector<2x1x64xf32>
    %323 = vector.shape_cast %322 : vector<2x1x64xf32> to vector<2x64xf32>
    %324 = vector.shape_cast %321 : vector<2x64xf32> to vector<2x1x64xf32>
    tpu.vector_store %arg18[%c0_108, %c4_109, %c0_110], %324 {strides = array<i32>} : memref<2x8x128xf32, #tpu.memory_space<vmem>>, vector<2x1x64xf32>,
    %325 = vector.extract_strided_slice %320 {offsets = [0, 64], sizes = [2, 64], strides = [1, 1]} : vector<2x128xf32> to vector<2x64xf32>
    %c0_111 = arith.constant 0 : index
    %c3_112 = arith.constant 3 : index
    %c64_113 = arith.constant 64 : index
    %326 = vector.load %arg18[%c0_111, %c3_112, %c64_113] : memref<2x8x128xf32, #tpu.memory_space<vmem>>, vector<2x1x64xf32>
    %327 = vector.shape_cast %326 : vector<2x1x64xf32> to vector<2x64xf32>
    %328 = vector.shape_cast %325 : vector<2x64xf32> to vector<2x1x64xf32>
    tpu.vector_store %arg18[%c0_111, %c3_112, %c64_113], %328 {strides = array<i32>} : memref<2x8x128xf32, #tpu.memory_space<vmem>>, vector<2x1x64xf32>,
    %cst_114 = arith.constant dense<0.000000e+00> : vector<2x512xf32>
    %329 = tpu.matmul %320, %111, %cst_114 {dimension_numbers = #tpu.dot_dimension_numbers<[1], [0], [0], [1], [0, 0, 1, 1], [], []>} : vector<2x128xf32>, vector<128x512xf32>, vector<2x512xf32> -> vector<2x512xf32>
    %c0_115 = arith.constant 0 : index
    %c5_116 = arith.constant 5 : index
    %c0_117 = arith.constant 0 : index
    %330 = vector.load %arg16[%c0_115, %c5_116, %c0_117] : memref<2x8x256xf32, #tpu.memory_space<vmem>>, vector<2x1x256xf32>
    %331 = vector.shape_cast %330 : vector<2x1x256xf32> to vector<2x256xf32>
    %332 = vector.extract_strided_slice %329 {offsets = [0, 0], sizes = [2, 256], strides = [1, 1]} : vector<2x512xf32> to vector<2x256xf32>
    %333 = arith.addf %331, %332 : vector<2x256xf32>
    %c0_118 = arith.constant 0 : index
    %c2_119 = arith.constant 2 : index
    %c0_120 = arith.constant 0 : index
    %334 = vector.load %arg17[%c0_118, %c2_119, %c0_120] : memref<2x8x256xf32, #tpu.memory_space<vmem>>, vector<2x1x256xf32>
    %335 = vector.shape_cast %334 : vector<2x1x256xf32> to vector<2x256xf32>
    %336 = vector.extract_strided_slice %329 {offsets = [0, 256], sizes = [2, 256], strides = [1, 1]} : vector<2x512xf32> to vector<2x256xf32>
    %337 = arith.addf %335, %336 : vector<2x256xf32>
    %338 = vector.extract_strided_slice %333 {offsets = [0, 0], sizes = [2, 192], strides = [1, 1]} : vector<2x256xf32> to vector<2x192xf32>
    %339 = vector.extract_strided_slice %337 {offsets = [0, 0], sizes = [2, 192], strides = [1, 1]} : vector<2x256xf32> to vector<2x192xf32>
    %340 = tpu.concatenate %338, %339 in 1 : vector<2x192xf32>, vector<2x192xf32> -> vector<2x384xf32>
    %341 = arith.negf %340 : vector<2x384xf32>
    %342 = math.exp %341 : vector<2x384xf32>
    %cst_121 = arith.constant 1.000000e+00 : f32
    %343 = vector.broadcast %cst_121 : f32 to vector<2x384xf32>
    %344 = arith.addf %343, %342 : vector<2x384xf32>
    %345 = arith.divf %343, %344 : vector<2x384xf32>
    %346 = vector.extract_strided_slice %333 {offsets = [0, 192], sizes = [2, 64], strides = [1, 1]} : vector<2x256xf32> to vector<2x64xf32>
    %347 = vector.extract_strided_slice %337 {offsets = [0, 192], sizes = [2, 64], strides = [1, 1]} : vector<2x256xf32> to vector<2x64xf32>
    %348 = tpu.concatenate %346, %347 in 1 : vector<2x64xf32>, vector<2x64xf32> -> vector<2x128xf32>
    %349 = math.tanh %348 : vector<2x128xf32>
    %350 = vector.extract_strided_slice %345 {offsets = [0, 0], sizes = [2, 64], strides = [1, 1]} : vector<2x384xf32> to vector<2x64xf32>
    %351 = vector.extract_strided_slice %345 {offsets = [0, 192], sizes = [2, 64], strides = [1, 1]} : vector<2x384xf32> to vector<2x64xf32>
    %352 = tpu.concatenate %350, %351 in 1 : vector<2x64xf32>, vector<2x64xf32> -> vector<2x128xf32>
    %353 = vector.extract_strided_slice %345 {offsets = [0, 64], sizes = [2, 64], strides = [1, 1]} : vector<2x384xf32> to vector<2x64xf32>
    %354 = vector.extract_strided_slice %345 {offsets = [0, 256], sizes = [2, 64], strides = [1, 1]} : vector<2x384xf32> to vector<2x64xf32>
    %355 = tpu.concatenate %353, %354 in 1 : vector<2x64xf32>, vector<2x64xf32> -> vector<2x128xf32>
    %356 = vector.extract_strided_slice %345 {offsets = [0, 128], sizes = [2, 64], strides = [1, 1]} : vector<2x384xf32> to vector<2x64xf32>
    %357 = vector.extract_strided_slice %345 {offsets = [0, 320], sizes = [2, 64], strides = [1, 1]} : vector<2x384xf32> to vector<2x64xf32>
    %358 = tpu.concatenate %356, %357 in 1 : vector<2x64xf32>, vector<2x64xf32> -> vector<2x128xf32>
    %359 = arith.mulf %355, %318 : vector<2x128xf32>
    %360 = arith.mulf %352, %349 : vector<2x128xf32>
    %361 = arith.addf %359, %360 : vector<2x128xf32>
    %362 = math.tanh %361 : vector<2x128xf32>
    %363 = arith.mulf %358, %362 : vector<2x128xf32>
    %364 = vector.extract_strided_slice %363 {offsets = [0, 0], sizes = [2, 64], strides = [1, 1]} : vector<2x128xf32> to vector<2x64xf32>
    %c0_122 = arith.constant 0 : index
    %c5_123 = arith.constant 5 : index
    %c0_124 = arith.constant 0 : index
    %365 = vector.load %arg18[%c0_122, %c5_123, %c0_124] : memref<2x8x128xf32, #tpu.memory_space<vmem>>, vector<2x1x64xf32>
    %366 = vector.shape_cast %365 : vector<2x1x64xf32> to vector<2x64xf32>
    %367 = vector.shape_cast %364 : vector<2x64xf32> to vector<2x1x64xf32>
    tpu.vector_store %arg18[%c0_122, %c5_123, %c0_124], %367 {strides = array<i32>} : memref<2x8x128xf32, #tpu.memory_space<vmem>>, vector<2x1x64xf32>,
    %368 = vector.extract_strided_slice %363 {offsets = [0, 64], sizes = [2, 64], strides = [1, 1]} : vector<2x128xf32> to vector<2x64xf32>
    %c0_125 = arith.constant 0 : index
    %c2_126 = arith.constant 2 : index
    %c64_127 = arith.constant 64 : index
    %369 = vector.load %arg18[%c0_125, %c2_126, %c64_127] : memref<2x8x128xf32, #tpu.memory_space<vmem>>, vector<2x1x64xf32>
    %370 = vector.shape_cast %369 : vector<2x1x64xf32> to vector<2x64xf32>
    %371 = vector.shape_cast %368 : vector<2x64xf32> to vector<2x1x64xf32>
    tpu.vector_store %arg18[%c0_125, %c2_126, %c64_127], %371 {strides = array<i32>} : memref<2x8x128xf32, #tpu.memory_space<vmem>>, vector<2x1x64xf32>,
    %cst_128 = arith.constant dense<0.000000e+00> : vector<2x512xf32>
    %372 = tpu.matmul %363, %111, %cst_128 {dimension_numbers = #tpu.dot_dimension_numbers<[1], [0], [0], [1], [0, 0, 1, 1], [], []>} : vector<2x128xf32>, vector<128x512xf32>, vector<2x512xf32> -> vector<2x512xf32>
    %c0_129 = arith.constant 0 : index
    %c6_130 = arith.constant 6 : index
    %c0_131 = arith.constant 0 : index
    %373 = vector.load %arg16[%c0_129, %c6_130, %c0_131] : memref<2x8x256xf32, #tpu.memory_space<vmem>>, vector<2x1x256xf32>
    %374 = vector.shape_cast %373 : vector<2x1x256xf32> to vector<2x256xf32>
    %375 = vector.extract_strided_slice %372 {offsets = [0, 0], sizes = [2, 256], strides = [1, 1]} : vector<2x512xf32> to vector<2x256xf32>
    %376 = arith.addf %374, %375 : vector<2x256xf32>
    %c0_132 = arith.constant 0 : index
    %c1_133 = arith.constant 1 : index
    %c0_134 = arith.constant 0 : index
    %377 = vector.load %arg17[%c0_132, %c1_133, %c0_134] : memref<2x8x256xf32, #tpu.memory_space<vmem>>, vector<2x1x256xf32>
    %378 = vector.shape_cast %377 : vector<2x1x256xf32> to vector<2x256xf32>
    %379 = vector.extract_strided_slice %372 {offsets = [0, 256], sizes = [2, 256], strides = [1, 1]} : vector<2x512xf32> to vector<2x256xf32>
    %380 = arith.addf %378, %379 : vector<2x256xf32>
    %381 = vector.extract_strided_slice %376 {offsets = [0, 0], sizes = [2, 192], strides = [1, 1]} : vector<2x256xf32> to vector<2x192xf32>
    %382 = vector.extract_strided_slice %380 {offsets = [0, 0], sizes = [2, 192], strides = [1, 1]} : vector<2x256xf32> to vector<2x192xf32>
    %383 = tpu.concatenate %381, %382 in 1 : vector<2x192xf32>, vector<2x192xf32> -> vector<2x384xf32>
    %384 = arith.negf %383 : vector<2x384xf32>
    %385 = math.exp %384 : vector<2x384xf32>
    %cst_135 = arith.constant 1.000000e+00 : f32
    %386 = vector.broadcast %cst_135 : f32 to vector<2x384xf32>
    %387 = arith.addf %386, %385 : vector<2x384xf32>
    %388 = arith.divf %386, %387 : vector<2x384xf32>
    %389 = vector.extract_strided_slice %376 {offsets = [0, 192], sizes = [2, 64], strides = [1, 1]} : vector<2x256xf32> to vector<2x64xf32>
    %390 = vector.extract_strided_slice %380 {offsets = [0, 192], sizes = [2, 64], strides = [1, 1]} : vector<2x256xf32> to vector<2x64xf32>
    %391 = tpu.concatenate %389, %390 in 1 : vector<2x64xf32>, vector<2x64xf32> -> vector<2x128xf32>
    %392 = math.tanh %391 : vector<2x128xf32>
    %393 = vector.extract_strided_slice %388 {offsets = [0, 0], sizes = [2, 64], strides = [1, 1]} : vector<2x384xf32> to vector<2x64xf32>
    %394 = vector.extract_strided_slice %388 {offsets = [0, 192], sizes = [2, 64], strides = [1, 1]} : vector<2x384xf32> to vector<2x64xf32>
    %395 = tpu.concatenate %393, %394 in 1 : vector<2x64xf32>, vector<2x64xf32> -> vector<2x128xf32>
    %396 = vector.extract_strided_slice %388 {offsets = [0, 64], sizes = [2, 64], strides = [1, 1]} : vector<2x384xf32> to vector<2x64xf32>
    %397 = vector.extract_strided_slice %388 {offsets = [0, 256], sizes = [2, 64], strides = [1, 1]} : vector<2x384xf32> to vector<2x64xf32>
    %398 = tpu.concatenate %396, %397 in 1 : vector<2x64xf32>, vector<2x64xf32> -> vector<2x128xf32>
    %399 = vector.extract_strided_slice %388 {offsets = [0, 128], sizes = [2, 64], strides = [1, 1]} : vector<2x384xf32> to vector<2x64xf32>
    %400 = vector.extract_strided_slice %388 {offsets = [0, 320], sizes = [2, 64], strides = [1, 1]} : vector<2x384xf32> to vector<2x64xf32>
    %401 = tpu.concatenate %399, %400 in 1 : vector<2x64xf32>, vector<2x64xf32> -> vector<2x128xf32>
    %402 = arith.mulf %398, %361 : vector<2x128xf32>
    %403 = arith.mulf %395, %392 : vector<2x128xf32>
    %404 = arith.addf %402, %403 : vector<2x128xf32>
    %405 = math.tanh %404 : vector<2x128xf32>
    %406 = arith.mulf %401, %405 : vector<2x128xf32>
    %407 = vector.extract_strided_slice %406 {offsets = [0, 0], sizes = [2, 64], strides = [1, 1]} : vector<2x128xf32> to vector<2x64xf32>
    %c0_136 = arith.constant 0 : index
    %c6_137 = arith.constant 6 : index
    %c0_138 = arith.constant 0 : index
    %408 = vector.load %arg18[%c0_136, %c6_137, %c0_138] : memref<2x8x128xf32, #tpu.memory_space<vmem>>, vector<2x1x64xf32>
    %409 = vector.shape_cast %408 : vector<2x1x64xf32> to vector<2x64xf32>
    %410 = vector.shape_cast %407 : vector<2x64xf32> to vector<2x1x64xf32>
    tpu.vector_store %arg18[%c0_136, %c6_137, %c0_138], %410 {strides = array<i32>} : memref<2x8x128xf32, #tpu.memory_space<vmem>>, vector<2x1x64xf32>,
    %411 = vector.extract_strided_slice %406 {offsets = [0, 64], sizes = [2, 64], strides = [1, 1]} : vector<2x128xf32> to vector<2x64xf32>
    %c0_139 = arith.constant 0 : index
    %c1_140 = arith.constant 1 : index
    %c64_141 = arith.constant 64 : index
    %412 = vector.load %arg18[%c0_139, %c1_140, %c64_141] : memref<2x8x128xf32, #tpu.memory_space<vmem>>, vector<2x1x64xf32>
    %413 = vector.shape_cast %412 : vector<2x1x64xf32> to vector<2x64xf32>
    %414 = vector.shape_cast %411 : vector<2x64xf32> to vector<2x1x64xf32>
    tpu.vector_store %arg18[%c0_139, %c1_140, %c64_141], %414 {strides = array<i32>} : memref<2x8x128xf32, #tpu.memory_space<vmem>>, vector<2x1x64xf32>,
    %cst_142 = arith.constant dense<0.000000e+00> : vector<2x512xf32>
    %415 = tpu.matmul %406, %111, %cst_142 {dimension_numbers = #tpu.dot_dimension_numbers<[1], [0], [0], [1], [0, 0, 1, 1], [], []>} : vector<2x128xf32>, vector<128x512xf32>, vector<2x512xf32> -> vector<2x512xf32>
    %c0_143 = arith.constant 0 : index
    %c7_144 = arith.constant 7 : index
    %c0_145 = arith.constant 0 : index
    %416 = vector.load %arg16[%c0_143, %c7_144, %c0_145] : memref<2x8x256xf32, #tpu.memory_space<vmem>>, vector<2x1x256xf32>
    %417 = vector.shape_cast %416 : vector<2x1x256xf32> to vector<2x256xf32>
    %418 = vector.extract_strided_slice %415 {offsets = [0, 0], sizes = [2, 256], strides = [1, 1]} : vector<2x512xf32> to vector<2x256xf32>
    %419 = arith.addf %417, %418 : vector<2x256xf32>
    %c0_146 = arith.constant 0 : index
    %c0_147 = arith.constant 0 : index
    %c0_148 = arith.constant 0 : index
    %420 = vector.load %arg17[%c0_146, %c0_147, %c0_148] : memref<2x8x256xf32, #tpu.memory_space<vmem>>, vector<2x1x256xf32>
    %421 = vector.shape_cast %420 : vector<2x1x256xf32> to vector<2x256xf32>
    %422 = vector.extract_strided_slice %415 {offsets = [0, 256], sizes = [2, 256], strides = [1, 1]} : vector<2x512xf32> to vector<2x256xf32>
    %423 = arith.addf %421, %422 : vector<2x256xf32>
    %424 = vector.extract_strided_slice %419 {offsets = [0, 0], sizes = [2, 192], strides = [1, 1]} : vector<2x256xf32> to vector<2x192xf32>
    %425 = vector.extract_strided_slice %423 {offsets = [0, 0], sizes = [2, 192], strides = [1, 1]} : vector<2x256xf32> to vector<2x192xf32>
    %426 = tpu.concatenate %424, %425 in 1 : vector<2x192xf32>, vector<2x192xf32> -> vector<2x384xf32>
    %427 = arith.negf %426 : vector<2x384xf32>
    %428 = math.exp %427 : vector<2x384xf32>
    %cst_149 = arith.constant 1.000000e+00 : f32
    %429 = vector.broadcast %cst_149 : f32 to vector<2x384xf32>
    %430 = arith.addf %429, %428 : vector<2x384xf32>
    %431 = arith.divf %429, %430 : vector<2x384xf32>
    %432 = vector.extract_strided_slice %419 {offsets = [0, 192], sizes = [2, 64], strides = [1, 1]} : vector<2x256xf32> to vector<2x64xf32>
    %433 = vector.extract_strided_slice %423 {offsets = [0, 192], sizes = [2, 64], strides = [1, 1]} : vector<2x256xf32> to vector<2x64xf32>
    %434 = tpu.concatenate %432, %433 in 1 : vector<2x64xf32>, vector<2x64xf32> -> vector<2x128xf32>
    %435 = math.tanh %434 : vector<2x128xf32>
    %436 = vector.extract_strided_slice %431 {offsets = [0, 0], sizes = [2, 64], strides = [1, 1]} : vector<2x384xf32> to vector<2x64xf32>
    %437 = vector.extract_strided_slice %431 {offsets = [0, 192], sizes = [2, 64], strides = [1, 1]} : vector<2x384xf32> to vector<2x64xf32>
    %438 = tpu.concatenate %436, %437 in 1 : vector<2x64xf32>, vector<2x64xf32> -> vector<2x128xf32>
    %439 = vector.extract_strided_slice %431 {offsets = [0, 64], sizes = [2, 64], strides = [1, 1]} : vector<2x384xf32> to vector<2x64xf32>
    %440 = vector.extract_strided_slice %431 {offsets = [0, 256], sizes = [2, 64], strides = [1, 1]} : vector<2x384xf32> to vector<2x64xf32>
    %441 = tpu.concatenate %439, %440 in 1 : vector<2x64xf32>, vector<2x64xf32> -> vector<2x128xf32>
    %442 = vector.extract_strided_slice %431 {offsets = [0, 128], sizes = [2, 64], strides = [1, 1]} : vector<2x384xf32> to vector<2x64xf32>
    %443 = vector.extract_strided_slice %431 {offsets = [0, 320], sizes = [2, 64], strides = [1, 1]} : vector<2x384xf32> to vector<2x64xf32>
    %444 = tpu.concatenate %442, %443 in 1 : vector<2x64xf32>, vector<2x64xf32> -> vector<2x128xf32>
    %445 = arith.mulf %441, %404 : vector<2x128xf32>
    %446 = arith.mulf %438, %435 : vector<2x128xf32>
    %447 = arith.addf %445, %446 : vector<2x128xf32>
    %448 = math.tanh %447 : vector<2x128xf32>
    %449 = arith.mulf %444, %448 : vector<2x128xf32>
    %450 = vector.extract_strided_slice %449 {offsets = [0, 0], sizes = [2, 64], strides = [1, 1]} : vector<2x128xf32> to vector<2x64xf32>
    %c0_150 = arith.constant 0 : index
    %c7_151 = arith.constant 7 : index
    %c0_152 = arith.constant 0 : index
    %451 = vector.load %arg18[%c0_150, %c7_151, %c0_152] : memref<2x8x128xf32, #tpu.memory_space<vmem>>, vector<2x1x64xf32>
    %452 = vector.shape_cast %451 : vector<2x1x64xf32> to vector<2x64xf32>
    %453 = vector.shape_cast %450 : vector<2x64xf32> to vector<2x1x64xf32>
    tpu.vector_store %arg18[%c0_150, %c7_151, %c0_152], %453 {strides = array<i32>} : memref<2x8x128xf32, #tpu.memory_space<vmem>>, vector<2x1x64xf32>,
    %454 = vector.extract_strided_slice %449 {offsets = [0, 64], sizes = [2, 64], strides = [1, 1]} : vector<2x128xf32> to vector<2x64xf32>
    %c0_153 = arith.constant 0 : index
    %c0_154 = arith.constant 0 : index
    %c64_155 = arith.constant 64 : index
    %455 = vector.load %arg18[%c0_153, %c0_154, %c64_155] : memref<2x8x128xf32, #tpu.memory_space<vmem>>, vector<2x1x64xf32>
    %456 = vector.shape_cast %455 : vector<2x1x64xf32> to vector<2x64xf32>
    %457 = vector.shape_cast %454 : vector<2x64xf32> to vector<2x1x64xf32>
    tpu.vector_store %arg18[%c0_153, %c0_154, %c64_155], %457 {strides = array<i32>} : memref<2x8x128xf32, #tpu.memory_space<vmem>>, vector<2x1x64xf32>,
    %c0_156 = arith.constant 0 : index
    %c0_157 = arith.constant 0 : index
    %c0_158 = arith.constant 0 : index
    %458 = vector.load %arg18[%c0_156, %c0_157, %c0_158] : memref<2x8x128xf32, #tpu.memory_space<vmem>>, vector<2x8x128xf32>
    %459 = vector.shape_cast %458 : vector<2x8x128xf32> to vector<16x128xf32>
    %c0_159 = arith.constant 0 : index
    %c0_160 = arith.constant 0 : index
    %460 = vector.load %arg10[%c0_159, %c0_160] : memref<1x1xf32, #tpu.memory_space<vmem>>, vector<1x1xf32>
    %cst_161 = arith.constant 0.000000e+00 : f32
    %461 = vector.broadcast %cst_161 : f32 to vector<16x128xf32>
    %462 = arith.cmpf oge, %459, %461 : vector<16x128xf32>
    %463 = vector.broadcast %460 : vector<1x1xf32> to vector<16x128xf32>
    %464 = arith.mulf %463, %459 : vector<16x128xf32>
    %465 = arith.select %462, %459, %464 : vector<16x128xi1>, vector<16x128xf32>
    %c0_162 = arith.constant 0 : index
    %c0_163 = arith.constant 0 : index
    %466 = vector.load %arg11[%c0_162, %c0_163] : memref<128x32xf32, #tpu.memory_space<vmem>>, vector<128x32xf32>
    %cst_164 = arith.constant dense<0.000000e+00> : vector<16x32xf32>
    %467 = tpu.matmul %465, %466, %cst_164 {dimension_numbers = #tpu.dot_dimension_numbers<[1], [0], [0], [1], [0, 0, 1, 1], [], []>} : vector<16x128xf32>, vector<128x32xf32>, vector<16x32xf32> -> vector<16x32xf32>
    %c0_165 = arith.constant 0 : index
    %c0_166 = arith.constant 0 : index
    %468 = vector.load %arg12[%c0_165, %c0_166] : memref<1x32xf32, #tpu.memory_space<vmem>>, vector<1x32xf32>
    %469 = vector.broadcast %468 : vector<1x32xf32> to vector<16x32xf32>
    %470 = arith.addf %467, %469 : vector<16x32xf32>
    %471 = arith.addf %99, %470 : vector<16x32xf32>
    %c0_167 = arith.constant 0 : index
    %c0_168 = arith.constant 0 : index
    %472 = vector.load %arg13[%c0_167, %c0_168] : memref<1x32xf32, #tpu.memory_space<vmem>>, vector<1x32xf32>
    %c0_169 = arith.constant 0 : index
    %c0_170 = arith.constant 0 : index
    %473 = vector.load %arg14[%c0_169, %c0_170] : memref<1x32xf32, #tpu.memory_space<vmem>>, vector<1x32xf32>
    %cst_171 = arith.constant dense<0.000000e+00> : vector<16xf32>
    %474 = vector.multi_reduction <add>, %471, %cst_171 [1] : vector<16x32xf32> to vector<16xf32>
    %475 = vector.shape_cast %474 : vector<16xf32> to vector<16x1xf32>
    %cst_172 = arith.constant 3.200000e+01 : f32
    %476 = vector.broadcast %cst_172 : f32 to vector<16x1xf32>
    %477 = arith.divf %475, %476 : vector<16x1xf32>
    %478 = vector.broadcast %477 : vector<16x1xf32> to vector<16x32xf32>
    %479 = arith.subf %471, %478 : vector<16x32xf32>
    %480 = arith.mulf %479, %479 : vector<16x32xf32>
    %cst_173 = arith.constant dense<0.000000e+00> : vector<16xf32>
    %481 = vector.multi_reduction <add>, %480, %cst_173 [1] : vector<16x32xf32> to vector<16xf32>
    %482 = vector.shape_cast %481 : vector<16xf32> to vector<16x1xf32>
    %cst_174 = arith.constant 3.200000e+01 : f32
    %483 = vector.broadcast %cst_174 : f32 to vector<16x1xf32>
    %484 = arith.divf %482, %483 : vector<16x1xf32>
    %485 = vector.broadcast %477 : vector<16x1xf32> to vector<16x32xf32>
    %486 = arith.subf %471, %485 : vector<16x32xf32>
    %cst_175 = arith.constant 9.99999974E-6 : f32
    %487 = vector.broadcast %cst_175 : f32 to vector<16x1xf32>
    %488 = arith.addf %484, %487 : vector<16x1xf32>
    %489 = math.rsqrt %488 : vector<16x1xf32>
    %490 = vector.broadcast %489 : vector<16x1xf32> to vector<16x32xf32>
    %491 = arith.mulf %486, %490 : vector<16x32xf32>
    %492 = vector.broadcast %472 : vector<1x32xf32> to vector<16x32xf32>
    %493 = arith.mulf %491, %492 : vector<16x32xf32>
    %494 = vector.broadcast %473 : vector<1x32xf32> to vector<16x32xf32>
    %495 = arith.addf %493, %494 : vector<16x32xf32>
    %c0_176 = arith.constant 0 : index
    %c0_177 = arith.constant 0 : index
    %496 = vector.load %arg15[%c0_176, %c0_177] : memref<16x32xf32, #tpu.memory_space<vmem>>, vector<16x32xf32>
    tpu.vector_store %arg15[%c0_176, %c0_177], %495 {strides = array<i32>} : memref<16x32xf32, #tpu.memory_space<vmem>>, vector<16x32xf32>,
    return
  }
}

</mosaic_0001>

<bundles_post_ra>
// kernel: _lambda_.1
= control target key start
LH: loop header
LB: loop body
LE: loop exit
PB: predicated region body
PF: predicated region fallthrough
CT: control target
= control target key end

     0   :  { %s6935_s0 = inlined_call_operand.vmem [shape: f32[16,32], index: 0, kind: input, shape index: {}]   ;;  %s6936_s1 = inlined_call_operand.hbm [shape: f32[32,96], index: 1, kind: input, shape index: {}]   ;;  %s6937_s2 = inlined_call_operand.hbm [shape: f32[1,96], index: 2, kind: input, shape index: {}]   ;;  %s6938_s3 = inlined_call_operand.vmem [shape: f32[32,32], index: 3, kind: input, shape index: {}]   ;;  %s6939_s4 = inlined_call_operand.hbm [shape: f32[1,32], index: 4, kind: input, shape index: {}]   ;;  %s6940_s5 = inlined_call_operand.vmem [shape: f32[1,32], index: 5, kind: input, shape index: {}]   ;;  %s6941_s6 = inlined_call_operand.vmem [shape: f32[1,32], index: 6, kind: input, shape index: {}]   ;;  %s6942_s7 = inlined_call_operand.hbm [shape: f32[32,512], index: 7, kind: input, shape index: {}]   ;;  %s6943_s8 = inlined_call_operand.vmem [shape: f32[1,512], index: 8, kind: input, shape index: {}]   ;;  %s6944_s9 = inlined_call_operand.hbm [shape: f32[128,512], index: 9, kind: input, shape index: {}]   ;;  %s6945_s10 = inlined_call_operand.<no memory space> [shape: f32[1,1], index: 10, kind: input, shape index: {}]   ;;  %s6946_s11 = inlined_call_operand.hbm [shape: f32[128,32], index: 11, kind: input, shape index: {}]   ;;  %s6947_s12 = inlined_call_operand.vmem [shape: f32[1,32], index: 12, kind: input, shape index: {}]   ;;  %s6948_s13 = inlined_call_operand.vmem [shape: f32[1,32], index: 13, kind: input, shape index: {}]   ;;  %s6949_s14 = inlined_call_operand.vmem [shape: f32[1,32], index: 14, kind: input, shape index: {}]   ;;  %s6950_s15 = inlined_call_operand.vmem [shape: f32[16,32], index: 15, kind: output, shape index: {}]  }
   0x1   :  { %v20_v0 = vstv %s6945_s10 }
   0x2   :  { %21 = vst [vmem:[#allocation5] sm:$0x1] %v20_v0 }
   0x3   :  { %22 = vsyncpa [#allocation7], 0 }
   0x4   :  { %23 = vsyncpa [#allocation9], 0 }
   0x5   :  { %24 = vsyncpa [#allocation12], 0 }
   0x6   :  { %25 = vsyncpa [#allocation15], 0  ;;  %s5536_s20 = smov [#allocation8]   ;;  %s5537_s22 = smov [#allocation11]  }
   0x7   :  { %s46_s21 = sshll.u32 %s5536_s20, 4  ;;  %s71_s23 = sshll.u32 %s5537_s22, 4  ;;  %s47_s21 = int_to_ptr.vmem [resolvable:$true] %s46_s21  ;;  %s72_s23 = int_to_ptr.vmem [resolvable:$true] %s71_s23 }
   0x8   :  { %s5416_s24 = scalar_lea.vmem %s47_s21, 16  ;;  %s5420_s25 = scalar_lea.vmem %s47_s21, 32 }
   0x9   :  { %p5417_p0 = scmp.ne.s32.totalorder %s47_s21, %s5416_s24  ;;  %p5421_p1 = scmp.lt.s32.totalorder %s47_s21, %s47_s21 }
   0xa   :  { %p5422_p2 = scmp.lt.s32.totalorder %s5420_s25, %s5416_s24 }
   0xc   :  { %p5423_p3 = por %p5422_p2, %p5421_p1 }
   0xe   :  { %p5424_p4 = pnand %p5423_p3, %p5417_p0 }
  0x10   :  { %5427 = shalt.err (!%p5424_p4)
}
  0x11   :  { %49 = dma.hbm_to_vmem [thread:$0]  %s6937_s2, 16, %s47_s21, [#allocation9]  }
  0x12   :  { %s5436_s27 = scalar_lea.vmem %s72_s23, 2048  ;;  %p5441_p6 = scmp.lt.s32.totalorder %s72_s23, %s72_s23 }
  0x13   :  { %p5437_p5 = scmp.ne.s32.totalorder %s72_s23, %s5436_s27  ;;  %p5442_p7 = scmp.lt.s32.totalorder %s5436_s27, %s5436_s27 }
  0x15   :  { %p5443_p8 = por %p5442_p7, %p5441_p6 }
  0x17   :  { %p5444_p9 = pnand %p5443_p8, %p5437_p5 }
  0x19   :  { %5447 = shalt.err (!%p5444_p9)
}
  0x1a   :  { %s5538_s28 = smov 512   ;;  %s5539_s29 = smov 32  }
  0x1b   :  { %77 = dma.hbm_to_vmem [thread:$0]  %s6942_s7, 2048, %s72_s23, [#allocation12], %s5538_s28, %s5538_s28, %s5539_s29  }
  0x1c   :  { %s5540_s17 = smov [#allocation6]  }
  0x1d   :  { %s33_s18 = sshll.u32 %s5540_s17, 4  ;;  %s34_s18 = int_to_ptr.vmem [resolvable:$true] %s33_s18 }
  0x1e   :  { %s5456_s2 = scalar_lea.vmem %s34_s18, 512  ;;  %p5461_p11 = scmp.lt.s32.totalorder %s34_s18, %s34_s18 }
  0x1f   :  { %p5457_p10 = scmp.ne.s32.totalorder %s34_s18, %s5456_s2  ;;  %p5462_p12 = scmp.lt.s32.totalorder %s5456_s2, %s5456_s2 }
  0x21   :  { %p5463_p13 = por %p5462_p12, %p5461_p11 }
  0x23   :  { %p5464_p0 = pnand %p5463_p13, %p5457_p10 }
  0x25   :  { %5467 = shalt.err (!%p5464_p0)
}
  0x26   :  { %s5541_s19 = smov 128   ;;  %s5542_s20 = smov 8  }
  0x27   :  { %39 = dma.hbm_to_vmem [thread:$0]  %s6936_s1, 512, %s34_s18, [#allocation7], %s5541_s19, %s5541_s19, %s5542_s20  }
  0x28   :  { %s5543_s7 = smov [#allocation10]   ;;  %s5544_s24 = smov [#allocation13]  }
  0x29   :  { %s58_s23 = sshll.u32 %s5543_s7, 4  ;;  %s85_s25 = sshll.u32 %s5544_s24, 4  ;;  %s59_s23 = int_to_ptr.vmem [resolvable:$true] %s58_s23  ;;  %s86_s25 = int_to_ptr.vmem [resolvable:$true] %s85_s25 }
  0x2a   :  { %s5476_s10 = scalar_lea.vmem %s59_s23, 16  ;;  %s5480_s26 = scalar_lea.vmem %s59_s23, 32 }
  0x2b   :  { %p5477_p1 = scmp.ne.s32.totalorder %s59_s23, %s5476_s10  ;;  %p5481_p2 = scmp.lt.s32.totalorder %s59_s23, %s59_s23 }
  0x2c   :  { %p5482_p3 = scmp.lt.s32.totalorder %s5480_s26, %s5476_s10 }
  0x2e   :  { %p5483_p4 = por %p5482_p3, %p5481_p2 }
  0x30   :  { %p5484_p5 = pnand %p5483_p4, %p5477_p1 }
  0x32   :  { %5487 = shalt.err (!%p5484_p5)
}
  0x33   :  { %61 = dma.hbm_to_vmem [thread:$0]  %s6939_s4, 16, %s59_s23, [#allocation9]  }
  0x34   :  { %s5496_s16 = scalar_lea.vmem %s86_s25, 8192  ;;  %p5501_p7 = scmp.lt.s32.totalorder %s86_s25, %s86_s25 }
  0x35   :  { %p5497_p6 = scmp.ne.s32.totalorder %s86_s25, %s5496_s16  ;;  %p5502_p8 = scmp.lt.s32.totalorder %s5496_s16, %s5496_s16 }
  0x37   :  { %p5503_p9 = por %p5502_p8, %p5501_p7 }
  0x39   :  { %p5504_p10 = pnand %p5503_p9, %p5497_p6 }
  0x3b   :  { %5507 = shalt.err (!%p5504_p10)
}
  0x3c   :  { %91 = dma.hbm_to_vmem [thread:$0]  %s6944_s9, 8192, %s86_s25, [#allocation12], %s5538_s28, %s5538_s28, %s5539_s29  }
  0x3d   :  { %s5545_s18 = smov [#allocation14]  }
  0x3e   :  { %s99_s2 = sshll.u32 %s5545_s18, 4  ;;  %s100_s2 = int_to_ptr.vmem [resolvable:$true] %s99_s2 }
  0x3f   :  { %s5516_s21 = scalar_lea.vmem %s100_s2, 2048  ;;  %p5521_p12 = scmp.lt.s32.totalorder %s100_s2, %s100_s2 }
  0x40   :  { %p5517_p11 = scmp.ne.s32.totalorder %s100_s2, %s5516_s21  ;;  %p5522_p13 = scmp.lt.s32.totalorder %s5516_s21, %s5516_s21 }
  0x42   :  { %p5523_p0 = por %p5522_p13, %p5521_p12 }
  0x44   :  { %p5524_p1 = pnand %p5523_p0, %p5517_p11 }
  0x46   :  { %5527 = shalt.err (!%p5524_p1)
}
  0x47   :  { %105 = dma.hbm_to_vmem [thread:$0]  %s6946_s11, 2048, %s100_s2, [#allocation15], %s5541_s19, %s5541_s19, %s5542_s20  }
  0x48   :  { %5528 = dma.done.wait [#allocation7], 512  }
  0x49   :  { %5529 = vsyncadd [#allocation7], 4294966784 }
  0x4a   :  { %5530 = dma.done.wait [#allocation9], 32  }
  0x4b   :  { %5531 = vsyncadd [#allocation9], 4294967264 }
  0x4c   :  { %5532 = dma.done.wait [#allocation12], 10240  }
  0x4d   :  { %5533 = vsyncadd [#allocation12], 4294957056 }
  0x4e   :  { %5534 = dma.done.wait [#allocation15], 2048  }
  0x4f   :  { %5535 = vsyncadd [#allocation15], 4294965248  ;;  %vm143_vm0 = vcmask 261120   ;;  %v135_v1 = vld [vmem:[#allocation6 + $0x18] sm:$0xff]  ;;  %v134_v2 = vld [vmem:[#allocation6 + $0x10] sm:$0xff]  ;;  %v6951_v7 = vmov 0.0  }
  0x50   :  { %4980 = vmatprep.subr.mxu0 %v135_v1  ;;  %v5679_v3 = vld [vmem:[%s6935_s0] sm:$0xff]  ;;  %v132_v5 = vld [vmem:[#allocation6] sm:$0xff]  ;;  %v5686_v6 = vld [vmem:[%s6935_s0 + $0x8] sm:$0xff]  ;;  %4996 = vmatprep.subr.mxu1 %v6951_v7  ;;  %vm5547_vm1 = vmmov 0   ;;  %s5548_s0 = smov 88   ;;  %s5549_s19 = smov 96  }
  0x51   :  { %4981 = vmatpush3.msra.mxu0 %v135_v1  ;;  %v133_v4 = vld [vmem:[#allocation6 + $0x8] sm:$0xff]  ;;  %4988 = vmatprep.mubr.msk.f32.mxu0 %vm143_vm0, %v5679_v3  ;;  %v4854_v8 = vld [vmem:[#allocation8] ss:$0 sm:$0xff]  ;;  %s5550_s7 = smov 120   ;;  %s5551_s23 = smov 80   ;;  %vm228_vm2 = vcmask 64512  }
  0x52   :  { %4982 = vmatprep.subr.mxu0 %v134_v2  ;;  %4998 = vmatprep.mubr.msk.f32.mxu1 %vm5547_vm1, %v6951_v7  ;;  %s5552_s24 = smov 112   ;;  %s5553_s25 = smov 72   ;;  %vm1253_vm3 = vcmask 130048   ;;  %vm1255_vm4 = vcmask 195584   ;;  %vm2248_vm5 = vcmask 523264   ;;  %vm2318_vm6 = vcmask 516096  }
  0x53   :  { %4983 = vmatpush3.msra.mxu0 %v134_v2  ;;  %s5554_s10 = smov 104   ;;  %s5555_s26 = smov 64   ;;  %vm2321_vm7 = vcmask 1040896  }
  0x54   :  { %4984 = vmatprep.subr.mxu0 %v133_v4  ;;  %s5556_s27 = smov 48   ;;  %s5557_s30 = smov 56  }
  0x55   :  { %4985 = vmatpush3.msra.mxu0 %v133_v4  ;;  %s5558_s16 = smov 40   ;;  %s5559_s22 = smov 16  }
  0x56   :  { %4986 = vmatprep.subr.mxu0 %v132_v5  ;;  %s5560_s11 = smov 24  }
  0x57   :  { %4987 = vmatpush3.msra.mxu0 %v132_v5 }
  0x58   :  { %4989 = vmatmul.mubr.msk.f32.vlgmr.msra.gmra.mxu0 %vm143_vm0, %v5686_v6  ;;  %4991 = vmatprep.subr.mxu0 %v6951_v7 }
  0x59   :  { %4993 = vmatprep.mubr.msk.f32.mxu0 %vm5547_vm1, %v6951_v7 }
 0x118   :  { %v4990_v9 = vpop.f32.mrf.mxu0 }
 0x119   :  { %v5696_v10 = vadd.f32 %v4990_v9, %v4854_v8 }
 0x11a   :  { %v216_v11 = vpop.f32.mrf.mxu0 }
 0x11b   :  { %616 = vrot.lane.b32.xlu0 %v5696_v10, %s5548_s0  ;;  %538 = vrot.lane.b32.xlu1 %v5696_v10, %s5549_s19  ;;  %v5700_v12 = vadd.f32 %v4854_v8, %v216_v11 }
 0x11f   :  { %303 = vrot.lane.b32.xlu1 %v5700_v12, %s5550_s7  ;;  %226 = vrot.lane.b32.xlu0 %v5700_v12, %s5549_s19 }
 0x123   :  { %383 = vrot.lane.b32.xlu1 %v5700_v12, %s5551_s23  ;;  %305 = vrot.lane.b32.xlu0 %v5700_v12, %s5548_s0 }
 0x127   :  { %381 = vrot.lane.b32.xlu1 %v5700_v12, %s5552_s24  ;;  %461 = vrot.lane.b32.xlu0 %v5700_v12, %s5553_s25 }
 0x12b   :  { %614 = vrot.lane.b32.xlu1 %v5696_v10, %s5550_s7  ;;  %459 = vrot.lane.b32.xlu0 %v5700_v12, %s5554_s10 }
 0x12f   :  { %772 = vrot.lane.b32.xlu1 %v5696_v10, %s5553_s25  ;;  %694 = vrot.lane.b32.xlu0 %v5696_v10, %s5551_s23 }
 0x133   :  { %770 = vrot.lane.b32.xlu1 %v5696_v10, %s5554_s10  ;;  %692 = vrot.lane.b32.xlu0 %v5696_v10, %s5552_s24 }
 0x18d   :  { %v617_v13 = vpop.permute.xlu0 %616  ;;  %v539_v14 = vpop.permute.xlu1 %538 }
 0x191   :  { %v304_v15 = vpop.permute.xlu1 %303  ;;  %v227_v16 = vpop.permute.xlu0 %226 }
 0x192   :  { %4992 = vmatpush3.xpose.msk.msra.mxu0 %vm228_vm2, %v227_v16 }
 0x193   :  { %5001 = vmatprep.subr.mxu0 %v6951_v7 }
 0x195   :  { %v384_v17 = vpop.permute.xlu1 %383  ;;  %4994 = vmatmul.mubr.msk.f32.vlgmr.msra.gmra.mxu0 %vm228_vm2, %v5700_v12  ;;  %v306_v18 = vpop.permute.xlu0 %305 }
 0x196   :  { %4997 = vmatpush3.xpose.msk.msra.mxu1 %vm228_vm2, %v306_v18  ;;  %5002 = vmatpush3.xpose.msk.msra.mxu0 %vm228_vm2, %v384_v17 }
 0x197   :  { %5003 = vmatprep.mubr.msk.f32.mxu0 %vm5547_vm1, %v6951_v7  ;;  %5006 = vmatprep.subr.mxu1 %v6951_v7 }
 0x198   :  { %5011 = vmatprep.subr.mxu0 %v6951_v7 }
 0x199   :  { %v382_v19 = vpop.permute.xlu1 %381  ;;  %4999 = vmatmul.mubr.msk.f32.vlgmr.msra.gmra.mxu1 %vm228_vm2, %v304_v15  ;;  %v462_v20 = vpop.permute.xlu0 %461 }
 0x19a   :  { %5004 = vmatmul.mubr.msk.f32.vlgmr.msra.gmra.mxu0 %vm228_vm2, %v382_v19  ;;  %5007 = vmatpush3.xpose.msk.msra.mxu1 %vm228_vm2, %v462_v20 }
 0x19b   :  { %5012 = vmatpush3.xpose.msk.msra.mxu0 %vm228_vm2, %v539_v14  ;;  %5008 = vmatprep.mubr.msk.f32.mxu1 %vm5547_vm1, %v6951_v7 }
 0x19c   :  { %5013 = vmatprep.mubr.msk.f32.mxu0 %vm5547_vm1, %v6951_v7  ;;  %5016 = vmatprep.subr.mxu1 %v6951_v7 }
 0x19d   :  { %v615_v21 = vpop.permute.xlu1 %614  ;;  %v460_v22 = vpop.permute.xlu0 %459  ;;  %5021 = vmatprep.subr.mxu0 %v6951_v7 }
 0x19e   :  { %5009 = vmatmul.mubr.msk.f32.vlgmr.msra.gmra.mxu1 %vm228_vm2, %v460_v22  ;;  %5014 = vmatmul.mubr.msk.f32.vlgmr.msra.gmra.mxu0 %vm228_vm2, %v5696_v10 }
 0x19f   :  { %5017 = vmatpush3.xpose.msk.msra.mxu1 %vm228_vm2, %v617_v13  ;;  %5018 = vmatprep.mubr.msk.f32.mxu1 %vm5547_vm1, %v6951_v7 }
 0x1a0   :  { %5026 = vmatprep.subr.mxu1 %v6951_v7  ;;  %5023 = vmatprep.mubr.msk.f32.mxu0 %vm5547_vm1, %v6951_v7 }
 0x1a1   :  { %v773_v23 = vpop.permute.xlu1 %772  ;;  %v695_v24 = vpop.permute.xlu0 %694 }
 0x1a2   :  { %5019 = vmatmul.mubr.msk.f32.vlgmr.msra.gmra.mxu1 %vm228_vm2, %v615_v21  ;;  %5022 = vmatpush3.xpose.msk.msra.mxu0 %vm228_vm2, %v695_v24 }
 0x1a3   :  { %5027 = vmatpush3.xpose.msk.msra.mxu1 %vm228_vm2, %v773_v23  ;;  %5028 = vmatprep.mubr.msk.f32.mxu1 %vm5547_vm1, %v6951_v7 }
 0x1a4   :  { %5031 = vmatprep.subr.mxu0 %v6951_v7  ;;  %5036 = vmatprep.subr.mxu1 %v6951_v7 }
 0x1a5   :  { %v771_v25 = vpop.permute.xlu1 %770  ;;  %v693_v26 = vpop.permute.xlu0 %692 }
 0x1a6   :  { %5024 = vmatmul.mubr.msk.f32.vlgmr.msra.gmra.mxu0 %vm228_vm2, %v693_v26  ;;  %5029 = vmatmul.mubr.msk.f32.vlgmr.msra.gmra.mxu1 %vm228_vm2, %v771_v25 }
 0x1a7   :  { %5033 = vmatprep.mubr.msk.f32.mxu0 %vm5547_vm1, %v6951_v7  ;;  %5038 = vmatprep.mubr.msk.f32.mxu1 %vm5547_vm1, %v6951_v7 }
 0x255   :  { %v299_v27 = vpop.f32.mrf.mxu0 }
 0x256   :  { %v848_v28 = vsel %vm228_vm2, %v299_v27, -inf }
 0x257   :  { %849 = vmax.xlane.f32.xlu0 %v848_v28  ;;  %v4995_v29 = vpop.f32.mrf.mxu0 }
 0x259   :  { %v377_v30 = vpop.f32.mrf.mxu1 }
 0x25a   :  { %v455_v31 = vpop.f32.mrf.mxu0  ;;  %v851_v32 = vsel %vm228_vm2, %v377_v30, -inf }
 0x25b   :  { %852 = vmax.xlane.f32.xlu1 %v851_v32  ;;  %v5000_v33 = vpop.f32.mrf.mxu1  ;;  %v854_v34 = vsel %vm228_vm2, %v455_v31, -inf }
 0x25c   :  { %855 = vmax.xlane.f32.xlu0 %v854_v34  ;;  %v5005_v35 = vpop.f32.mrf.mxu0 }
 0x25e   :  { %v533_v36 = vpop.f32.mrf.mxu1  ;;  %v610_v37 = vpop.f32.mrf.mxu0 }
 0x25f   :  { %v860_v38 = vsel %vm228_vm2, %v610_v37, -inf  ;;  %v857_v39 = vsel %vm228_vm2, %v533_v36, -inf }
 0x260   :  { %v5015_v40 = vpop.f32.mrf.mxu0  ;;  %861 = vmax.xlane.f32.xlu1 %v860_v38  ;;  %858 = vmax.xlane.f32.xlu0 %v857_v39  ;;  %v5010_v41 = vpop.f32.mrf.mxu1 }
 0x262   :  { %v688_v42 = vpop.f32.mrf.mxu1 }
 0x263   :  { %v863_v43 = vsel %vm228_vm2, %v688_v42, -inf }
 0x264   :  { %864 = vmax.xlane.f32.xlu0 %v863_v43  ;;  %v5020_v44 = vpop.f32.mrf.mxu1 }
 0x266   :  { %v766_v45 = vpop.f32.mrf.mxu0  ;;  %v844_v46 = vpop.f32.mrf.mxu1 }
 0x267   :  { %v869_v47 = vsel %vm228_vm2, %v844_v46, -inf  ;;  %v866_v48 = vsel %vm228_vm2, %v766_v45, -inf }
 0x268   :  { %870 = vmax.xlane.f32.xlu0 %v869_v47  ;;  %v5030_v49 = vpop.f32.mrf.mxu1  ;;  %867 = vmax.xlane.f32.xlu1 %v866_v48  ;;  %v5025_v50 = vpop.f32.mrf.mxu0 }
 0x279   :  { %936 = vrot.lane.b32.xlu1 %v5700_v12, %s5555_s26 }
 0x27d   :  { %1088 = vrot.lane.b32.xlu1 %v5700_v12, %s5556_s27 }
 0x27e   :  { %1012 = vrot.lane.b32.xlu0 %v5700_v12, %s5557_s30 }
 0x281   :  { %1164 = vrot.lane.b32.xlu1 %v5700_v12, %s5558_s16 }
 0x282   :  { %1257 = vrot.lane.b32.xlu0 %v5696_v10, %s5555_s26 }
 0x285   :  { %1333 = vrot.lane.b32.xlu1 %v5696_v10, %s5557_s30 }
 0x2e0   :  { %v850_v51 = vpop.xlane.xlu0 %849 }
 0x2e1   :  { %v872_v52 = vsub.f32 %v299_v27, %v850_v51 }
 0x2e3   :  { %v880_v53 = vmul.f32 1.442695, %v872_v52 }
 0x2e4   :  { %v853_v54 = vpop.xlane.xlu1 %852 }
 0x2e5   :  { %5145 = vpow2.f32 %v880_v53  ;;  %v873_v55 = vsub.f32 %v377_v30, %v853_v54  ;;  %v856_v56 = vpop.xlane.xlu0 %855 }
 0x2e6   :  { %v874_v57 = vsub.f32 %v455_v31, %v856_v56 }
 0x2e7   :  { %v882_v58 = vmul.f32 1.442695, %v873_v55 }
 0x2e8   :  { %v884_v59 = vmul.f32 1.442695, %v874_v57 }
 0x2e9   :  { %5147 = vpow2.f32 %v882_v58  ;;  %v862_v60 = vpop.xlane.xlu1 %861  ;;  %v859_v61 = vpop.xlane.xlu0 %858 }
 0x2ea   :  { %5149 = vpow2.f32 %v884_v59  ;;  %v876_v62 = vsub.f32 %v610_v37, %v862_v60  ;;  %v875_v63 = vsub.f32 %v533_v36, %v859_v61 }
 0x2ec   :  { %v888_v0 = vmul.f32 1.442695, %v876_v62  ;;  %v886_v1 = vmul.f32 1.442695, %v875_v63  ;;  %v1579_v62 = vld [vmem:[%s6938_s3 + $0x18] sm:$0xff] }
 0x2ed   :  { %v865_v2 = vpop.xlane.xlu0 %864 }
 0x2ee   :  { %5151 = vpow2.f32 %v888_v0  ;;  %v877_v4 = vsub.f32 %v688_v42, %v865_v2  ;;  %v1577_v2 = vld [vmem:[%s6938_s3 + $0x8] sm:$0xff] }
 0x2ef   :  { %5153 = vpow2.f32 %v886_v1  ;;  %v1578_v1 = vld [vmem:[%s6938_s3 + $0x10] sm:$0xff] }
 0x2f0   :  { %v890_v5 = vmul.f32 1.442695, %v877_v4 }
 0x2f1   :  { %v868_v8 = vpop.xlane.xlu1 %867  ;;  %v871_v9 = vpop.xlane.xlu0 %870 }
 0x2f2   :  { %v5146_v11 = vpop.eup %5145  ;;  %5155 = vpow2.f32 %v890_v5  ;;  %v878_v12 = vsub.f32 %v766_v45, %v868_v8  ;;  %v879_v13 = vsub.f32 %v844_v46, %v871_v9  ;;  %v1576_v9 = vld [vmem:[%s6938_s3] sm:$0xff] }
 0x2f3   :  { %v896_v14 = vsel %vm228_vm2, %v5146_v11, 0.0 }
 0x2f4   :  { %v892_v15 = vmul.f32 1.442695, %v878_v12  ;;  %v894_v16 = vmul.f32 1.442695, %v879_v13  ;;  %897 = vadd.xlane.f32.xlu1 %v896_v14 }
 0x2f5   :  { %v937_v17 = vpop.permute.xlu1 %936  ;;  %v1013_v18 = vpop.permute.xlu0 %1012 }
 0x2f6   :  { %v5148_v19 = vpop.eup %5147  ;;  %5157 = vpow2.f32 %v892_v15  ;;  %5032 = vmatpush3.msra.mxu0 %v937_v17  ;;  %5037 = vmatpush3.msra.mxu1 %v1013_v18 }
 0x2f7   :  { %v5150_v20 = vpop.eup %5149  ;;  %5159 = vpow2.f32 %v894_v16  ;;  %v899_v21 = vsel %vm228_vm2, %v5148_v19, 0.0  ;;  %5041 = vmatprep.subr.mxu0 %v6951_v7  ;;  %5046 = vmatprep.subr.mxu1 %v6951_v7 }
 0x2f8   :  { %900 = vadd.xlane.f32.xlu0 %v899_v21  ;;  %v902_v22 = vsel %vm228_vm2, %v5150_v20, 0.0 }
 0x2f9   :  { %903 = vadd.xlane.f32.xlu1 %v902_v22  ;;  %v1089_v33 = vpop.permute.xlu1 %1088  ;;  %v1258_v36 = vpop.permute.xlu0 %1257 }
 0x2fb   :  { %v5152_v23 = vpop.eup %5151 }
 0x2fc   :  { %v5154_v24 = vpop.eup %5153  ;;  %v908_v25 = vsel %vm228_vm2, %v5152_v23, 0.0 }
 0x2fd   :  { %909 = vadd.xlane.f32.xlu1 %v908_v25  ;;  %v905_v26 = vsel %vm228_vm2, %v5154_v24, 0.0  ;;  %v1165_v34 = vpop.permute.xlu1 %1164 }
 0x2fe   :  { %906 = vadd.xlane.f32.xlu0 %v905_v26 }
 0x2ff   :  { %v5156_v27 = vpop.eup %5155 }
 0x300   :  { %v911_v28 = vsel %vm228_vm2, %v5156_v27, 0.0 }
 0x301   :  { %v1334_v35 = vpop.permute.xlu1 %1333 }
 0x302   :  { %912 = vadd.xlane.f32.xlu0 %v911_v28 }
 0x303   :  { %v5782_v29 = vpop.eup %5157 }
 0x304   :  { %v5784_v30 = vpop.eup %5159  ;;  %v914_v31 = vsel %vm228_vm2, %v5782_v29, 0.0 }
 0x305   :  { %915 = vadd.xlane.f32.xlu1 %v914_v31  ;;  %v917_v32 = vsel %vm228_vm2, %v5784_v30, 0.0 }
 0x306   :  { %918 = vadd.xlane.f32.xlu0 %v917_v32 }
 0x316   :  { %1485 = vrot.lane.b32.xlu1 %v5696_v10, %s5558_s16 }
 0x31c   :  { %1409 = vrot.lane.b32.xlu0 %v5696_v10, %s5556_s27 }
 0x37d   :  { %v898_v37 = vpop.xlane.xlu1 %897 }
 0x37e   :  { %5161 = vrcp.f32 %v898_v37 }
 0x381   :  { %v901_v38 = vpop.xlane.xlu0 %900 }
 0x382   :  { %5163 = vrcp.f32 %v901_v38  ;;  %v904_v39 = vpop.xlane.xlu1 %903 }
 0x383   :  { %5165 = vrcp.f32 %v904_v39 }
 0x386   :  { %v910_v40 = vpop.xlane.xlu1 %909 }
 0x387   :  { %5167 = vrcp.f32 %v910_v40  ;;  %v907_v41 = vpop.xlane.xlu0 %906 }
 0x388   :  { %5169 = vrcp.f32 %v907_v41 }
 0x38b   :  { %v5162_v42 = vpop.eup %5161  ;;  %v913_v43 = vpop.xlane.xlu0 %912 }
 0x38c   :  { %5171 = vrcp.f32 %v913_v43  ;;  %v921_v44 = vmul.f32 %v5162_v42, %v5146_v11  ;;  %v5844_v43 = vld [vmem:[#allocation13 + $0x1e8] sm:$0xff] }
 0x38d   :  { %7040 = vst [vmem:[#allocation20_spill] sm:$0xff] %v5844_v43 }
 0x38e   :  { %5034 = vmatmul.mubr.msk.f32.vlgmr.msra.gmra.mxu0 %vm228_vm2, %v921_v44  ;;  %v916_v10 = vpop.xlane.xlu1 %915  ;;  %v5846_v44 = vld [vmem:[#allocation13 + $0x1e0] sm:$0xff] }
 0x38f   :  { %v5164_v45 = vpop.eup %5163  ;;  %5042 = vmatpush3.msra.mxu0 %v1089_v33  ;;  %5173 = vrcp.f32 %v916_v10  ;;  %v919_v46 = vpop.xlane.xlu0 %918  ;;  %5043 = vmatprep.mubr.msk.f32.mxu0 %vm5547_vm1, %v6951_v7  ;;  %v5848_v10 = vld [vmem:[#allocation13 + $0x1c8] sm:$0xff] }
 0x390   :  { %v5166_v47 = vpop.eup %5165  ;;  %5175 = vrcp.f32 %v919_v46  ;;  %5051 = vmatprep.subr.mxu0 %v6951_v7  ;;  %v923_v48 = vmul.f32 %v5164_v45, %v5148_v19  ;;  %v5851_v45 = vld [vmem:[#allocation13 + $0x1c0] sm:$0xff] }
 0x391   :  { %v925_v49 = vmul.f32 %v5166_v47, %v5150_v20 }
 0x392   :  { %5039 = vmatmul.mubr.msk.f32.vlgmr.msra.gmra.mxu1 %vm228_vm2, %v923_v48  ;;  %v1486_v58 = vpop.permute.xlu1 %1485 }
 0x393   :  { %5047 = vmatpush3.msra.mxu1 %v1165_v34  ;;  %5044 = vmatmul.mubr.msk.f32.vlgmr.msra.gmra.mxu0 %vm228_vm2, %v925_v49  ;;  %v1410_v54 = vpop.permute.xlu0 %1409  ;;  %v4881_v34 = vld [vmem:[#allocation10] ss:$0 sm:$0xff] }
 0x394   :  { %v5168_v50 = vpop.eup %5167  ;;  %5052 = vmatpush3.msra.mxu0 %v1258_v36  ;;  %5048 = vmatprep.mubr.msk.f32.mxu1 %vm5547_vm1, %v6951_v7 }
 0x395   :  { %v5170_v51 = vpop.eup %5169  ;;  %5053 = vmatprep.mubr.msk.f32.mxu0 %vm5547_vm1, %v6951_v7  ;;  %5056 = vmatprep.subr.mxu1 %v6951_v7  ;;  %v929_v52 = vmul.f32 %v5168_v50, %v5152_v23 }
 0x396   :  { %5061 = vmatprep.subr.mxu0 %v6951_v7  ;;  %v927_v53 = vmul.f32 %v5170_v51, %v5154_v24 }
 0x397   :  { %5054 = vmatmul.mubr.msk.f32.vlgmr.msra.gmra.mxu0 %vm228_vm2, %v929_v52 }
 0x398   :  { %5049 = vmatmul.mubr.msk.f32.vlgmr.msra.gmra.mxu1 %vm228_vm2, %v927_v53  ;;  %5062 = vmatpush3.msra.mxu0 %v1410_v54  ;;  %v5866_v54 = vld [vmem:[#allocation13 + $0x1a8] sm:$0xff] }
 0x399   :  { %v5172_v55 = vpop.eup %5171  ;;  %5057 = vmatpush3.msra.mxu1 %v1334_v35  ;;  %5058 = vmatprep.mubr.msk.f32.mxu1 %vm5547_vm1, %v6951_v7 }
 0x39a   :  { %5066 = vmatprep.subr.mxu1 %v6951_v7  ;;  %v931_v56 = vmul.f32 %v5172_v55, %v5156_v27  ;;  %5063 = vmatprep.mubr.msk.f32.mxu0 %vm5547_vm1, %v6951_v7  ;;  %v5869_v55 = vld [vmem:[#allocation13 + $0x1a0] sm:$0xff] }
 0x39b   :  { %5071 = vmatprep.subr.mxu0 %v1579_v62 }
 0x39c   :  { %v5174_v57 = vpop.eup %5173  ;;  %5059 = vmatmul.mubr.msk.f32.vlgmr.msra.gmra.mxu1 %vm228_vm2, %v931_v56  ;;  %v5872_v56 = vld [vmem:[#allocation13 + $0x188] sm:$0xff] }
 0x39d   :  { %v5176_v59 = vpop.eup %5175  ;;  %5067 = vmatpush3.msra.mxu1 %v1486_v58  ;;  %5068 = vmatprep.mubr.msk.f32.mxu1 %vm5547_vm1, %v6951_v7  ;;  %v933_v60 = vmul.f32 %v5174_v57, %v5782_v29  ;;  %v5875_v57 = vld [vmem:[#allocation13 + $0x180] sm:$0xff]  ;;  %v5878_v58 = vld [vmem:[#allocation13 + $0x168] sm:$0xff] }
 0x39e   :  { %v935_v61 = vmul.f32 %v5176_v59, %v5784_v30  ;;  %1985 = vmatprep.subr.mxu1 %v5844_v43  ;;  %v5881_v59 = vld [vmem:[#allocation13 + $0x160] sm:$0xff] }
 0x39f   :  { %5064 = vmatmul.mubr.msk.f32.vlgmr.msra.gmra.mxu0 %vm228_vm2, %v933_v60  ;;  %v5884_v60 = vld [vmem:[#allocation13 + $0x148] sm:$0xff] }
 0x3a0   :  { %5069 = vmatmul.mubr.msk.f32.vlgmr.msra.gmra.mxu1 %vm228_vm2, %v935_v61  ;;  %5072 = vmatpush3.msra.mxu0 %v1579_v62  ;;  %v5887_v61 = vld [vmem:[#allocation13 + $0x140] sm:$0xff]  ;;  %v5890_v62 = vld [vmem:[#allocation13 + $0x128] sm:$0xff] }
 0x3a1   :  { %2049 = vmatprep.mubr.f32.mxu1 %v6951_v7  ;;  %5073 = vmatprep.subr.mxu0 %v1578_v1 }
 0x3a2   :  { %5074 = vmatpush3.msra.mxu0 %v1578_v1  ;;  %1986 = vmatpush1.msra.mxu1 %v5846_v44  ;;  %v5899_v1 = vld [vmem:[#allocation13 + $0x100] sm:$0xff] }
 0x3a3   :  { %5075 = vmatprep.subr.mxu0 %v1577_v2  ;;  %1987 = vmatprep.subr.mxu1 %v5848_v10 }
 0x3a4   :  { %5076 = vmatpush3.msra.mxu0 %v1577_v2  ;;  %1988 = vmatpush1.msra.mxu1 %v5851_v45  ;;  %v5902_v2 = vld [vmem:[#allocation13 + $0xe8] sm:$0xff] }
 0x3a5   :  { %5077 = vmatprep.subr.mxu0 %v1576_v9  ;;  %1989 = vmatprep.subr.mxu1 %v5866_v54 }
 0x3a6   :  { %5078 = vmatpush3.msra.mxu0 %v1576_v9  ;;  %1990 = vmatpush1.msra.mxu1 %v5869_v55  ;;  %v5911_v9 = vld [vmem:[#allocation13 + $0xc0] sm:$0xff] }
 0x3a7   :  { %1991 = vmatprep.subr.mxu1 %v5872_v56 }
 0x3a8   :  { %1992 = vmatpush1.msra.mxu1 %v5875_v57 }
 0x3a9   :  { %1993 = vmatprep.subr.mxu1 %v5878_v58 }
 0x3aa   :  { %1994 = vmatpush1.msra.mxu1 %v5881_v59 }
 0x3ab   :  { %1995 = vmatprep.subr.mxu1 %v5884_v60 }
 0x3ac   :  { %1996 = vmatpush1.msra.mxu1 %v5887_v61 }
 0x3ad   :  { %1997 = vmatprep.subr.mxu1 %v5890_v62 }
 0x44e   :  { %v1008_v63 = vpop.f32.mrf.mxu0 }
 0x450   :  { %v5035_v0 = vpop.f32.mrf.mxu0 }
 0x451   :  { %v5896_v0 = vld [vmem:[#allocation13 + $0x108] sm:$0xff] }
 0x452   :  { %v1084_v4 = vpop.f32.mrf.mxu1 }
 0x453   :  { %v1160_v5 = vpop.f32.mrf.mxu0  ;;  %1241 = vrot.lane.b32.xlu0 %v1084_v4, %s5542_s20  ;;  %v5905_v4 = vld [vmem:[#allocation13 + $0xe0] sm:$0xff] }
 0x454   :  { %1245 = vrot.lane.b32.xlu1 %v1160_v5, %s5559_s22  ;;  %v5040_v8 = vpop.f32.mrf.mxu1  ;;  %v5908_v5 = vld [vmem:[#allocation13 + $0xc8] sm:$0xff] }
 0x455   :  { %v5045_v11 = vpop.f32.mrf.mxu0  ;;  %v1728_v8 = vld [vmem:[#allocation11 + $0x68] sm:$0xff] }
 0x456   :  { %1783 = vmatprep.subr.mxu0 %v1728_v8  ;;  %v1727_v11 = vld [vmem:[#allocation11 + $0x60] sm:$0xff]  ;;  %v1718_v8 = vld [vmem:[#allocation11 + $0x18] sm:$0xff] }
 0x457   :  { %v1329_v12 = vpop.f32.mrf.mxu0 }
 0x458   :  { %v1236_v13 = vpop.f32.mrf.mxu1 }
 0x459   :  { %1249 = vrot.lane.b32.xlu1 %v1236_v13, %s5560_s11  ;;  %v5055_v14 = vpop.f32.mrf.mxu0  ;;  %v1724_v13 = vld [vmem:[#allocation11 + $0x48] sm:$0xff] }
 0x45a   :  { %v5050_v15 = vpop.f32.mrf.mxu1  ;;  %v5917_v14 = vld [vmem:[#allocation13 + $0xa0] sm:$0xff] }
 0x45b   :  { %7041 = vst [vmem:[#allocation21_spill] sm:$0xff] %v5917_v14  ;;  %v1723_v15 = vld [vmem:[#allocation11 + $0x40] sm:$0xff] }
 0x45c   :  { %v1405_v16 = vpop.f32.mrf.mxu1 }
 0x45d   :  { %1562 = vrot.lane.b32.xlu0 %v1405_v16, %s5542_s20  ;;  %v5920_v16 = vld [vmem:[#allocation13 + $0x88] sm:$0xff] }
 0x45e   :  { %v5060_v17 = vpop.f32.mrf.mxu1  ;;  %7042 = vst [vmem:[#allocation22_spill] sm:$0xff] %v5920_v16 }
 0x45f   :  { %v1481_v18 = vpop.f32.mrf.mxu0  ;;  %v1720_v17 = vld [vmem:[#allocation11 + $0x28] sm:$0xff] }
 0x460   :  { %v1557_v19 = vpop.f32.mrf.mxu1 }
 0x461   :  { %1570 = vrot.lane.b32.xlu1 %v1557_v19, %s5560_s11  ;;  %1566 = vrot.lane.b32.xlu0 %v1481_v18, %s5559_s22  ;;  %v5065_v20 = vpop.f32.mrf.mxu0  ;;  %v5923_v18 = vld [vmem:[#allocation13 + $0x80] sm:$0xff] }
 0x462   :  { %v5070_v21 = vpop.f32.mrf.mxu1  ;;  %7043 = vst [vmem:[#allocation23_spill] sm:$0xff] %v5923_v18  ;;  %v1719_v19 = vld [vmem:[#allocation11 + $0x20] sm:$0xff]  ;;  %v5925_v20 = vld [vmem:[#allocation13 + $0x68] sm:$0xff] }
 0x463   :  { %7044 = vst [vmem:[#allocation24_spill] sm:$0xff] %v5925_v20  ;;  %v1716_v21 = vld [vmem:[#allocation11 + $0x8] sm:$0xff] }
 0x4c5   :  { %v1242_v22 = vpop.permute.xlu0 %1241 }
 0x4c6   :  { %v1246_v23 = vpop.permute.xlu1 %1245  ;;  %v1252_v24 = vsel %vm228_vm2, %v1008_v63, %v1242_v22  ;;  %v5893_v63 = vld [vmem:[#allocation13 + $0x120] sm:$0xff] }
 0x4c7   :  { %v1254_v25 = vsel %vm1253_vm3, %v1252_v24, %v1246_v23  ;;  %1998 = vmatpush1.msra.mxu1 %v5893_v63  ;;  %v5928_v22 = vld [vmem:[#allocation13 + $0x60] sm:$0xff]  ;;  %v5931_v24 = vld [vmem:[#allocation13 + $0x48] sm:$0xff] }
 0x4c8   :  { %1999 = vmatprep.subr.mxu1 %v5896_v0  ;;  %7045 = vst [vmem:[#allocation25_spill] sm:$0xff] %v5928_v22  ;;  %v1715_v23 = vld [vmem:[#allocation11] sm:$0xff]  ;;  %7046 = vst [vmem:[#allocation26_spill] sm:$0xff] %v5931_v24 }
 0x4c9   :  { %2000 = vmatpush1.msra.mxu1 %v5899_v1 }
 0x4ca   :  { %2001 = vmatprep.subr.mxu1 %v5902_v2 }
 0x4cb   :  { %v1250_v26 = vpop.permute.xlu1 %1249  ;;  %2002 = vmatpush1.msra.mxu1 %v5905_v4 }
 0x4cc   :  { %v1256_v27 = vsel %vm1255_vm4, %v1254_v25, %v1250_v26  ;;  %2003 = vmatprep.subr.mxu1 %v5908_v5  ;;  %v1730_v25 = vld [vmem:[#allocation11 + $0x78] sm:$0xff]  ;;  %v5933_v26 = vld [vmem:[#allocation13 + $0x40] sm:$0xff] }
 0x4cd   :  { %5079 = vmatprep.mubr.msk.f32.mxu0 %vm143_vm0, %v1256_v27  ;;  %2004 = vmatpush1.msra.mxu1 %v5911_v9  ;;  %7047 = vst [vmem:[#allocation27_spill] sm:$0xff] %v5933_v26  ;;  %v5938_v27 = vld [vmem:[#allocation13 + $0x28] sm:$0xff] }
 0x4ce   :  { %7048 = vst [vmem:[#allocation28_spill] sm:$0xff] %v5938_v27 }
 0x4cf   :  { %v1563_v28 = vpop.permute.xlu0 %1562 }
 0x4d0   :  { %v1573_v29 = vsel %vm228_vm2, %v1329_v12, %v1563_v28  ;;  %v5914_v12 = vld [vmem:[#allocation13 + $0xa8] sm:$0xff]  ;;  %v5941_v28 = vld [vmem:[#allocation13 + $0x20] sm:$0xff] }
 0x4d1   :  { %2005 = vmatprep.subr.mxu1 %v5914_v12  ;;  %7049 = vst [vmem:[#allocation29_spill] sm:$0xff] %v5941_v28 }
 0x4d2   :  { %2006 = vmatpush1.msra.mxu1 %v5917_v14 }
 0x4d3   :  { %v1571_v30 = vpop.permute.xlu1 %1570  ;;  %v1567_v31 = vpop.permute.xlu0 %1566  ;;  %2007 = vmatprep.subr.mxu1 %v5920_v16 }
 0x4d4   :  { %v1574_v32 = vsel %vm1253_vm3, %v1573_v29, %v1567_v31  ;;  %2008 = vmatpush1.msra.mxu1 %v5923_v18  ;;  %v5944_v29 = vld [vmem:[#allocation13 + $0x8] sm:$0xff] }
 0x4d5   :  { %v1575_v33 = vsel %vm1255_vm4, %v1574_v32, %v1571_v30  ;;  %2009 = vmatprep.subr.mxu1 %v5925_v20  ;;  %7050 = vst [vmem:[#allocation30_spill] sm:$0xff] %v5944_v29  ;;  %v5947_v30 = vld [vmem:[#allocation13] sm:$0xff] }
 0x4d6   :  { %5080 = vmatmul.mubr.msk.f32.vlgmr.msra.gmra.mxu0 %vm143_vm0, %v1575_v33  ;;  %2010 = vmatpush1.msra.mxu1 %v5928_v22  ;;  %7051 = vst [vmem:[#allocation31_spill] sm:$0xff] %v5947_v30 }
 0x4d7   :  { %1823 = vmatprep.mubr.f32.mxu0 %v6951_v7  ;;  %1784 = vmatpush1.msra.mxu0 %v1727_v11  ;;  %v6003_v11 = vld [vmem:[#allocation13 + $0x1f8] sm:$0xff] }
 0x4d8   :  { %1785 = vmatprep.subr.mxu0 %v1724_v13  ;;  %2011 = vmatprep.subr.mxu1 %v5931_v24  ;;  %7054 = vst [vmem:[#allocation34_spill] sm:$0xff] %v6003_v11  ;;  %v6005_v13 = vld [vmem:[#allocation13 + $0x1f0] sm:$0xff] }
 0x4d9   :  { %1786 = vmatpush1.msra.mxu0 %v1723_v15  ;;  %2012 = vmatpush1.msra.mxu1 %v5933_v26  ;;  %v6007_v15 = vld [vmem:[#allocation13 + $0x1d8] sm:$0xff] }
 0x4da   :  { %1787 = vmatprep.subr.mxu0 %v1720_v17  ;;  %2013 = vmatprep.subr.mxu1 %v5938_v27  ;;  %v6012_v17 = vld [vmem:[#allocation13 + $0x1d0] sm:$0xff] }
 0x4db   :  { %1788 = vmatpush1.msra.mxu0 %v1719_v19  ;;  %2014 = vmatpush1.msra.mxu1 %v5941_v28  ;;  %v6016_v19 = vld [vmem:[#allocation13 + $0x1b8] sm:$0xff] }
 0x4dc   :  { %1789 = vmatprep.subr.mxu0 %v1716_v21  ;;  %2015 = vmatprep.subr.mxu1 %v5944_v29  ;;  %v6019_v21 = vld [vmem:[#allocation13 + $0x1b0] sm:$0xff] }
 0x4dd   :  { %1790 = vmatpush1.msra.mxu0 %v1715_v23  ;;  %2016 = vmatpush1.msra.mxu1 %v5947_v30  ;;  %v6022_v23 = vld [vmem:[#allocation13 + $0x198] sm:$0xff] }
 0x4de   :  { %1860 = vmatprep.subr.mxu0 %v1730_v25  ;;  %2050 = vmatmul.mubr.f32.vlgmr.msra.gmra.mxu1 %v6951_v7  ;;  %v6027_v25 = vld [vmem:[#allocation13 + $0x190] sm:$0xff] }
 0x4df   :  { %2324 = vmatprep.subr.mxu1 %v5844_v43  ;;  %2388 = vmatprep.mubr.f32.mxu1 %v6951_v7 }
 0x4e0   :  { %2325 = vmatpush1.msra.mxu1 %v5846_v44 }
 0x4e1   :  { %2326 = vmatprep.subr.mxu1 %v5848_v10 }
 0x4e2   :  { %2327 = vmatpush1.msra.mxu1 %v5851_v45 }
 0x4e3   :  { %2328 = vmatprep.subr.mxu1 %v5866_v54 }
 0x4e4   :  { %2329 = vmatpush1.msra.mxu1 %v5869_v55 }
 0x4e5   :  { %2330 = vmatprep.subr.mxu1 %v5872_v56 }
 0x4e6   :  { %2331 = vmatpush1.msra.mxu1 %v5875_v57 }
 0x4e7   :  { %2332 = vmatprep.subr.mxu1 %v5878_v58 }
 0x4e8   :  { %2333 = vmatpush1.msra.mxu1 %v5881_v59 }
 0x4e9   :  { %2334 = vmatprep.subr.mxu1 %v5884_v60 }
 0x4ea   :  { %2335 = vmatpush1.msra.mxu1 %v5887_v61 }
 0x4eb   :  { %2336 = vmatprep.subr.mxu1 %v5890_v62 }
 0x4ec   :  { %2337 = vmatpush1.msra.mxu1 %v5893_v63 }
 0x4ed   :  { %2338 = vmatprep.subr.mxu1 %v5896_v0 }
 0x4ee   :  { %2339 = vmatpush1.msra.mxu1 %v5899_v1 }
 0x4ef   :  { %2340 = vmatprep.subr.mxu1 %v5902_v2 }
 0x4f0   :  { %2341 = vmatpush1.msra.mxu1 %v5905_v4 }
 0x4f1   :  { %2342 = vmatprep.subr.mxu1 %v5908_v5 }
 0x4f2   :  { %2343 = vmatpush1.msra.mxu1 %v5911_v9 }
 0x4f3   :  { %2344 = vmatprep.subr.mxu1 %v5914_v12 }
 0x4f4   :  { %2345 = vmatpush1.msra.mxu1 %v5917_v14 }
 0x4f5   :  { %2346 = vmatprep.subr.mxu1 %v5920_v16 }
 0x4f6   :  { %2347 = vmatpush1.msra.mxu1 %v5923_v18 }
 0x4f7   :  { %2348 = vmatprep.subr.mxu1 %v5925_v20 }
 0x4f8   :  { %2349 = vmatpush1.msra.mxu1 %v5928_v22 }
 0x4f9   :  { %2350 = vmatprep.subr.mxu1 %v5931_v24 }
 0x4fa   :  { %2351 = vmatpush1.msra.mxu1 %v5933_v26 }
 0x4fb   :  { %2352 = vmatprep.subr.mxu1 %v5938_v27  ;;  %v5561_v27 = vmov 1966171168  }
 0x4fc   :  { %2353 = vmatpush1.msra.mxu1 %v5941_v28  ;;  %v1731_v28 = vld [vmem:[%s6943_s8] sm:$0xf]  ;;  %v2134_v26 = vunpack.c.l.s4 %v5561_v27 }
 0x4fd   :  { %2354 = vmatprep.subr.mxu1 %v5944_v29 }
 0x4fe   :  { %2355 = vmatpush1.msra.mxu1 %v5947_v30  ;;  %v2135_v24 = vunpack.c.0.s8 %v2134_v26 }
 0x4ff   :  { %2661 = vmatprep.subr.mxu1 %v5844_v43  ;;  %v7066_v43 = vmov 0.0  }
 0x596   :  { %v5081_v35 = vpop.f32.mrf.mxu0 }
 0x597   :  { %v1665_v36 = vadd.f32 %v5081_v35, %v4881_v34 }
 0x598   :  { %v1659_v37 = vpop.f32.mrf.mxu0 }
 0x599   :  { %v1660_v38 = vadd.f32 %v4881_v34, %v1659_v37  ;;  %v1669_v39 = vadd.f32 %v1665_v36, %v5686_v6 }
 0x59b   :  { %v1675_v40 = vsel %vm143_vm0, %v1669_v39, 0.0  ;;  %v1668_v41 = vadd.f32 %v1660_v38, %v5679_v3  ;;  %v4884_v38 = vld [vmem:[%s6940_s5] ss:$0 sm:$0xff] }
 0x59c   :  { %1676 = vadd.xlane.f32.xlu1 %v1675_v40  ;;  %v4885_v40 = vld [vmem:[%s6941_s6] ss:$0 sm:$0xff] }
 0x59d   :  { %v1672_v42 = vsel %vm143_vm0, %v1668_v41, 0.0 }
 0x59e   :  { %1673 = vadd.xlane.f32.xlu0 %v1672_v42 }
 0x625   :  { %v1677_v3 = vpop.xlane.xlu1 %1676 }
 0x626   :  { %v1680_v6 = vmul.f32 0.03125, %v1677_v3 }
 0x627   :  { %v1674_v46 = vpop.xlane.xlu0 %1673 }
 0x628   :  { %v1679_v47 = vmul.f32 0.03125, %v1674_v46  ;;  %v5856_v48 = vsub.f32 %v1669_v39, %v1680_v6  ;;  %v1729_v6 = vld [vmem:[#allocation11 + $0x70] sm:$0xff] }
 0x62a   :  { %v5858_v49 = vsub.f32 %v1668_v41, %v1679_v47  ;;  %v1684_v52 = vmul.f32 %v5856_v48, %v5856_v48  ;;  %v1726_v47 = vld [vmem:[#allocation11 + $0x58] sm:$0xff] }
 0x62c   :  { %v1683_v50 = vmul.f32 %v5858_v49, %v5858_v49  ;;  %v1688_v53 = vsel %vm143_vm0, %v1684_v52, 0.0 }
 0x62e   :  { %v1685_v51 = vsel %vm143_vm0, %v1683_v50, 0.0  ;;  %v1725_v50 = vld [vmem:[#allocation11 + $0x50] sm:$0xff] }
 0x62f   :  { %1686 = vadd.xlane.f32.xlu0 %v1685_v51 }
 0x633   :  { %1689 = vadd.xlane.f32.xlu0 %v1688_v53  ;;  %v1721_v53 = vld [vmem:[#allocation11 + $0x30] sm:$0xff] }
 0x6b8   :  { %v1687_v31 = vpop.xlane.xlu0 %1686 }
 0x6b9   :  { %v1691_v32 = vmul.f32 0.03125, %v1687_v31  ;;  %v6030_v31 = vld [vmem:[#allocation13 + $0x178] sm:$0xff] }
 0x6bb   :  { %v1693_v33 = vadd.f32 1e-05, %v1691_v32  ;;  %v6034_v32 = vld [vmem:[#allocation13 + $0x170] sm:$0xff] }
 0x6bc   :  { %v1690_v34 = vpop.xlane.xlu0 %1689 }
 0x6bd   :  { %5177 = vrsqrt.f32 %v1693_v33  ;;  %v1692_v35 = vmul.f32 0.03125, %v1690_v34  ;;  %v6037_v33 = vld [vmem:[#allocation13 + $0x158] sm:$0xff]  ;;  %v6040_v34 = vld [vmem:[#allocation13 + $0x150] sm:$0xff] }
 0x6bf   :  { %v1694_v36 = vadd.f32 1e-05, %v1692_v35  ;;  %v6043_v35 = vld [vmem:[#allocation13 + $0x138] sm:$0xff] }
 0x6c1   :  { %5179 = vrsqrt.f32 %v1694_v36  ;;  %v6046_v36 = vld [vmem:[#allocation13 + $0x130] sm:$0xff] }
 0x6ca   :  { %v5178_v37 = vpop.eup %5177 }
 0x6cb   :  { %v1697_v39 = vmul.f32 %v5178_v37, %v5858_v49  ;;  %v1722_v49 = vld [vmem:[#allocation11 + $0x38] sm:$0xff] }
 0x6cc   :  { %v6049_v37 = vld [vmem:[#allocation13 + $0x118] sm:$0xff] }
 0x6cd   :  { %v1705_v41 = vmul.f32 %v4884_v38, %v1697_v39  ;;  %v6055_v39 = vld [vmem:[#allocation13 + $0xf8] sm:$0xff] }
 0x6ce   :  { %v5180_v42 = vpop.eup %5179 }
 0x6cf   :  { %v5992_v3 = vadd.f32 %v4885_v40, %v1705_v41  ;;  %v1698_v46 = vmul.f32 %v5180_v42, %v5856_v48  ;;  %v1717_v48 = vld [vmem:[#allocation11 + $0x10] sm:$0xff]  ;;  %v6061_v41 = vld [vmem:[#allocation13 + $0xd8] sm:$0xff] }
 0x6d0   :  { %v6064_v42 = vld [vmem:[#allocation13 + $0xd0] sm:$0xff] }
 0x6d1   :  { %7052 = vst [vmem:[#allocation32_spill] sm:$0xff] %v5992_v3  ;;  %4886 = vmatmul.mubr.msk.f32.vlgmr.msra.gmra.mxu0 %vm143_vm0, %v5992_v3  ;;  %v1706_v51 = vmul.f32 %v4884_v38, %v1698_v46  ;;  %v6052_v38 = vld [vmem:[#allocation13 + $0x110] sm:$0xff] }
 0x6d2   :  { %1861 = vmatpush1.msra.mxu0 %v1729_v6  ;;  %1829 = vmatprep.mubr.f32.mxu0 %v6951_v7  ;;  %v6067_v6 = vld [vmem:[#allocation13 + $0xb8] sm:$0xff]  ;;  %v6070_v46 = vld [vmem:[#allocation13 + $0xb0] sm:$0xff] }
 0x6d3   :  { %1862 = vmatprep.subr.mxu0 %v1726_v47  ;;  %v5998_v52 = vadd.f32 %v4885_v40, %v1706_v51  ;;  %v6058_v40 = vld [vmem:[#allocation13 + $0xf0] sm:$0xff]  ;;  %7055 = vst [vmem:[#allocation35_spill] sm:$0xff] %v6070_v46  ;;  %v6073_v47 = vld [vmem:[#allocation13 + $0x98] sm:$0xff] }
 0x6d4   :  { %1863 = vmatpush1.msra.mxu0 %v1725_v50  ;;  %7056 = vst [vmem:[#allocation36_spill] sm:$0xff] %v6073_v47  ;;  %v6076_v50 = vld [vmem:[#allocation13 + $0x90] sm:$0xff]  ;;  %v6079_v51 = vld [vmem:[#allocation13 + $0x78] sm:$0xff] }
 0x6d5   :  { %7053 = vst [vmem:[#allocation33_spill] sm:$0xff] %v5998_v52  ;;  %1864 = vmatprep.subr.mxu0 %v1722_v49  ;;  %4887 = vmatmul.mubr.msk.f32.gmra.mxu0 %vm143_vm0, %v5998_v52  ;;  %7057 = vst [vmem:[#allocation37_spill] sm:$0xff] %v6076_v50  ;;  %v6082_v49 = vld [vmem:[#allocation13 + $0x70] sm:$0xff] }
 0x6d6   :  { %1865 = vmatpush1.msra.mxu0 %v1721_v53  ;;  %1900 = vmatprep.mubr.f32.mxu0 %v6951_v7  ;;  %7058 = vst [vmem:[#allocation38_spill] sm:$0xff] %v6079_v51  ;;  %7059 = vst [vmem:[#allocation39_spill] sm:$0xff] %v6082_v49  ;;  %v6085_v53 = vld [vmem:[#allocation13 + $0x58] sm:$0xff] }
 0x6d7   :  { %1866 = vmatprep.subr.mxu0 %v1718_v8  ;;  %7060 = vst [vmem:[#allocation40_spill] sm:$0xff] %v6085_v53  ;;  %v6088_v8 = vld [vmem:[#allocation13 + $0x50] sm:$0xff] }
 0x6d8   :  { %1867 = vmatpush1.msra.mxu0 %v1717_v48  ;;  %7061 = vst [vmem:[#allocation41_spill] sm:$0xff] %v6088_v8  ;;  %v6091_v48 = vld [vmem:[#allocation13 + $0x38] sm:$0xff] }
 0x6d9   :  { %2056 = vmatprep.subr.mxu0 %v6003_v11  ;;  %4888 = vmatmul.mubr.msk.f32.vlgmr.msra.gmra.mxu0 %vm143_vm0, %v5992_v3  ;;  %7062 = vst [vmem:[#allocation42_spill] sm:$0xff] %v6091_v48  ;;  %v6097_v3 = vld [vmem:[#allocation13 + $0x18] sm:$0xff] }
 0x6da   :  { %2057 = vmatpush1.msra.mxu0 %v6005_v13  ;;  %1906 = vmatprep.mubr.f32.mxu0 %v6951_v7  ;;  %7064 = vst [vmem:[#allocation44_spill] sm:$0xff] %v6097_v3 }
 0x6db   :  { %2058 = vmatprep.subr.mxu0 %v6007_v15 }
 0x6dc   :  { %2059 = vmatpush1.msra.mxu0 %v6012_v17 }
 0x6dd   :  { %2060 = vmatprep.subr.mxu0 %v6016_v19  ;;  %4889 = vmatmul.mubr.msk.f32.gmra.mxu0 %vm143_vm0, %v5998_v52  ;;  %v6100_v52 = vld [vmem:[#allocation13 + $0x10] sm:$0xff] }
 0x6de   :  { %2061 = vmatpush1.msra.mxu0 %v6019_v21  ;;  %2120 = vmatprep.mubr.f32.mxu0 %v6951_v7  ;;  %v6094_v7 = vld [vmem:[#allocation13 + $0x30] sm:$0xff]  ;;  %7065 = vst [vmem:[#allocation45_spill] sm:$0xff] %v6100_v52 }
 0x6df   :  { %2062 = vmatprep.subr.mxu0 %v6022_v23  ;;  %7063 = vst [vmem:[#allocation43_spill] sm:$0xff] %v6094_v7 }
 0x6e0   :  { %2063 = vmatpush1.msra.mxu0 %v6027_v25 }
 0x6e1   :  { %2064 = vmatprep.subr.mxu0 %v6030_v31 }
 0x6e2   :  { %2065 = vmatpush1.msra.mxu0 %v6034_v32 }
 0x6e3   :  { %2066 = vmatprep.subr.mxu0 %v6037_v33 }
 0x6e4   :  { %2067 = vmatpush1.msra.mxu0 %v6040_v34 }
 0x6e5   :  { %2068 = vmatprep.subr.mxu0 %v6043_v35 }
 0x6e6   :  { %2069 = vmatpush1.msra.mxu0 %v6046_v36 }
 0x6e7   :  { %2070 = vmatprep.subr.mxu0 %v6049_v37 }
 0x6e8   :  { %2071 = vmatpush1.msra.mxu0 %v6052_v38 }
 0x6e9   :  { %2072 = vmatprep.subr.mxu0 %v6055_v39 }
 0x6ea   :  { %2073 = vmatpush1.msra.mxu0 %v6058_v40 }
 0x6eb   :  { %2074 = vmatprep.subr.mxu0 %v6061_v41 }
 0x6ec   :  { %2075 = vmatpush1.msra.mxu0 %v6064_v42 }
 0x6ed   :  { %2076 = vmatprep.subr.mxu0 %v6067_v6 }
 0x6ee   :  { %2077 = vmatpush1.msra.mxu0 %v6070_v46 }
 0x6ef   :  { %2078 = vmatprep.subr.mxu0 %v6073_v47 }
 0x6f0   :  { %2079 = vmatpush1.msra.mxu0 %v6076_v50 }
 0x6f1   :  { %2080 = vmatprep.subr.mxu0 %v6079_v51 }
 0x6f2   :  { %2081 = vmatpush1.msra.mxu0 %v6082_v49 }
 0x6f3   :  { %2082 = vmatprep.subr.mxu0 %v6085_v53 }
 0x6f4   :  { %2083 = vmatpush1.msra.mxu0 %v6088_v8 }
 0x6f5   :  { %2084 = vmatprep.subr.mxu0 %v6091_v48 }
 0x6f6   :  { %2085 = vmatpush1.msra.mxu0 %v6094_v7 }
 0x6f7   :  { %2086 = vmatprep.subr.mxu0 %v6097_v3 }
 0x6f8   :  { %2087 = vmatpush1.msra.mxu0 %v6100_v52 }
 0x6f9   :  { %2121 = vmatmul.mubr.f32.vlgmr.msra.gmra.mxu0 %v7066_v43  ;;  %2395 = vmatprep.subr.mxu0 %v6003_v11 }
 0x6fa   :  { %2396 = vmatpush1.msra.mxu0 %v6005_v13  ;;  %2459 = vmatprep.mubr.f32.mxu0 %v7066_v43  ;;  %v1733_v43 = vlaneseq }
 0x6fb   :  { %2397 = vmatprep.subr.mxu0 %v6007_v15 }
 0x6fc   :  { %2398 = vmatpush1.msra.mxu0 %v6012_v17  ;;  %v1734_v30 = vshrl.u32 %v1733_v43, 7 }
 0x6fd   :  { %2399 = vmatprep.subr.mxu0 %v6016_v19 }
 0x6fe   :  { %2400 = vmatpush1.msra.mxu0 %v6019_v21  ;;  %v1735_v29 = vsub.s32 0, %v1734_v30 }
 0x6ff   :  { %2401 = vmatprep.subr.mxu0 %v6022_v23 }
 0x700   :  { %2402 = vmatpush1.msra.mxu0 %v6027_v25 }
 0x701   :  { %2403 = vmatprep.subr.mxu0 %v6030_v31 }
 0x702   :  { %2404 = vmatpush1.msra.mxu0 %v6034_v32 }
 0x703   :  { %2405 = vmatprep.subr.mxu0 %v6037_v33 }
 0x704   :  { %2406 = vmatpush1.msra.mxu0 %v6040_v34 }
 0x705   :  { %2407 = vmatprep.subr.mxu0 %v6043_v35 }
 0x706   :  { %2408 = vmatpush1.msra.mxu0 %v6046_v36 }
 0x707   :  { %2409 = vmatprep.subr.mxu0 %v6049_v37 }
 0x708   :  { %2410 = vmatpush1.msra.mxu0 %v6052_v38 }
 0x709   :  { %2411 = vmatprep.subr.mxu0 %v6055_v39 }
 0x70a   :  { %2412 = vmatpush1.msra.mxu0 %v6058_v40 }
 0x70b   :  { %2413 = vmatprep.subr.mxu0 %v6061_v41 }
 0x70c   :  { %2414 = vmatpush1.msra.mxu0 %v6064_v42 }
 0x70d   :  { %2415 = vmatprep.subr.mxu0 %v6067_v6 }
 0x70e   :  { %2416 = vmatpush1.msra.mxu0 %v6070_v46 }
 0x70f   :  { %2417 = vmatprep.subr.mxu0 %v6073_v47 }
 0x710   :  { %2418 = vmatpush1.msra.mxu0 %v6076_v50  ;;  %v1747_v50 = vsub.s32 3, %v1734_v30 }
 0x711   :  { %2419 = vmatprep.subr.mxu0 %v6079_v51 }
 0x712   :  { %2420 = vmatpush1.msra.mxu0 %v6082_v49 }
 0x713   :  { %2421 = vmatprep.subr.mxu0 %v6085_v53  ;;  %v2051_v53 = vpop.f32.mrf.mxu1 }
 0x714   :  { %2422 = vmatpush1.msra.mxu0 %v6088_v8  ;;  %v1739_v8 = vsub.s32 1, %v1734_v30 }
 0x715   :  { %2423 = vmatprep.subr.mxu0 %v6091_v48  ;;  %v1736_v48 = vrot.slane %v1731_v28, %v1735_v29 }
 0x716   :  { %2424 = vmatpush1.msra.mxu0 %v6094_v7  ;;  %v1740_v7 = vrot.slane %v1731_v28, %v1739_v8  ;;  %v1748_v8 = vrot.slane %v1731_v28, %v1747_v50 }
 0x717   :  { %2425 = vmatprep.subr.mxu0 %v6097_v3  ;;  %v2053_v3 = vpop.f32.mrf.mxu1 }
 0x718   :  { %2426 = vmatpush1.msra.mxu0 %v6100_v52  ;;  %v1743_v52 = vsub.s32 2, %v1734_v30  ;;  %v2132_v20 = vcombine.low %v2051_v53, %v2053_v3 }
 0x719   :  { %2732 = vmatprep.subr.mxu0 %v6003_v11  ;;  %v6143_v11 = vsub.s32 %v2135_v24, %v1734_v30 }
 0x71a   :  { %v1744_v27 = vrot.slane %v1731_v28, %v1743_v52 }
 0x71b   :  { %v2139_v26 = vrot.slane %v2132_v20, %v6143_v11 }
 0x71d   :  { %v2147_v30 = vrot.slane %v2139_v26, %v6143_v11 }
 0x791   :  { %v1825_v49 = vpop.f32.mrf.mxu0 }
 0x792   :  { %v1826_v22 = vadd.f32 %v1825_v49, %v1736_v48  ;;  %v2140_v49 = vcombine.high %v2139_v26, %v2139_v26 }
 0x793   :  { %v1827_v51 = vpop.f32.mrf.mxu0 }
 0x794   :  { %1913 = vst [vmem:[#allocation2] sm:$0xff] %v1826_v22  ;;  %v1828_v43 = vadd.f32 %v1827_v51, %v1740_v7  ;;  %v2154_v3 = vrot.slane %v2140_v49, %v6143_v11 }
 0x795   :  { %v1831_v18 = vpop.f32.mrf.mxu0 }
 0x796   :  { %1914 = vst [vmem:[#allocation2 + $0x8] sm:$0xff] %v1828_v43  ;;  %v1832_v47 = vadd.f32 %v1831_v18, %v1736_v48 }
 0x797   :  { %v1833_v16 = vpop.f32.mrf.mxu0 }
 0x798   :  { %1915 = vst [vmem:[#allocation2 + $0x10] sm:$0xff] %v1832_v47  ;;  %v1834_v29 = vadd.f32 %v1833_v16, %v1740_v7 }
 0x799   :  { %v1902_v46 = vpop.f32.mrf.mxu0 }
 0x79a   :  { %1916 = vst [vmem:[#allocation2 + $0x18] sm:$0xff] %v1834_v29  ;;  %v1903_v14 = vadd.f32 %v1902_v46, %v1744_v27 }
 0x79b   :  { %v1904_v22 = vpop.f32.mrf.mxu0 }
 0x79c   :  { %1917 = vst [vmem:[#allocation3] sm:$0xff] %v1903_v14  ;;  %v1905_v24 = vadd.f32 %v1904_v22, %v1748_v8 }
 0x79d   :  { %v1908_v51 = vpop.f32.mrf.mxu0  ;;  %v2127_v52 = vld [vmem:[#allocation2] ss:$8 sm:$0x3] }
 0x79e   :  { %1918 = vst [vmem:[#allocation3 + $0x8] sm:$0xff] %v1905_v24  ;;  %v1909_v18 = vadd.f32 %v1908_v51, %v1744_v27  ;;  %v2157_v20 = vadd.f32 %v2147_v30, %v2127_v52 }
 0x79f   :  { %v1910_v47 = vpop.f32.mrf.mxu0 }
 0x7a0   :  { %1919 = vst [vmem:[#allocation3 + $0x10] sm:$0xff] %v1909_v18  ;;  %v1911_v7 = vadd.f32 %v1910_v47, %v1748_v8 }
 0x7a1   :  { %v2129_v16 = vld [vmem:[#allocation2 + $0x10] ss:$8 sm:$0x3] }
 0x7a2   :  { %v2158_v28 = vadd.f32 %v2154_v3, %v2129_v16  ;;  %1920 = vst [vmem:[#allocation3 + $0x18] sm:$0xff] %v1911_v7 }
 0x7a4   :  { %v2194_v50 = vcombine.low %v2157_v20, %v2158_v28 }
 0x7a5   :  { %v2160_v51 = vld [vmem:[#allocation3 + $0x7] ss:$8 sm:$0x3] }
 0x7a6   :  { %v2201_v46 = vrot.slane %v2194_v50, %v6143_v11 }
 0x7a8   :  { %v2209_v14 = vrot.slane %v2201_v46, %v6143_v11  ;;  %v2202_v20 = vcombine.high %v2201_v46, %v2201_v46 }
 0x7a9   :  { %v2162_v30 = vld [vmem:[#allocation3 + $0x17] ss:$8 sm:$0x3] }
 0x7aa   :  { %v4890_v53 = vmul.f32 -1.442695, %v2209_v14  ;;  %v2216_v50 = vrot.slane %v2202_v20, %v6143_v11 }
 0x7ac   :  { %5181 = vpow2.f32 %v4890_v53 }
 0x7b9   :  { %v2122_v48 = vpop.f32.mrf.mxu0  ;;  %v5182_v26 = vpop.eup %5181 }
 0x7ba   :  { %v2262_v24 = vadd.f32 1.0, %v5182_v26 }
 0x7bb   :  { %v2124_v43 = vpop.f32.mrf.mxu0 }
 0x7bc   :  { %v2165_v29 = vcombine.low %v2122_v48, %v2124_v43  ;;  %5183 = vrcp.f32 %v2262_v24 }
 0x7be   :  { %v2172_v27 = vrot.slane %v2165_v29, %v6143_v11 }
 0x7c0   :  { %v2173_v49 = vcombine.high %v2172_v27, %v2172_v27  ;;  %v2180_v8 = vrot.slane %v2172_v27, %v6143_v11 }
 0x7c2   :  { %v2187_v22 = vrot.slane %v2173_v49, %v6143_v11  ;;  %v2190_v3 = vadd.f32 %v2180_v8, %v2160_v51 }
 0x7c4   :  { %v2191_v18 = vadd.f32 %v2187_v22, %v2162_v30 }
 0x7c6   :  { %v2221_v52 = vcombine.low %v2190_v3, %v2191_v18 }
 0x7c8   :  { %v2228_v47 = vrot.slane %v2221_v52, %v6143_v11 }
 0x7c9   :  { %v5184_v14 = vpop.eup %5183 }
 0x7ca   :  { %v2236_v7 = vrot.slane %v2228_v47, %v6143_v11  ;;  %v2229_v16 = vcombine.high %v2228_v47, %v2228_v47 }
 0x7cc   :  { %2244 = vrot.lane.b32.xlu1 %v2236_v7, %s5555_s26  ;;  %v2243_v28 = vrot.slane %v2229_v16, %v6143_v11 }
 0x7ce   :  { %2246 = vrot.lane.b32.xlu0 %v2243_v28, %s5555_s26 }
 0x7d0   :  { %2271 = vrot.lane.b32.xlu1 %v2216_v50, %s5555_s26 }
 0x7d4   :  { %2279 = vrot.lane.b32.xlu1 %v5184_v14, %s5555_s26 }
 0x83e   :  { %v2245_v53 = vpop.permute.xlu1 %2244 }
 0x83f   :  { %v2252_v48 = vsel %vm2248_vm5, %v2216_v50, %v2245_v53 }
 0x840   :  { %v4891_v43 = vmul.f32 -1.442695, %v2252_v48  ;;  %v2247_v29 = vpop.permute.xlu0 %2246 }
 0x841   :  { %v2249_v46 = vsel %vm2248_vm5, %v2245_v53, %v2247_v29 }
 0x842   :  { %5185 = vpow2.f32 %v4891_v43  ;;  %v4892_v27 = vmul.f32 -1.442695, %v2249_v46  ;;  %v2272_v3 = vpop.permute.xlu1 %2271 }
 0x843   :  { %v2275_v18 = vsel %vm2248_vm5, %v2272_v3, %v2243_v28 }
 0x844   :  { %5187 = vpow2.f32 %v4892_v27 }
 0x846   :  { %v2280_v47 = vpop.permute.xlu1 %2279 }
 0x84f   :  { %v5186_v26 = vpop.eup %5185 }
 0x850   :  { %v2263_v49 = vadd.f32 1.0, %v5186_v26  ;;  %v7087_v26 = vld [vmem:[#allocation31_spill] sm:$0xff] }
 0x851   :  { %v5188_v8 = vpop.eup %5187 }
 0x852   :  { %v2264_v22 = vadd.f32 1.0, %v5188_v8  ;;  %5189 = vrcp.f32 %v2263_v49  ;;  %v7088_v49 = vmov 0.0   ;;  %v7089_v8 = vld [vmem:[#allocation45_spill] sm:$0xff] }
 0x854   :  { %5191 = vrcp.f32 %v2264_v22  ;;  %v7090_v22 = vld [vmem:[#allocation20_spill] sm:$0xff] }
 0x855   :  { %5193 = vtanh.f32 %v2275_v18 }
 0x85f   :  { %v5190_v24 = vpop.eup %5189 }
 0x860   :  { %v2277_v52 = vsel %vm2248_vm5, %v5184_v14, %v5190_v24 }
 0x861   :  { %v5192_v51 = vpop.eup %5191 }
 0x862   :  { %2283 = vrot.lane.b32.xlu0 %v5192_v51, %s5555_s26  ;;  %v2287_v30 = vsel %vm2248_vm5, %v5190_v24, %v5192_v51  ;;  %v5194_v16 = vpop.eup %5193  ;;  %v7091_v24 = vld [vmem:[#allocation34_spill] sm:$0xff] }
 0x863   :  { %v2289_v53 = vmul.f32 %v5194_v16, %v2277_v52 }
 0x8d4   :  { %v2284_v7 = vpop.permute.xlu0 %2283 }
 0x8d5   :  { %v2286_v20 = vsel %vm2248_vm5, %v2280_v47, %v2284_v7 }
 0x8d6   :  { %v2288_v50 = vmul.f32 0.0, %v2286_v20 }
 0x8d8   :  { %v6168_v48 = vadd.f32 %v2289_v53, %v2288_v50 }
 0x8da   :  { %5195 = vtanh.f32 %v6168_v48 }
 0x8e7   :  { %v5196_v43 = vpop.eup %5195 }
 0x8e8   :  { %v2292_v29 = vmul.f32 %v5196_v43, %v2287_v30 }
 0x8ea   :  { %v2300_v46 = vrot.slane %v2292_v29, %v6143_v11  ;;  %2389 = vmatmul.mubr.f32.vlgmr.msra.gmra.mxu1 %v2292_v29  ;;  %2460 = vmatmul.mubr.f32.vlgmr.msra.gmra.mxu0 %v2292_v29  ;;  %v2467_v29 = vld [vmem:[#allocation2 + $0x1] ss:$8 sm:$0x3] }
 0x8eb   :  { %2662 = vmatpush1.msra.mxu1 %v5846_v44  ;;  %2733 = vmatpush1.msra.mxu0 %v6005_v13  ;;  %v7067_v44 = vld [vmem:[#allocation21_spill] sm:$0xff] }
 0x8ec   :  { %v2301_v28 = vcombine.high %v2300_v46, %v2300_v46  ;;  %v2308_v14 = vrot.slane %v2300_v46, %v6143_v11  ;;  %2663 = vmatprep.subr.mxu1 %v5848_v10  ;;  %2734 = vmatprep.subr.mxu0 %v6007_v15  ;;  %v7068_v10 = vld [vmem:[#allocation35_spill] sm:$0xff] }
 0x8ed   :  { %2664 = vmatpush1.msra.mxu1 %v5851_v45  ;;  %2735 = vmatpush1.msra.mxu0 %v6012_v17  ;;  %v7069_v45 = vld [vmem:[#allocation22_spill] sm:$0xff]  ;;  %v2469_v46 = vld [vmem:[#allocation2 + $0x11] ss:$8 sm:$0x3] }
 0x8ee   :  { %v2315_v27 = vrot.slane %v2301_v28, %v6143_v11  ;;  %2319 = vst.msk [vmem:[#allocation4] sm:$0x1] %vm2318_vm6, %v2308_v14  ;;  %2665 = vmatprep.subr.mxu1 %v5866_v54  ;;  %2736 = vmatprep.subr.mxu0 %v6016_v19  ;;  %v7070_v54 = vld [vmem:[#allocation36_spill] sm:$0xff] }
 0x8ef   :  { %2322 = vst.msk [vmem:[#allocation4 + $0x7] sm:$0x1] %vm2321_vm7, %v2308_v14  ;;  %2666 = vmatpush1.msra.mxu1 %v5869_v55  ;;  %2737 = vmatpush1.msra.mxu0 %v6019_v21  ;;  %v7071_v55 = vld [vmem:[#allocation23_spill] sm:$0xff] }
 0x8f0   :  { %2320 = vst.msk [vmem:[#allocation4 + $0x8] sm:$0x1] %vm2318_vm6, %v2315_v27  ;;  %2667 = vmatprep.subr.mxu1 %v5872_v56  ;;  %2738 = vmatprep.subr.mxu0 %v6022_v23  ;;  %v7072_v56 = vld [vmem:[#allocation37_spill] sm:$0xff] }
 0x8f1   :  { %2323 = vst.msk [vmem:[#allocation4 + $0xf] sm:$0x1] %vm2321_vm7, %v2315_v27  ;;  %2668 = vmatpush1.msra.mxu1 %v5875_v57  ;;  %2739 = vmatpush1.msra.mxu0 %v6027_v25  ;;  %v7073_v57 = vld [vmem:[#allocation24_spill] sm:$0xff]  ;;  %v2500_v27 = vld [vmem:[#allocation3 + $0x6] ss:$8 sm:$0x3] }
 0x8f2   :  { %2669 = vmatprep.subr.mxu1 %v5878_v58  ;;  %2740 = vmatprep.subr.mxu0 %v6030_v31  ;;  %v7074_v58 = vld [vmem:[#allocation38_spill] sm:$0xff] }
 0x8f3   :  { %2670 = vmatpush1.msra.mxu1 %v5881_v59  ;;  %2741 = vmatpush1.msra.mxu0 %v6034_v32  ;;  %v7075_v59 = vld [vmem:[#allocation25_spill] sm:$0xff] }
 0x8f4   :  { %2671 = vmatprep.subr.mxu1 %v5884_v60  ;;  %2742 = vmatprep.subr.mxu0 %v6037_v33  ;;  %v7076_v60 = vld [vmem:[#allocation39_spill] sm:$0xff] }
 0x8f5   :  { %2672 = vmatpush1.msra.mxu1 %v5887_v61  ;;  %2743 = vmatpush1.msra.mxu0 %v6040_v34  ;;  %v7077_v61 = vld [vmem:[#allocation26_spill] sm:$0xff] }
 0x8f6   :  { %2673 = vmatprep.subr.mxu1 %v5890_v62  ;;  %2744 = vmatprep.subr.mxu0 %v6043_v35  ;;  %v7078_v62 = vld [vmem:[#allocation40_spill] sm:$0xff] }
 0x8f7   :  { %2674 = vmatpush1.msra.mxu1 %v5893_v63  ;;  %2745 = vmatpush1.msra.mxu0 %v6046_v36  ;;  %v7079_v63 = vld [vmem:[#allocation27_spill] sm:$0xff] }
 0x8f8   :  { %2675 = vmatprep.subr.mxu1 %v5896_v0  ;;  %2746 = vmatprep.subr.mxu0 %v6049_v37  ;;  %v7080_v0 = vld [vmem:[#allocation41_spill] sm:$0xff] }
 0x8f9   :  { %2676 = vmatpush1.msra.mxu1 %v5899_v1  ;;  %2747 = vmatpush1.msra.mxu0 %v6052_v38  ;;  %v7081_v1 = vld [vmem:[#allocation28_spill] sm:$0xff] }
 0x8fa   :  { %2677 = vmatprep.subr.mxu1 %v5902_v2  ;;  %2748 = vmatprep.subr.mxu0 %v6055_v39  ;;  %v7082_v2 = vld [vmem:[#allocation42_spill] sm:$0xff] }
 0x8fb   :  { %2678 = vmatpush1.msra.mxu1 %v5905_v4  ;;  %2749 = vmatpush1.msra.mxu0 %v6058_v40  ;;  %v7083_v4 = vld [vmem:[#allocation29_spill] sm:$0xff] }
 0x8fc   :  { %2679 = vmatprep.subr.mxu1 %v5908_v5  ;;  %2750 = vmatprep.subr.mxu0 %v6061_v41  ;;  %v7084_v5 = vld [vmem:[#allocation43_spill] sm:$0xff] }
 0x8fd   :  { %2680 = vmatpush1.msra.mxu1 %v5911_v9  ;;  %2751 = vmatpush1.msra.mxu0 %v6064_v42  ;;  %v7085_v9 = vld [vmem:[#allocation30_spill] sm:$0xff] }
 0x8fe   :  { %2681 = vmatprep.subr.mxu1 %v5914_v12  ;;  %2752 = vmatprep.subr.mxu0 %v6067_v6  ;;  %v7086_v12 = vld [vmem:[#allocation44_spill] sm:$0xff] }
 0x8ff   :  { %2682 = vmatpush1.msra.mxu1 %v7067_v44  ;;  %2753 = vmatpush1.msra.mxu0 %v7068_v10  ;;  %v2502_v44 = vld [vmem:[#allocation3 + $0x16] ss:$8 sm:$0x3] }
 0x900   :  { %2683 = vmatprep.subr.mxu1 %v7069_v45  ;;  %2754 = vmatprep.subr.mxu0 %v7070_v54 }
 0x901   :  { %2684 = vmatpush1.msra.mxu1 %v7071_v55  ;;  %2755 = vmatpush1.msra.mxu0 %v7072_v56 }
 0x902   :  { %2685 = vmatprep.subr.mxu1 %v7073_v57  ;;  %2756 = vmatprep.subr.mxu0 %v7074_v58 }
 0x903   :  { %2686 = vmatpush1.msra.mxu1 %v7075_v59  ;;  %2757 = vmatpush1.msra.mxu0 %v7076_v60 }
 0x904   :  { %2687 = vmatprep.subr.mxu1 %v7077_v61  ;;  %2758 = vmatprep.subr.mxu0 %v7078_v62 }
 0x905   :  { %2688 = vmatpush1.msra.mxu1 %v7079_v63  ;;  %2759 = vmatpush1.msra.mxu0 %v7080_v0 }
 0x906   :  { %2689 = vmatprep.subr.mxu1 %v7081_v1  ;;  %2760 = vmatprep.subr.mxu0 %v7082_v2 }
 0x907   :  { %2690 = vmatpush1.msra.mxu1 %v7083_v4  ;;  %2761 = vmatpush1.msra.mxu0 %v7084_v5 }
 0x908   :  { %2691 = vmatprep.subr.mxu1 %v7085_v9  ;;  %2762 = vmatprep.subr.mxu0 %v7086_v12 }
 0x909   :  { %2692 = vmatpush1.msra.mxu1 %v7087_v26  ;;  %2725 = vmatprep.mubr.f32.mxu1 %v7088_v49 }
 0x90a   :  { %2763 = vmatpush1.msra.mxu0 %v7089_v8  ;;  %2796 = vmatprep.mubr.f32.mxu0 %v7088_v49 }
 0x90b   :  { %2998 = vmatprep.subr.mxu1 %v7090_v22  ;;  %3069 = vmatprep.subr.mxu0 %v7091_v24 }
 0x9aa   :  { %v2390_v51 = vpop.f32.mrf.mxu1  ;;  %v2461_v30 = vpop.f32.mrf.mxu0 }
 0x9ac   :  { %v2392_v3 = vpop.f32.mrf.mxu1  ;;  %v2463_v18 = vpop.f32.mrf.mxu0 }
 0x9ad   :  { %v2472_v52 = vcombine.low %v2390_v51, %v2392_v3  ;;  %v2505_v47 = vcombine.low %v2461_v30, %v2463_v18 }
 0x9af   :  { %v2479_v7 = vrot.slane %v2472_v52, %v6143_v11  ;;  %v2512_v16 = vrot.slane %v2505_v47, %v6143_v11 }
 0x9b1   :  { %v2480_v20 = vcombine.high %v2479_v7, %v2479_v7  ;;  %v2487_v50 = vrot.slane %v2479_v7, %v6143_v11  ;;  %v2513_v53 = vcombine.high %v2512_v16, %v2512_v16  ;;  %v2520_v43 = vrot.slane %v2512_v16, %v6143_v11 }
 0x9b3   :  { %v2494_v28 = vrot.slane %v2480_v20, %v6143_v11  ;;  %v2527_v14 = vrot.slane %v2513_v53, %v6143_v11  ;;  %v2497_v45 = vadd.f32 %v2487_v50, %v2467_v29  ;;  %v2530_v57 = vadd.f32 %v2520_v43, %v2500_v27 }
 0x9b5   :  { %v2498_v55 = vadd.f32 %v2494_v28, %v2469_v46  ;;  %v2531_v59 = vadd.f32 %v2527_v14, %v2502_v44 }
 0x9b7   :  { %v2534_v61 = vcombine.low %v2497_v45, %v2498_v55  ;;  %v2561_v63 = vcombine.low %v2530_v57, %v2531_v59 }
 0x9b9   :  { %v2568_v1 = vrot.slane %v2561_v63, %v6143_v11  ;;  %v2541_v4 = vrot.slane %v2534_v61, %v6143_v11 }
 0x9bb   :  { %v2576_v9 = vrot.slane %v2568_v1, %v6143_v11  ;;  %v2569_v26 = vcombine.high %v2568_v1, %v2568_v1  ;;  %v2542_v22 = vcombine.high %v2541_v4, %v2541_v4  ;;  %v2549_v51 = vrot.slane %v2541_v4, %v6143_v11 }
 0x9bd   :  { %2584 = vrot.lane.b32.xlu1 %v2576_v9, %s5555_s26  ;;  %v2583_v30 = vrot.slane %v2569_v26, %v6143_v11  ;;  %v4893_v3 = vmul.f32 -1.442695, %v2549_v51  ;;  %v2556_v18 = vrot.slane %v2542_v22, %v6143_v11 }
 0x9bf   :  { %2586 = vrot.lane.b32.xlu0 %v2583_v30, %s5555_s26  ;;  %5197 = vpow2.f32 %v4893_v3 }
 0x9c1   :  { %2610 = vrot.lane.b32.xlu1 %v2556_v18, %s5555_s26 }
 0x9cc   :  { %v5198_v52 = vpop.eup %5197 }
 0x9cd   :  { %v2601_v47 = vadd.f32 1.0, %v5198_v52 }
 0x9cf   :  { %5199 = vrcp.f32 %v2601_v47 }
 0x9dc   :  { %v5200_v7 = vpop.eup %5199 }
 0x9dd   :  { %2618 = vrot.lane.b32.xlu0 %v5200_v7, %s5555_s26 }
 0xa2f   :  { %v2585_v16 = vpop.permute.xlu1 %2584 }
 0xa30   :  { %v2591_v20 = vsel %vm2248_vm5, %v2556_v18, %v2585_v16 }
 0xa31   :  { %v4894_v50 = vmul.f32 -1.442695, %v2591_v20  ;;  %v2587_v53 = vpop.permute.xlu0 %2586 }
 0xa32   :  { %v2588_v43 = vsel %vm2248_vm5, %v2585_v16, %v2587_v53  ;;  %v6281_v16 = vld [vmem:[#allocation13 + $0x1c0] sm:$0xff]  ;;  %v6314_v53 = vld [vmem:[#allocation13 + $0x148] sm:$0xff] }
 0xa33   :  { %5201 = vpow2.f32 %v4894_v50  ;;  %v4895_v29 = vmul.f32 -1.442695, %v2588_v43  ;;  %v2611_v57 = vpop.permute.xlu1 %2610  ;;  %v6292_v50 = vld [vmem:[#allocation13 + $0x1a0] sm:$0xff] }
 0xa34   :  { %v2614_v59 = vsel %vm2248_vm5, %v2611_v57, %v2583_v30  ;;  %v6272_v30 = vld [vmem:[#allocation13 + $0x1e0] sm:$0xff] }
 0xa35   :  { %5203 = vpow2.f32 %v4895_v29  ;;  %v2806_v57 = vld [vmem:[#allocation2 + $0x12] ss:$8 sm:$0x3] }
 0xa40   :  { %v5202_v46 = vpop.eup %5201 }
 0xa41   :  { %v2602_v28 = vadd.f32 1.0, %v5202_v46 }
 0xa42   :  { %v5204_v14 = vpop.eup %5203 }
 0xa43   :  { %v2603_v27 = vadd.f32 1.0, %v5204_v14  ;;  %5205 = vrcp.f32 %v2602_v28 }
 0xa45   :  { %5207 = vrcp.f32 %v2603_v27 }
 0xa46   :  { %5209 = vtanh.f32 %v2614_v59 }
 0xa4f   :  { %v2619_v63 = vpop.permute.xlu0 %2618 }
 0xa50   :  { %v5206_v44 = vpop.eup %5205 }
 0xa51   :  { %v2616_v61 = vsel %vm2248_vm5, %v5200_v7, %v5206_v44  ;;  %v6277_v7 = vld [vmem:[#allocation13 + $0x1c8] sm:$0xff] }
 0xa52   :  { %v5208_v45 = vpop.eup %5207 }
 0xa53   :  { %2622 = vrot.lane.b32.xlu1 %v5208_v45, %s5555_s26  ;;  %v2626_v55 = vsel %vm2248_vm5, %v5206_v44, %v5208_v45  ;;  %v5210_v4 = vpop.eup %5209 }
 0xa54   :  { %v2628_v22 = vmul.f32 %v5210_v4, %v2616_v61  ;;  %v2837_v61 = vld [vmem:[#allocation3 + $0x5] ss:$8 sm:$0x3] }
 0xac5   :  { %v2623_v1 = vpop.permute.xlu1 %2622 }
 0xac6   :  { %v2625_v9 = vsel %vm2248_vm5, %v2619_v63, %v2623_v1  ;;  %v2839_v63 = vld [vmem:[#allocation3 + $0x15] ss:$8 sm:$0x3] }
 0xac7   :  { %v2627_v26 = vmul.f32 %v2625_v9, %v6168_v48 }
 0xac9   :  { %v6268_v51 = vadd.f32 %v2628_v22, %v2627_v26 }
 0xacb   :  { %5211 = vtanh.f32 %v6268_v51 }
 0xad8   :  { %v5212_v3 = vpop.eup %5211 }
 0xad9   :  { %v2631_v18 = vmul.f32 %v5212_v3, %v2626_v55  ;;  %v2804_v55 = vld [vmem:[#allocation2 + $0x2] ss:$8 sm:$0x3] }
 0xadb   :  { %v2639_v52 = vrot.slane %v2631_v18, %v6143_v11  ;;  %2726 = vmatmul.mubr.f32.vlgmr.msra.gmra.mxu1 %v2631_v18  ;;  %2797 = vmatmul.mubr.f32.vlgmr.msra.gmra.mxu0 %v2631_v18 }
 0xadc   :  { %2999 = vmatpush1.msra.mxu1 %v6272_v30  ;;  %3070 = vmatpush1.msra.mxu0 %v6005_v13  ;;  %v6288_v13 = vld [vmem:[#allocation13 + $0x1a8] sm:$0xff] }
 0xadd   :  { %v2640_v47 = vcombine.high %v2639_v52, %v2639_v52  ;;  %v2647_v48 = vrot.slane %v2639_v52, %v6143_v11  ;;  %3000 = vmatprep.subr.mxu1 %v6277_v7  ;;  %3071 = vmatprep.subr.mxu0 %v6007_v15  ;;  %v6298_v15 = vld [vmem:[#allocation13 + $0x188] sm:$0xff] }
 0xade   :  { %3001 = vmatpush1.msra.mxu1 %v6281_v16  ;;  %3072 = vmatpush1.msra.mxu0 %v6012_v17  ;;  %v6302_v17 = vld [vmem:[#allocation13 + $0x180] sm:$0xff] }
 0xadf   :  { %v2654_v20 = vrot.slane %v2640_v47, %v6143_v11  ;;  %2657 = vst.msk [vmem:[#allocation4 + $0x1] sm:$0x1] %vm2318_vm6, %v2647_v48  ;;  %3002 = vmatprep.subr.mxu1 %v6288_v13  ;;  %3073 = vmatprep.subr.mxu0 %v6016_v19  ;;  %v6306_v19 = vld [vmem:[#allocation13 + $0x168] sm:$0xff] }
 0xae0   :  { %2659 = vst.msk [vmem:[#allocation4 + $0x6] sm:$0x1] %vm2321_vm7, %v2647_v48  ;;  %3003 = vmatpush1.msra.mxu1 %v6292_v50  ;;  %3074 = vmatpush1.msra.mxu0 %v6019_v21  ;;  %v6310_v21 = vld [vmem:[#allocation13 + $0x160] sm:$0xff] }
 0xae1   :  { %2658 = vst.msk [vmem:[#allocation4 + $0x9] sm:$0x1] %vm2318_vm6, %v2654_v20  ;;  %3004 = vmatprep.subr.mxu1 %v6298_v15  ;;  %3075 = vmatprep.subr.mxu0 %v6022_v23  ;;  %v6318_v23 = vld [vmem:[#allocation13 + $0x140] sm:$0xff] }
 0xae2   :  { %2660 = vst.msk [vmem:[#allocation4 + $0xe] sm:$0x1] %vm2321_vm7, %v2654_v20  ;;  %3005 = vmatpush1.msra.mxu1 %v6302_v17  ;;  %3076 = vmatpush1.msra.mxu0 %v6027_v25  ;;  %v6322_v25 = vld [vmem:[#allocation13 + $0x128] sm:$0xff] }
 0xae3   :  { %3006 = vmatprep.subr.mxu1 %v6306_v19  ;;  %3077 = vmatprep.subr.mxu0 %v6030_v31  ;;  %v6326_v31 = vld [vmem:[#allocation13 + $0x120] sm:$0xff] }
 0xae4   :  { %3007 = vmatpush1.msra.mxu1 %v6310_v21  ;;  %3078 = vmatpush1.msra.mxu0 %v6034_v32  ;;  %v6330_v32 = vld [vmem:[#allocation13 + $0x108] sm:$0xff] }
 0xae5   :  { %3008 = vmatprep.subr.mxu1 %v6314_v53  ;;  %3079 = vmatprep.subr.mxu0 %v6037_v33  ;;  %v6334_v33 = vld [vmem:[#allocation13 + $0x100] sm:$0xff] }
 0xae6   :  { %3009 = vmatpush1.msra.mxu1 %v6318_v23  ;;  %3080 = vmatpush1.msra.mxu0 %v6040_v34  ;;  %v6338_v34 = vld [vmem:[#allocation13 + $0xe8] sm:$0xff] }
 0xae7   :  { %3010 = vmatprep.subr.mxu1 %v6322_v25  ;;  %3081 = vmatprep.subr.mxu0 %v6043_v35  ;;  %v6342_v35 = vld [vmem:[#allocation13 + $0xe0] sm:$0xff] }
 0xae8   :  { %3011 = vmatpush1.msra.mxu1 %v6326_v31  ;;  %3082 = vmatpush1.msra.mxu0 %v6046_v36  ;;  %v6346_v36 = vld [vmem:[#allocation13 + $0xc8] sm:$0xff] }
 0xae9   :  { %3012 = vmatprep.subr.mxu1 %v6330_v32  ;;  %3083 = vmatprep.subr.mxu0 %v6049_v37  ;;  %v6350_v37 = vld [vmem:[#allocation13 + $0xc0] sm:$0xff] }
 0xaea   :  { %3013 = vmatpush1.msra.mxu1 %v6334_v33  ;;  %3084 = vmatpush1.msra.mxu0 %v6052_v38  ;;  %v6354_v38 = vld [vmem:[#allocation13 + $0xa8] sm:$0xff] }
 0xaeb   :  { %3014 = vmatprep.subr.mxu1 %v6338_v34  ;;  %3085 = vmatprep.subr.mxu0 %v6055_v39  ;;  %v6358_v39 = vld [vmem:[#allocation13 + $0xa0] sm:$0xff] }
 0xaec   :  { %3015 = vmatpush1.msra.mxu1 %v6342_v35  ;;  %3086 = vmatpush1.msra.mxu0 %v6058_v40  ;;  %v6362_v40 = vld [vmem:[#allocation13 + $0x88] sm:$0xff] }
 0xaed   :  { %3016 = vmatprep.subr.mxu1 %v6346_v36  ;;  %3087 = vmatprep.subr.mxu0 %v6061_v41  ;;  %7092 = vst [vmem:[#allocation21_spill] sm:$0xff] %v6362_v40  ;;  %v6366_v41 = vld [vmem:[#allocation13 + $0x80] sm:$0xff] }
 0xaee   :  { %3017 = vmatpush1.msra.mxu1 %v6350_v37  ;;  %3088 = vmatpush1.msra.mxu0 %v6064_v42  ;;  %7093 = vst [vmem:[#allocation35_spill] sm:$0xff] %v6366_v41  ;;  %v6370_v42 = vld [vmem:[#allocation13 + $0x68] sm:$0xff] }
 0xaef   :  { %3018 = vmatprep.subr.mxu1 %v6354_v38  ;;  %3089 = vmatprep.subr.mxu0 %v6067_v6  ;;  %7094 = vst [vmem:[#allocation22_spill] sm:$0xff] %v6370_v42  ;;  %v6374_v6 = vld [vmem:[#allocation13 + $0x60] sm:$0xff] }
 0xaf0   :  { %3019 = vmatpush1.msra.mxu1 %v6358_v39  ;;  %3090 = vmatpush1.msra.mxu0 %v7068_v10  ;;  %7095 = vst [vmem:[#allocation36_spill] sm:$0xff] %v6374_v6  ;;  %v6378_v10 = vld [vmem:[#allocation13 + $0x48] sm:$0xff] }
 0xaf1   :  { %3020 = vmatprep.subr.mxu1 %v6362_v40  ;;  %3091 = vmatprep.subr.mxu0 %v7070_v54  ;;  %7096 = vst [vmem:[#allocation23_spill] sm:$0xff] %v6378_v10  ;;  %v6382_v54 = vld [vmem:[#allocation13 + $0x40] sm:$0xff] }
 0xaf2   :  { %3021 = vmatpush1.msra.mxu1 %v6366_v41  ;;  %3092 = vmatpush1.msra.mxu0 %v7072_v56  ;;  %7097 = vst [vmem:[#allocation37_spill] sm:$0xff] %v6382_v54  ;;  %v6386_v56 = vld [vmem:[#allocation13 + $0x28] sm:$0xff] }
 0xaf3   :  { %3022 = vmatprep.subr.mxu1 %v6370_v42  ;;  %3093 = vmatprep.subr.mxu0 %v7074_v58  ;;  %7098 = vst [vmem:[#allocation24_spill] sm:$0xff] %v6386_v56  ;;  %v6390_v58 = vld [vmem:[#allocation13 + $0x20] sm:$0xff] }
 0xaf4   :  { %3023 = vmatpush1.msra.mxu1 %v6374_v6  ;;  %3094 = vmatpush1.msra.mxu0 %v7076_v60  ;;  %7099 = vst [vmem:[#allocation38_spill] sm:$0xff] %v6390_v58  ;;  %v6394_v60 = vld [vmem:[#allocation13 + $0x8] sm:$0xff] }
 0xaf5   :  { %3024 = vmatprep.subr.mxu1 %v6378_v10  ;;  %3095 = vmatprep.subr.mxu0 %v7078_v62  ;;  %7100 = vst [vmem:[#allocation25_spill] sm:$0xff] %v6394_v60  ;;  %v6398_v62 = vld [vmem:[#allocation13] sm:$0xff] }
 0xaf6   :  { %3025 = vmatpush1.msra.mxu1 %v6382_v54  ;;  %3096 = vmatpush1.msra.mxu0 %v7080_v0  ;;  %7101 = vst [vmem:[#allocation39_spill] sm:$0xff] %v6398_v62  ;;  %v6404_v0 = vld [vmem:[#allocation13 + $0x1e8] sm:$0xff] }
 0xaf7   :  { %3026 = vmatprep.subr.mxu1 %v6386_v56  ;;  %3097 = vmatprep.subr.mxu0 %v7082_v2  ;;  %7102 = vst [vmem:[#allocation26_spill] sm:$0xff] %v6404_v0 }
 0xaf8   :  { %3027 = vmatpush1.msra.mxu1 %v6390_v58  ;;  %3098 = vmatpush1.msra.mxu0 %v7084_v5 }
 0xaf9   :  { %3028 = vmatprep.subr.mxu1 %v6394_v60  ;;  %3099 = vmatprep.subr.mxu0 %v7086_v12 }
 0xafa   :  { %3029 = vmatpush1.msra.mxu1 %v6398_v62  ;;  %3062 = vmatprep.mubr.f32.mxu1 %v7088_v49 }
 0xafb   :  { %3100 = vmatpush1.msra.mxu0 %v7089_v8  ;;  %3133 = vmatprep.mubr.f32.mxu0 %v7088_v49 }
 0xafc   :  { %3335 = vmatprep.subr.mxu1 %v6404_v0  ;;  %3406 = vmatprep.subr.mxu0 %v7091_v24 }
 0xb9b   :  { %v2727_v2 = vpop.f32.mrf.mxu1  ;;  %v2798_v5 = vpop.f32.mrf.mxu0 }
 0xb9d   :  { %v2729_v43 = vpop.f32.mrf.mxu1  ;;  %v2800_v12 = vpop.f32.mrf.mxu0 }
 0xb9e   :  { %v2809_v29 = vcombine.low %v2727_v2, %v2729_v43  ;;  %v2842_v46 = vcombine.low %v2798_v5, %v2800_v12 }
 0xba0   :  { %v2816_v28 = vrot.slane %v2809_v29, %v6143_v11  ;;  %v2849_v14 = vrot.slane %v2842_v46, %v6143_v11 }
 0xba2   :  { %v2817_v27 = vcombine.high %v2816_v28, %v2816_v28  ;;  %v2824_v8 = vrot.slane %v2816_v28, %v6143_v11  ;;  %v2850_v44 = vcombine.high %v2849_v14, %v2849_v14  ;;  %v2857_v45 = vrot.slane %v2849_v14, %v6143_v11 }
 0xba4   :  { %v2831_v24 = vrot.slane %v2817_v27, %v6143_v11  ;;  %v2864_v59 = vrot.slane %v2850_v44, %v6143_v11  ;;  %v2834_v1 = vadd.f32 %v2824_v8, %v2804_v55  ;;  %v2867_v9 = vadd.f32 %v2857_v45, %v2837_v61 }
 0xba6   :  { %v2835_v4 = vadd.f32 %v2831_v24, %v2806_v57  ;;  %v2868_v26 = vadd.f32 %v2864_v59, %v2839_v63 }
 0xba8   :  { %v2871_v22 = vcombine.low %v2834_v1, %v2835_v4  ;;  %v2898_v3 = vcombine.low %v2867_v9, %v2868_v26 }
 0xbaa   :  { %v2905_v18 = vrot.slane %v2898_v3, %v6143_v11  ;;  %v2878_v52 = vrot.slane %v2871_v22, %v6143_v11 }
 0xbac   :  { %v2913_v47 = vrot.slane %v2905_v18, %v6143_v11  ;;  %v2906_v48 = vcombine.high %v2905_v18, %v2905_v18  ;;  %v2879_v20 = vcombine.high %v2878_v52, %v2878_v52  ;;  %v2886_v2 = vrot.slane %v2878_v52, %v6143_v11 }
 0xbae   :  { %2921 = vrot.lane.b32.xlu0 %v2913_v47, %s5555_s26  ;;  %v2920_v5 = vrot.slane %v2906_v48, %v6143_v11  ;;  %v4896_v43 = vmul.f32 -1.442695, %v2886_v2  ;;  %v2893_v12 = vrot.slane %v2879_v20, %v6143_v11 }
 0xbb0   :  { %2923 = vrot.lane.b32.xlu1 %v2920_v5, %s5555_s26  ;;  %5213 = vpow2.f32 %v4896_v43 }
 0xbb2   :  { %2947 = vrot.lane.b32.xlu0 %v2893_v12, %s5555_s26 }
 0xbbd   :  { %v5214_v29 = vpop.eup %5213 }
 0xbbe   :  { %v2938_v46 = vadd.f32 1.0, %v5214_v29 }
 0xbc0   :  { %5215 = vrcp.f32 %v2938_v46 }
 0xbcd   :  { %v5216_v28 = vpop.eup %5215 }
 0xbce   :  { %2955 = vrot.lane.b32.xlu1 %v5216_v28, %s5555_s26 }
 0xc20   :  { %v2922_v14 = vpop.permute.xlu0 %2921 }
 0xc21   :  { %v2928_v27 = vsel %vm2248_vm5, %v2893_v12, %v2922_v14 }
 0xc22   :  { %v4897_v8 = vmul.f32 -1.442695, %v2928_v27  ;;  %v2924_v44 = vpop.permute.xlu1 %2923 }
 0xc23   :  { %v2925_v45 = vsel %vm2248_vm5, %v2922_v14, %v2924_v44  ;;  %v6446_v14 = vld [vmem:[#allocation13 + $0x1d0] sm:$0xff] }
 0xc24   :  { %5217 = vpow2.f32 %v4897_v8  ;;  %v4898_v55 = vmul.f32 -1.442695, %v2925_v45  ;;  %v2948_v9 = vpop.permute.xlu0 %2947  ;;  %v6453_v8 = vld [vmem:[#allocation13 + $0x1b8] sm:$0xff]  ;;  %v6457_v44 = vld [vmem:[#allocation13 + $0x1b0] sm:$0xff] }
 0xc25   :  { %v2951_v26 = vsel %vm2248_vm5, %v2948_v9, %v2920_v5  ;;  %v6437_v5 = vld [vmem:[#allocation13 + $0x1f0] sm:$0xff]  ;;  %v6463_v45 = vld [vmem:[#allocation13 + $0x198] sm:$0xff] }
 0xc26   :  { %5219 = vpow2.f32 %v4898_v55  ;;  %v6467_v55 = vld [vmem:[#allocation13 + $0x190] sm:$0xff] }
 0xc27   :  { %v6499_v9 = vld [vmem:[#allocation13 + $0x110] sm:$0xff] }
 0xc31   :  { %v5218_v57 = vpop.eup %5217 }
 0xc32   :  { %v2939_v24 = vadd.f32 1.0, %v5218_v57  ;;  %v6471_v57 = vld [vmem:[#allocation13 + $0x178] sm:$0xff] }
 0xc33   :  { %v5220_v59 = vpop.eup %5219 }
 0xc34   :  { %v2940_v61 = vadd.f32 1.0, %v5220_v59  ;;  %5221 = vrcp.f32 %v2939_v24  ;;  %v6475_v24 = vld [vmem:[#allocation13 + $0x170] sm:$0xff]  ;;  %v6479_v59 = vld [vmem:[#allocation13 + $0x158] sm:$0xff] }
 0xc36   :  { %5223 = vrcp.f32 %v2940_v61  ;;  %v6483_v61 = vld [vmem:[#allocation13 + $0x150] sm:$0xff] }
 0xc37   :  { %5225 = vtanh.f32 %v2951_v26  ;;  %v6503_v26 = vld [vmem:[#allocation13 + $0xf8] sm:$0xff] }
 0xc40   :  { %v2956_v3 = vpop.permute.xlu1 %2955 }
 0xc41   :  { %v5222_v63 = vpop.eup %5221 }
 0xc42   :  { %v2953_v22 = vsel %vm2248_vm5, %v5216_v28, %v5222_v63  ;;  %v6442_v28 = vld [vmem:[#allocation13 + $0x1d8] sm:$0xff] }
 0xc43   :  { %v5224_v1 = vpop.eup %5223 }
 0xc44   :  { %2959 = vrot.lane.b32.xlu0 %v5224_v1, %s5555_s26  ;;  %v2963_v4 = vsel %vm2248_vm5, %v5222_v63, %v5224_v1  ;;  %v5226_v52 = vpop.eup %5225  ;;  %v6487_v63 = vld [vmem:[#allocation13 + $0x138] sm:$0xff]  ;;  %v6491_v1 = vld [vmem:[#allocation13 + $0x130] sm:$0xff] }
 0xc45   :  { %v2965_v20 = vmul.f32 %v5226_v52, %v2953_v22  ;;  %v6507_v22 = vld [vmem:[#allocation13 + $0xf0] sm:$0xff]  ;;  %v6519_v52 = vld [vmem:[#allocation13 + $0xb8] sm:$0xff] }
 0xcb6   :  { %v2960_v18 = vpop.permute.xlu0 %2959 }
 0xcb7   :  { %v2962_v47 = vsel %vm2248_vm5, %v2956_v3, %v2960_v18  ;;  %v6511_v3 = vld [vmem:[#allocation13 + $0xd8] sm:$0xff]  ;;  %v6515_v18 = vld [vmem:[#allocation13 + $0xd0] sm:$0xff] }
 0xcb8   :  { %v2964_v48 = vmul.f32 %v2962_v47, %v6268_v51  ;;  %v6523_v47 = vld [vmem:[#allocation13 + $0xb0] sm:$0xff] }
 0xcb9   :  { %7103 = vst [vmem:[#allocation40_spill] sm:$0xff] %v6523_v47 }
 0xcba   :  { %v6432_v2 = vadd.f32 %v2965_v20, %v2964_v48  ;;  %v6527_v48 = vld [vmem:[#allocation13 + $0x98] sm:$0xff]  ;;  %v6531_v20 = vld [vmem:[#allocation13 + $0x90] sm:$0xff] }
 0xcbb   :  { %7104 = vst [vmem:[#allocation27_spill] sm:$0xff] %v6527_v48  ;;  %7105 = vst [vmem:[#allocation41_spill] sm:$0xff] %v6531_v20 }
 0xcbc   :  { %5227 = vtanh.f32 %v6432_v2 }
 0xcc9   :  { %v5228_v43 = vpop.eup %5227 }
 0xcca   :  { %v2968_v12 = vmul.f32 %v5228_v43, %v2963_v4  ;;  %v6495_v4 = vld [vmem:[#allocation13 + $0x118] sm:$0xff] }
 0xccb   :  { %v6535_v43 = vld [vmem:[#allocation13 + $0x78] sm:$0xff] }
 0xccc   :  { %v2976_v29 = vrot.slane %v2968_v12, %v6143_v11  ;;  %3063 = vmatmul.mubr.f32.vlgmr.msra.gmra.mxu1 %v2968_v12  ;;  %3134 = vmatmul.mubr.f32.vlgmr.msra.gmra.mxu0 %v2968_v12  ;;  %7106 = vst [vmem:[#allocation28_spill] sm:$0xff] %v6535_v43  ;;  %v6539_v12 = vld [vmem:[#allocation13 + $0x70] sm:$0xff] }
 0xccd   :  { %3336 = vmatpush1.msra.mxu1 %v6272_v30  ;;  %3407 = vmatpush1.msra.mxu0 %v6437_v5  ;;  %7107 = vst [vmem:[#allocation42_spill] sm:$0xff] %v6539_v12 }
 0xcce   :  { %v2977_v46 = vcombine.high %v2976_v29, %v2976_v29  ;;  %v2984_v51 = vrot.slane %v2976_v29, %v6143_v11  ;;  %3337 = vmatprep.subr.mxu1 %v6277_v7  ;;  %3408 = vmatprep.subr.mxu0 %v6442_v28  ;;  %v6543_v29 = vld [vmem:[#allocation13 + $0x58] sm:$0xff] }
 0xccf   :  { %3338 = vmatpush1.msra.mxu1 %v6281_v16  ;;  %3409 = vmatpush1.msra.mxu0 %v6446_v14  ;;  %7108 = vst [vmem:[#allocation29_spill] sm:$0xff] %v6543_v29 }
 0xcd0   :  { %v2991_v27 = vrot.slane %v2977_v46, %v6143_v11  ;;  %2994 = vst.msk [vmem:[#allocation4 + $0x2] sm:$0x1] %vm2318_vm6, %v2984_v51  ;;  %3339 = vmatprep.subr.mxu1 %v6288_v13  ;;  %3410 = vmatprep.subr.mxu0 %v6453_v8  ;;  %v6547_v46 = vld [vmem:[#allocation13 + $0x50] sm:$0xff] }
 0xcd1   :  { %2996 = vst.msk [vmem:[#allocation4 + $0x5] sm:$0x1] %vm2321_vm7, %v2984_v51  ;;  %3340 = vmatpush1.msra.mxu1 %v6292_v50  ;;  %3411 = vmatpush1.msra.mxu0 %v6457_v44  ;;  %7109 = vst [vmem:[#allocation43_spill] sm:$0xff] %v6547_v46  ;;  %v6551_v51 = vld [vmem:[#allocation13 + $0x38] sm:$0xff] }
 0xcd2   :  { %2995 = vst.msk [vmem:[#allocation4 + $0xa] sm:$0x1] %vm2318_vm6, %v2991_v27  ;;  %3341 = vmatprep.subr.mxu1 %v6298_v15  ;;  %3412 = vmatprep.subr.mxu0 %v6463_v45  ;;  %7110 = vst [vmem:[#allocation30_spill] sm:$0xff] %v6551_v51 }
 0xcd3   :  { %2997 = vst.msk [vmem:[#allocation4 + $0xd] sm:$0x1] %vm2321_vm7, %v2991_v27  ;;  %3342 = vmatpush1.msra.mxu1 %v6302_v17  ;;  %3413 = vmatpush1.msra.mxu0 %v6467_v55  ;;  %v6555_v27 = vld [vmem:[#allocation13 + $0x30] sm:$0xff] }
 0xcd4   :  { %3343 = vmatprep.subr.mxu1 %v6306_v19  ;;  %3414 = vmatprep.subr.mxu0 %v6471_v57  ;;  %7111 = vst [vmem:[#allocation44_spill] sm:$0xff] %v6555_v27 }
 0xcd5   :  { %3344 = vmatpush1.msra.mxu1 %v6310_v21  ;;  %3415 = vmatpush1.msra.mxu0 %v6475_v24 }
 0xcd6   :  { %3345 = vmatprep.subr.mxu1 %v6314_v53  ;;  %3416 = vmatprep.subr.mxu0 %v6479_v59 }
 0xcd7   :  { %3346 = vmatpush1.msra.mxu1 %v6318_v23  ;;  %3417 = vmatpush1.msra.mxu0 %v6483_v61 }
 0xcd8   :  { %3347 = vmatprep.subr.mxu1 %v6322_v25  ;;  %3418 = vmatprep.subr.mxu0 %v6487_v63 }
 0xcd9   :  { %3348 = vmatpush1.msra.mxu1 %v6326_v31  ;;  %3419 = vmatpush1.msra.mxu0 %v6491_v1 }
 0xcda   :  { %3349 = vmatprep.subr.mxu1 %v6330_v32  ;;  %3420 = vmatprep.subr.mxu0 %v6495_v4 }
 0xcdb   :  { %3350 = vmatpush1.msra.mxu1 %v6334_v33  ;;  %3421 = vmatpush1.msra.mxu0 %v6499_v9 }
 0xcdc   :  { %3351 = vmatprep.subr.mxu1 %v6338_v34  ;;  %3422 = vmatprep.subr.mxu0 %v6503_v26 }
 0xcdd   :  { %3352 = vmatpush1.msra.mxu1 %v6342_v35  ;;  %3423 = vmatpush1.msra.mxu0 %v6507_v22 }
 0xcde   :  { %3353 = vmatprep.subr.mxu1 %v6346_v36  ;;  %3424 = vmatprep.subr.mxu0 %v6511_v3 }
 0xcdf   :  { %3354 = vmatpush1.msra.mxu1 %v6350_v37  ;;  %3425 = vmatpush1.msra.mxu0 %v6515_v18 }
 0xce0   :  { %3355 = vmatprep.subr.mxu1 %v6354_v38  ;;  %3426 = vmatprep.subr.mxu0 %v6519_v52 }
 0xce1   :  { %3356 = vmatpush1.msra.mxu1 %v6358_v39  ;;  %3427 = vmatpush1.msra.mxu0 %v6523_v47 }
 0xce2   :  { %3357 = vmatprep.subr.mxu1 %v6362_v40  ;;  %3428 = vmatprep.subr.mxu0 %v6527_v48 }
 0xce3   :  { %3358 = vmatpush1.msra.mxu1 %v6366_v41  ;;  %3429 = vmatpush1.msra.mxu0 %v6531_v20  ;;  %v3174_v20 = vld [vmem:[#allocation3 + $0x4] ss:$8 sm:$0x3]  ;;  %v3176_v41 = vld [vmem:[#allocation3 + $0x14] ss:$8 sm:$0x3] }
 0xce4   :  { %3359 = vmatprep.subr.mxu1 %v6370_v42  ;;  %3430 = vmatprep.subr.mxu0 %v6535_v43  ;;  %v3143_v43 = vld [vmem:[#allocation2 + $0x13] ss:$8 sm:$0x3] }
 0xce5   :  { %3360 = vmatpush1.msra.mxu1 %v6374_v6  ;;  %3431 = vmatpush1.msra.mxu0 %v6539_v12  ;;  %v3141_v6 = vld [vmem:[#allocation2 + $0x3] ss:$8 sm:$0x3] }
 0xce6   :  { %3361 = vmatprep.subr.mxu1 %v6378_v10  ;;  %3432 = vmatprep.subr.mxu0 %v6543_v29  ;;  %v6559_v29 = vld [vmem:[#allocation13 + $0x18] sm:$0xff] }
 0xce7   :  { %3362 = vmatpush1.msra.mxu1 %v6382_v54  ;;  %3433 = vmatpush1.msra.mxu0 %v6547_v46  ;;  %7112 = vst [vmem:[#allocation31_spill] sm:$0xff] %v6559_v29 }
 0xce8   :  { %3363 = vmatprep.subr.mxu1 %v6386_v56  ;;  %3434 = vmatprep.subr.mxu0 %v6551_v51  ;;  %v6564_v56 = vld [vmem:[#allocation13 + $0x10] sm:$0xff] }
 0xce9   :  { %3364 = vmatpush1.msra.mxu1 %v6390_v58  ;;  %3435 = vmatpush1.msra.mxu0 %v6555_v27  ;;  %7113 = vst [vmem:[#allocation45_spill] sm:$0xff] %v6564_v56  ;;  %v6569_v58 = vld [vmem:[#allocation13 + $0x1f8] sm:$0xff] }
 0xcea   :  { %3365 = vmatprep.subr.mxu1 %v6394_v60  ;;  %3436 = vmatprep.subr.mxu0 %v6559_v29  ;;  %7114 = vst [vmem:[#allocation20_spill] sm:$0xff] %v6569_v58 }
 0xceb   :  { %3366 = vmatpush1.msra.mxu1 %v6398_v62  ;;  %3399 = vmatprep.mubr.f32.mxu1 %v7088_v49 }
 0xcec   :  { %3437 = vmatpush1.msra.mxu0 %v6564_v56  ;;  %3470 = vmatprep.mubr.f32.mxu0 %v7088_v49 }
 0xced   :  { %3672 = vmatprep.subr.mxu1 %v6404_v0  ;;  %3743 = vmatprep.subr.mxu0 %v6569_v58 }
 0xd8c   :  { %v3064_v60 = vpop.f32.mrf.mxu1  ;;  %v3135_v27 = vpop.f32.mrf.mxu0 }
 0xd8e   :  { %v3066_v51 = vpop.f32.mrf.mxu1  ;;  %v3137_v29 = vpop.f32.mrf.mxu0 }
 0xd8f   :  { %v3146_v46 = vcombine.low %v3064_v60, %v3066_v51  ;;  %v3179_v62 = vcombine.low %v3135_v27, %v3137_v29 }
 0xd91   :  { %v3153_v54 = vrot.slane %v3146_v46, %v6143_v11  ;;  %v3186_v10 = vrot.slane %v3179_v62, %v6143_v11 }
 0xd93   :  { %v3154_v12 = vcombine.high %v3153_v54, %v3153_v54  ;;  %v3161_v56 = vrot.slane %v3153_v54, %v6143_v11  ;;  %v3187_v49 = vcombine.high %v3186_v10, %v3186_v10  ;;  %v3194_v0 = vrot.slane %v3186_v10, %v6143_v11 }
 0xd95   :  { %v3168_v58 = vrot.slane %v3154_v12, %v6143_v11  ;;  %v3201_v42 = vrot.slane %v3187_v49, %v6143_v11  ;;  %v3171_v60 = vadd.f32 %v3161_v56, %v3141_v6  ;;  %v3204_v51 = vadd.f32 %v3194_v0, %v3174_v20 }
 0xd97   :  { %v3172_v29 = vadd.f32 %v3168_v58, %v3143_v43  ;;  %v3205_v46 = vadd.f32 %v3201_v42, %v3176_v41 }
 0xd99   :  { %v3208_v27 = vcombine.low %v3171_v60, %v3172_v29  ;;  %v3235_v62 = vcombine.low %v3204_v51, %v3205_v46 }
 0xd9b   :  { %v3242_v48 = vrot.slane %v3235_v62, %v6143_v11  ;;  %v3215_v54 = vrot.slane %v3208_v27, %v6143_v11 }
 0xd9d   :  { %v3250_v10 = vrot.slane %v3242_v48, %v6143_v11  ;;  %v3243_v40 = vcombine.high %v3242_v48, %v3242_v48  ;;  %v3216_v47 = vcombine.high %v3215_v54, %v3215_v54  ;;  %v3223_v12 = vrot.slane %v3215_v54, %v6143_v11 }
 0xd9f   :  { %3258 = vrot.lane.b32.xlu1 %v3250_v10, %s5555_s26  ;;  %v3257_v49 = vrot.slane %v3243_v40, %v6143_v11  ;;  %v4899_v6 = vmul.f32 -1.442695, %v3223_v12  ;;  %v3230_v41 = vrot.slane %v3216_v47, %v6143_v11 }
 0xda1   :  { %3260 = vrot.lane.b32.xlu0 %v3257_v49, %s5555_s26  ;;  %5229 = vpow2.f32 %v4899_v6 }
 0xda3   :  { %3284 = vrot.lane.b32.xlu1 %v3230_v41, %s5555_s26 }
 0xdae   :  { %v5230_v42 = vpop.eup %5229 }
 0xdaf   :  { %v3275_v56 = vadd.f32 1.0, %v5230_v42 }
 0xdb1   :  { %5231 = vrcp.f32 %v3275_v56 }
 0xdbe   :  { %v5232_v58 = vpop.eup %5231 }
 0xdbf   :  { %3292 = vrot.lane.b32.xlu0 %v5232_v58, %s5555_s26 }
 0xe11   :  { %v3259_v0 = vpop.permute.xlu1 %3258 }
 0xe12   :  { %v3265_v48 = vsel %vm2248_vm5, %v3230_v41, %v3259_v0 }
 0xe13   :  { %v4900_v20 = vmul.f32 -1.442695, %v3265_v48  ;;  %v3261_v43 = vpop.permute.xlu0 %3260 }
 0xe14   :  { %v3262_v40 = vsel %vm2248_vm5, %v3259_v0, %v3261_v43 }
 0xe15   :  { %5233 = vpow2.f32 %v4900_v20  ;;  %v4901_v60 = vmul.f32 -1.442695, %v3262_v40  ;;  %v3285_v10 = vpop.permute.xlu1 %3284 }
 0xe16   :  { %v3288_v12 = vsel %vm2248_vm5, %v3285_v10, %v3257_v49  ;;  %v7121_v10 = vld [vmem:[#allocation28_spill] sm:$0xff] }
 0xe17   :  { %5235 = vpow2.f32 %v4901_v60 }
 0xe22   :  { %v5234_v47 = vpop.eup %5233 }
 0xe23   :  { %v3276_v29 = vadd.f32 1.0, %v5234_v47 }
 0xe24   :  { %v5236_v51 = vpop.eup %5235 }
 0xe25   :  { %v3277_v46 = vadd.f32 1.0, %v5236_v51  ;;  %5237 = vrcp.f32 %v3276_v29  ;;  %v7115_v29 = vld [vmem:[#allocation40_spill] sm:$0xff]  ;;  %v7116_v51 = vld [vmem:[#allocation21_spill] sm:$0xff] }
 0xe27   :  { %5239 = vrcp.f32 %v3277_v46  ;;  %v7117_v46 = vld [vmem:[#allocation27_spill] sm:$0xff] }
 0xe28   :  { %5241 = vtanh.f32 %v3288_v12  ;;  %v7122_v12 = vld [vmem:[#allocation36_spill] sm:$0xff] }
 0xe31   :  { %v3293_v41 = vpop.permute.xlu0 %3292 }
 0xe32   :  { %v5238_v27 = vpop.eup %5237 }
 0xe33   :  { %v3290_v6 = vsel %vm2248_vm5, %v5232_v58, %v5238_v27 }
 0xe34   :  { %v5240_v62 = vpop.eup %5239 }
 0xe35   :  { %3296 = vrot.lane.b32.xlu1 %v5240_v62, %s5555_s26  ;;  %v3300_v54 = vsel %vm2248_vm5, %v5238_v27, %v5240_v62  ;;  %v5242_v56 = vpop.eup %5241  ;;  %v7118_v27 = vld [vmem:[#allocation35_spill] sm:$0xff]  ;;  %v7119_v62 = vld [vmem:[#allocation41_spill] sm:$0xff] }
 0xe36   :  { %v3302_v20 = vmul.f32 %v5242_v56, %v3290_v6  ;;  %v7123_v6 = vld [vmem:[#allocation42_spill] sm:$0xff]  ;;  %v7126_v56 = vld [vmem:[#allocation37_spill] sm:$0xff] }
 0xea7   :  { %v3297_v42 = vpop.permute.xlu1 %3296 }
 0xea8   :  { %v3299_v0 = vsel %vm2248_vm5, %v3293_v41, %v3297_v42  ;;  %v7124_v41 = vld [vmem:[#allocation23_spill] sm:$0xff]  ;;  %v7125_v42 = vld [vmem:[#allocation29_spill] sm:$0xff] }
 0xea9   :  { %v3301_v48 = vmul.f32 %v3299_v0, %v6432_v2  ;;  %v7127_v0 = vld [vmem:[#allocation43_spill] sm:$0xff] }
 0xeab   :  { %v6596_v43 = vadd.f32 %v3302_v20, %v3301_v48  ;;  %v7128_v48 = vld [vmem:[#allocation24_spill] sm:$0xff]  ;;  %v7129_v20 = vld [vmem:[#allocation30_spill] sm:$0xff] }
 0xead   :  { %5243 = vtanh.f32 %v6596_v43 }
 0xeba   :  { %v5244_v40 = vpop.eup %5243 }
 0xebb   :  { %v3305_v60 = vmul.f32 %v5244_v40, %v3300_v54  ;;  %v7120_v54 = vld [vmem:[#allocation22_spill] sm:$0xff] }
 0xebc   :  { %v7130_v40 = vld [vmem:[#allocation38_spill] sm:$0xff] }
 0xebd   :  { %v3313_v47 = vrot.slane %v3305_v60, %v6143_v11  ;;  %3400 = vmatmul.mubr.f32.vlgmr.msra.gmra.mxu1 %v3305_v60  ;;  %3471 = vmatmul.mubr.f32.vlgmr.msra.gmra.mxu0 %v3305_v60  ;;  %v7131_v60 = vld [vmem:[#allocation44_spill] sm:$0xff] }
 0xebe   :  { %3673 = vmatpush1.msra.mxu1 %v6272_v30  ;;  %3744 = vmatpush1.msra.mxu0 %v6437_v5 }
 0xebf   :  { %v3314_v49 = vcombine.high %v3313_v47, %v3313_v47  ;;  %v3321_v58 = vrot.slane %v3313_v47, %v6143_v11  ;;  %3674 = vmatprep.subr.mxu1 %v6277_v7  ;;  %3745 = vmatprep.subr.mxu0 %v6442_v28  ;;  %v7132_v47 = vld [vmem:[#allocation25_spill] sm:$0xff] }
 0xec0   :  { %3675 = vmatpush1.msra.mxu1 %v6281_v16  ;;  %3746 = vmatpush1.msra.mxu0 %v6446_v14 }
 0xec1   :  { %v3328_v2 = vrot.slane %v3314_v49, %v6143_v11  ;;  %3331 = vst.msk [vmem:[#allocation4 + $0x3] sm:$0x1] %vm2318_vm6, %v3321_v58  ;;  %3676 = vmatprep.subr.mxu1 %v6288_v13  ;;  %3747 = vmatprep.subr.mxu0 %v6453_v8  ;;  %v7133_v49 = vld [vmem:[#allocation31_spill] sm:$0xff] }
 0xec2   :  { %3333 = vst.msk [vmem:[#allocation4 + $0x4] sm:$0x1] %vm2321_vm7, %v3321_v58  ;;  %3677 = vmatpush1.msra.mxu1 %v6292_v50  ;;  %3748 = vmatpush1.msra.mxu0 %v6457_v44  ;;  %v7134_v58 = vld [vmem:[#allocation39_spill] sm:$0xff] }
 0xec3   :  { %3332 = vst.msk [vmem:[#allocation4 + $0xb] sm:$0x1] %vm2318_vm6, %v3328_v2  ;;  %3678 = vmatprep.subr.mxu1 %v6298_v15  ;;  %3749 = vmatprep.subr.mxu0 %v6463_v45 }
 0xec4   :  { %3334 = vst.msk [vmem:[#allocation4 + $0xc] sm:$0x1] %vm2321_vm7, %v3328_v2  ;;  %3679 = vmatpush1.msra.mxu1 %v6302_v17  ;;  %3750 = vmatpush1.msra.mxu0 %v6467_v55  ;;  %v7135_v2 = vmov 0.0  }
 0xec5   :  { %3680 = vmatprep.subr.mxu1 %v6306_v19  ;;  %3751 = vmatprep.subr.mxu0 %v6471_v57 }
 0xec6   :  { %3681 = vmatpush1.msra.mxu1 %v6310_v21  ;;  %3752 = vmatpush1.msra.mxu0 %v6475_v24 }
 0xec7   :  { %3682 = vmatprep.subr.mxu1 %v6314_v53  ;;  %3753 = vmatprep.subr.mxu0 %v6479_v59 }
 0xec8   :  { %3683 = vmatpush1.msra.mxu1 %v6318_v23  ;;  %3754 = vmatpush1.msra.mxu0 %v6483_v61 }
 0xec9   :  { %3684 = vmatprep.subr.mxu1 %v6322_v25  ;;  %3755 = vmatprep.subr.mxu0 %v6487_v63 }
 0xeca   :  { %3685 = vmatpush1.msra.mxu1 %v6326_v31  ;;  %3756 = vmatpush1.msra.mxu0 %v6491_v1 }
 0xecb   :  { %3686 = vmatprep.subr.mxu1 %v6330_v32  ;;  %3757 = vmatprep.subr.mxu0 %v6495_v4 }
 0xecc   :  { %3687 = vmatpush1.msra.mxu1 %v6334_v33  ;;  %3758 = vmatpush1.msra.mxu0 %v6499_v9 }
 0xecd   :  { %3688 = vmatprep.subr.mxu1 %v6338_v34  ;;  %3759 = vmatprep.subr.mxu0 %v6503_v26 }
 0xece   :  { %3689 = vmatpush1.msra.mxu1 %v6342_v35  ;;  %3760 = vmatpush1.msra.mxu0 %v6507_v22 }
 0xecf   :  { %3690 = vmatprep.subr.mxu1 %v6346_v36  ;;  %3761 = vmatprep.subr.mxu0 %v6511_v3 }
 0xed0   :  { %3691 = vmatpush1.msra.mxu1 %v6350_v37  ;;  %3762 = vmatpush1.msra.mxu0 %v6515_v18 }
 0xed1   :  { %3692 = vmatprep.subr.mxu1 %v6354_v38  ;;  %3763 = vmatprep.subr.mxu0 %v6519_v52 }
 0xed2   :  { %3693 = vmatpush1.msra.mxu1 %v6358_v39  ;;  %3764 = vmatpush1.msra.mxu0 %v7115_v29 }
 0xed3   :  { %3694 = vmatprep.subr.mxu1 %v7116_v51  ;;  %3765 = vmatprep.subr.mxu0 %v7117_v46 }
 0xed4   :  { %3695 = vmatpush1.msra.mxu1 %v7118_v27  ;;  %3766 = vmatpush1.msra.mxu0 %v7119_v62  ;;  %v3511_v62 = vld [vmem:[#allocation3 + $0x3] ss:$8 sm:$0x3]  ;;  %v3513_v27 = vld [vmem:[#allocation3 + $0x13] ss:$8 sm:$0x3] }
 0xed5   :  { %3696 = vmatprep.subr.mxu1 %v7120_v54  ;;  %3767 = vmatprep.subr.mxu0 %v7121_v10  ;;  %v3478_v10 = vld [vmem:[#allocation2 + $0x4] ss:$8 sm:$0x3] }
 0xed6   :  { %3697 = vmatpush1.msra.mxu1 %v7122_v12  ;;  %3768 = vmatpush1.msra.mxu0 %v7123_v6 }
 0xed7   :  { %3698 = vmatprep.subr.mxu1 %v7124_v41  ;;  %3769 = vmatprep.subr.mxu0 %v7125_v42  ;;  %v7136_v42 = vld [vmem:[#allocation45_spill] sm:$0xff] }
 0xed8   :  { %3699 = vmatpush1.msra.mxu1 %v7126_v56  ;;  %3770 = vmatpush1.msra.mxu0 %v7127_v0  ;;  %v7137_v0 = vld [vmem:[#allocation26_spill] sm:$0xff] }
 0xed9   :  { %3700 = vmatprep.subr.mxu1 %v7128_v48  ;;  %3771 = vmatprep.subr.mxu0 %v7129_v20  ;;  %v7138_v48 = vld [vmem:[#allocation20_spill] sm:$0xff] }
 0xeda   :  { %3701 = vmatpush1.msra.mxu1 %v7130_v40  ;;  %3772 = vmatpush1.msra.mxu0 %v7131_v60 }
 0xedb   :  { %3702 = vmatprep.subr.mxu1 %v7132_v47  ;;  %3773 = vmatprep.subr.mxu0 %v7133_v49 }
 0xedc   :  { %3703 = vmatpush1.msra.mxu1 %v7134_v58  ;;  %3736 = vmatprep.mubr.f32.mxu1 %v7135_v2 }
 0xedd   :  { %3774 = vmatpush1.msra.mxu0 %v7136_v42  ;;  %3807 = vmatprep.mubr.f32.mxu0 %v7135_v2 }
 0xede   :  { %4009 = vmatprep.subr.mxu1 %v7137_v0  ;;  %4080 = vmatprep.subr.mxu0 %v7138_v48  ;;  %v3480_v0 = vld [vmem:[#allocation2 + $0x14] ss:$8 sm:$0x3] }
 0xf7d   :  { %v3401_v20 = vpop.f32.mrf.mxu1  ;;  %v3472_v40 = vpop.f32.mrf.mxu0 }
 0xf7f   :  { %v3403_v56 = vpop.f32.mrf.mxu1  ;;  %v3474_v60 = vpop.f32.mrf.mxu0 }
 0xf80   :  { %v3483_v41 = vcombine.low %v3401_v20, %v3403_v56  ;;  %v3516_v47 = vcombine.low %v3472_v40, %v3474_v60 }
 0xf82   :  { %v3490_v49 = vrot.slane %v3483_v41, %v6143_v11  ;;  %v3523_v58 = vrot.slane %v3516_v47, %v6143_v11 }
 0xf84   :  { %v3491_v6 = vcombine.high %v3490_v49, %v3490_v49  ;;  %v3498_v12 = vrot.slane %v3490_v49, %v6143_v11  ;;  %v3524_v42 = vcombine.high %v3523_v58, %v3523_v58  ;;  %v3531_v2 = vrot.slane %v3523_v58, %v6143_v11 }
 0xf86   :  { %v3505_v48 = vrot.slane %v3491_v6, %v6143_v11  ;;  %v3538_v54 = vrot.slane %v3524_v42, %v6143_v11  ;;  %v3508_v56 = vadd.f32 %v3498_v12, %v3478_v10  ;;  %v3541_v40 = vadd.f32 %v3531_v2, %v3511_v62 }
 0xf88   :  { %v3509_v20 = vadd.f32 %v3505_v48, %v3480_v0  ;;  %v3542_v41 = vadd.f32 %v3538_v54, %v3513_v27 }
 0xf8a   :  { %v3545_v60 = vcombine.low %v3508_v56, %v3509_v20  ;;  %v3572_v47 = vcombine.low %v3541_v40, %v3542_v41 }
 0xf8c   :  { %v3579_v46 = vrot.slane %v3572_v47, %v6143_v11  ;;  %v3552_v49 = vrot.slane %v3545_v60, %v6143_v11 }
 0xf8e   :  { %v3587_v58 = vrot.slane %v3579_v46, %v6143_v11  ;;  %v3580_v51 = vcombine.high %v3579_v46, %v3579_v46  ;;  %v3553_v29 = vcombine.high %v3552_v49, %v3552_v49  ;;  %v3560_v6 = vrot.slane %v3552_v49, %v6143_v11 }
 0xf90   :  { %3595 = vrot.lane.b32.xlu0 %v3587_v58, %s5555_s26  ;;  %v3594_v42 = vrot.slane %v3580_v51, %v6143_v11  ;;  %v4902_v10 = vmul.f32 -1.442695, %v3560_v6  ;;  %v3567_v27 = vrot.slane %v3553_v29, %v6143_v11 }
 0xf92   :  { %3597 = vrot.lane.b32.xlu1 %v3594_v42, %s5555_s26  ;;  %5245 = vpow2.f32 %v4902_v10 }
 0xf94   :  { %3621 = vrot.lane.b32.xlu0 %v3567_v27, %s5555_s26 }
 0xf9f   :  { %v5246_v62 = vpop.eup %5245 }
 0xfa0   :  { %v3612_v54 = vadd.f32 1.0, %v5246_v62 }
 0xfa2   :  { %5247 = vrcp.f32 %v3612_v54 }
 0xfaf   :  { %v5248_v12 = vpop.eup %5247 }
 0xfb0   :  { %3629 = vrot.lane.b32.xlu1 %v5248_v12, %s5555_s26 }
0x1002   :  { %v3596_v46 = vpop.permute.xlu0 %3595 }
0x1003   :  { %v3602_v0 = vsel %vm2248_vm5, %v3567_v27, %v3596_v46 }
0x1004   :  { %v4903_v48 = vmul.f32 -1.442695, %v3602_v0  ;;  %v3598_v2 = vpop.permute.xlu1 %3597 }
0x1005   :  { %v3599_v51 = vsel %vm2248_vm5, %v3596_v46, %v3598_v2 }
0x1006   :  { %5249 = vpow2.f32 %v4903_v48  ;;  %v4904_v56 = vmul.f32 -1.442695, %v3599_v51  ;;  %v3622_v58 = vpop.permute.xlu0 %3621 }
0x1007   :  { %v3625_v6 = vsel %vm2248_vm5, %v3622_v58, %v3594_v42 }
0x1008   :  { %5251 = vpow2.f32 %v4904_v56 }
0x1013   :  { %v5250_v29 = vpop.eup %5249 }
0x1014   :  { %v3613_v20 = vadd.f32 1.0, %v5250_v29 }
0x1015   :  { %v5252_v40 = vpop.eup %5251 }
0x1016   :  { %v3614_v41 = vadd.f32 1.0, %v5252_v40  ;;  %5253 = vrcp.f32 %v3613_v20  ;;  %v7160_v20 = vld [vmem:[#allocation45_spill] sm:$0xff]  ;;  %v7161_v40 = vld [vmem:[#allocation26_spill] sm:$0xff] }
0x1018   :  { %5255 = vrcp.f32 %v3614_v41  ;;  %v7162_v41 = vld [vmem:[#allocation20_spill] sm:$0xff] }
0x1019   :  { %5257 = vtanh.f32 %v3625_v6 }
0x1022   :  { %v3630_v27 = vpop.permute.xlu1 %3629 }
0x1023   :  { %v5254_v60 = vpop.eup %5253 }
0x1024   :  { %v3627_v10 = vsel %vm2248_vm5, %v5248_v12, %v5254_v60 }
0x1025   :  { %v5256_v47 = vpop.eup %5255 }
0x1026   :  { %3633 = vrot.lane.b32.xlu0 %v5256_v47, %s5555_s26  ;;  %v3637_v49 = vsel %vm2248_vm5, %v5254_v60, %v5256_v47  ;;  %v5258_v54 = vpop.eup %5257 }
0x1027   :  { %v3639_v48 = vmul.f32 %v5258_v54, %v3627_v10 }
0x1098   :  { %v3634_v62 = vpop.permute.xlu0 %3633 }
0x1099   :  { %v3636_v46 = vsel %vm2248_vm5, %v3630_v27, %v3634_v62 }
0x109a   :  { %v3638_v0 = vmul.f32 %v3636_v46, %v6596_v43 }
0x109c   :  { %v6696_v2 = vadd.f32 %v3639_v48, %v3638_v0 }
0x109e   :  { %5259 = vtanh.f32 %v6696_v2 }
0x10ab   :  { %v5260_v51 = vpop.eup %5259 }
0x10ac   :  { %v3642_v56 = vmul.f32 %v5260_v51, %v3637_v49  ;;  %v3815_v51 = vld [vmem:[#allocation2 + $0x5] ss:$8 sm:$0x3] }
0x10ae   :  { %v3650_v29 = vrot.slane %v3642_v56, %v6143_v11  ;;  %3737 = vmatmul.mubr.f32.vlgmr.msra.gmra.mxu1 %v3642_v56  ;;  %3808 = vmatmul.mubr.f32.vlgmr.msra.gmra.mxu0 %v3642_v56  ;;  %v3817_v56 = vld [vmem:[#allocation2 + $0x15] ss:$8 sm:$0x3] }
0x10af   :  { %4010 = vmatpush1.msra.mxu1 %v6272_v30  ;;  %4081 = vmatpush1.msra.mxu0 %v6437_v5  ;;  %v7139_v30 = vld [vmem:[#allocation40_spill] sm:$0xff] }
0x10b0   :  { %v3651_v42 = vcombine.high %v3650_v29, %v3650_v29  ;;  %v3658_v12 = vrot.slane %v3650_v29, %v6143_v11  ;;  %4011 = vmatprep.subr.mxu1 %v6277_v7  ;;  %4082 = vmatprep.subr.mxu0 %v6442_v28  ;;  %v7140_v7 = vld [vmem:[#allocation21_spill] sm:$0xff] }
0x10b1   :  { %4012 = vmatpush1.msra.mxu1 %v6281_v16  ;;  %4083 = vmatpush1.msra.mxu0 %v6446_v14  ;;  %v7141_v16 = vld [vmem:[#allocation27_spill] sm:$0xff] }
0x10b2   :  { %v3665_v43 = vrot.slane %v3651_v42, %v6143_v11  ;;  %3668 = vst.msk [vmem:[#allocation4 + $0x4] sm:$0x1] %vm2318_vm6, %v3658_v12  ;;  %4013 = vmatprep.subr.mxu1 %v6288_v13  ;;  %4084 = vmatprep.subr.mxu0 %v6453_v8  ;;  %v7142_v13 = vld [vmem:[#allocation35_spill] sm:$0xff] }
0x10b3   :  { %3670 = vst.msk [vmem:[#allocation4 + $0x3] sm:$0x1] %vm2321_vm7, %v3658_v12  ;;  %4014 = vmatpush1.msra.mxu1 %v6292_v50  ;;  %4085 = vmatpush1.msra.mxu0 %v6457_v44  ;;  %v7143_v50 = vld [vmem:[#allocation41_spill] sm:$0xff] }
0x10b4   :  { %3669 = vst.msk [vmem:[#allocation4 + $0xc] sm:$0x1] %vm2318_vm6, %v3665_v43  ;;  %4015 = vmatprep.subr.mxu1 %v6298_v15  ;;  %4086 = vmatprep.subr.mxu0 %v6463_v45  ;;  %v7144_v15 = vld [vmem:[#allocation22_spill] sm:$0xff] }
0x10b5   :  { %3671 = vst.msk [vmem:[#allocation4 + $0xb] sm:$0x1] %vm2321_vm7, %v3665_v43  ;;  %4016 = vmatpush1.msra.mxu1 %v6302_v17  ;;  %4087 = vmatpush1.msra.mxu0 %v6467_v55  ;;  %v7145_v17 = vld [vmem:[#allocation28_spill] sm:$0xff]  ;;  %v3848_v12 = vld [vmem:[#allocation3 + $0x2] ss:$8 sm:$0x3] }
0x10b6   :  { %4017 = vmatprep.subr.mxu1 %v6306_v19  ;;  %4088 = vmatprep.subr.mxu0 %v6471_v57  ;;  %v7146_v19 = vld [vmem:[#allocation36_spill] sm:$0xff] }
0x10b7   :  { %4018 = vmatpush1.msra.mxu1 %v6310_v21  ;;  %4089 = vmatpush1.msra.mxu0 %v6475_v24  ;;  %v7147_v21 = vld [vmem:[#allocation42_spill] sm:$0xff]  ;;  %v3850_v43 = vld [vmem:[#allocation3 + $0x12] ss:$8 sm:$0x3] }
0x10b8   :  { %4019 = vmatprep.subr.mxu1 %v6314_v53  ;;  %4090 = vmatprep.subr.mxu0 %v6479_v59  ;;  %v7148_v53 = vld [vmem:[#allocation23_spill] sm:$0xff] }
0x10b9   :  { %4020 = vmatpush1.msra.mxu1 %v6318_v23  ;;  %4091 = vmatpush1.msra.mxu0 %v6483_v61  ;;  %v7149_v23 = vld [vmem:[#allocation29_spill] sm:$0xff] }
0x10ba   :  { %4021 = vmatprep.subr.mxu1 %v6322_v25  ;;  %4092 = vmatprep.subr.mxu0 %v6487_v63  ;;  %v7150_v25 = vld [vmem:[#allocation37_spill] sm:$0xff] }
0x10bb   :  { %4022 = vmatpush1.msra.mxu1 %v6326_v31  ;;  %4093 = vmatpush1.msra.mxu0 %v6491_v1  ;;  %v7151_v31 = vld [vmem:[#allocation43_spill] sm:$0xff] }
0x10bc   :  { %4023 = vmatprep.subr.mxu1 %v6330_v32  ;;  %4094 = vmatprep.subr.mxu0 %v6495_v4  ;;  %v7152_v32 = vld [vmem:[#allocation24_spill] sm:$0xff] }
0x10bd   :  { %4024 = vmatpush1.msra.mxu1 %v6334_v33  ;;  %4095 = vmatpush1.msra.mxu0 %v6499_v9  ;;  %v7153_v33 = vld [vmem:[#allocation30_spill] sm:$0xff] }
0x10be   :  { %4025 = vmatprep.subr.mxu1 %v6338_v34  ;;  %4096 = vmatprep.subr.mxu0 %v6503_v26  ;;  %v7154_v34 = vld [vmem:[#allocation38_spill] sm:$0xff] }
0x10bf   :  { %4026 = vmatpush1.msra.mxu1 %v6342_v35  ;;  %4097 = vmatpush1.msra.mxu0 %v6507_v22  ;;  %v7155_v35 = vld [vmem:[#allocation44_spill] sm:$0xff] }
0x10c0   :  { %4027 = vmatprep.subr.mxu1 %v6346_v36  ;;  %4098 = vmatprep.subr.mxu0 %v6511_v3  ;;  %v7156_v36 = vld [vmem:[#allocation25_spill] sm:$0xff] }
0x10c1   :  { %4028 = vmatpush1.msra.mxu1 %v6350_v37  ;;  %4099 = vmatpush1.msra.mxu0 %v6515_v18  ;;  %v7157_v37 = vld [vmem:[#allocation31_spill] sm:$0xff] }
0x10c2   :  { %4029 = vmatprep.subr.mxu1 %v6354_v38  ;;  %4100 = vmatprep.subr.mxu0 %v6519_v52  ;;  %v7158_v38 = vld [vmem:[#allocation39_spill] sm:$0xff] }
0x10c3   :  { %4030 = vmatpush1.msra.mxu1 %v6358_v39  ;;  %4101 = vmatpush1.msra.mxu0 %v7139_v30  ;;  %v7159_v39 = vmov 0.0  }
0x10c4   :  { %4031 = vmatprep.subr.mxu1 %v7140_v7  ;;  %4102 = vmatprep.subr.mxu0 %v7141_v16 }
0x10c5   :  { %4032 = vmatpush1.msra.mxu1 %v7142_v13  ;;  %4103 = vmatpush1.msra.mxu0 %v7143_v50 }
0x10c6   :  { %4033 = vmatprep.subr.mxu1 %v7144_v15  ;;  %4104 = vmatprep.subr.mxu0 %v7145_v17 }
0x10c7   :  { %4034 = vmatpush1.msra.mxu1 %v7146_v19  ;;  %4105 = vmatpush1.msra.mxu0 %v7147_v21 }
0x10c8   :  { %4035 = vmatprep.subr.mxu1 %v7148_v53  ;;  %4106 = vmatprep.subr.mxu0 %v7149_v23 }
0x10c9   :  { %4036 = vmatpush1.msra.mxu1 %v7150_v25  ;;  %4107 = vmatpush1.msra.mxu0 %v7151_v31 }
0x10ca   :  { %4037 = vmatprep.subr.mxu1 %v7152_v32  ;;  %4108 = vmatprep.subr.mxu0 %v7153_v33 }
0x10cb   :  { %4038 = vmatpush1.msra.mxu1 %v7154_v34  ;;  %4109 = vmatpush1.msra.mxu0 %v7155_v35 }
0x10cc   :  { %4039 = vmatprep.subr.mxu1 %v7156_v36  ;;  %4110 = vmatprep.subr.mxu0 %v7157_v37 }
0x10cd   :  { %4040 = vmatpush1.msra.mxu1 %v7158_v38  ;;  %4073 = vmatprep.mubr.f32.mxu1 %v7159_v39 }
0x10ce   :  { %4111 = vmatpush1.msra.mxu0 %v7160_v20  ;;  %4144 = vmatprep.mubr.f32.mxu0 %v7159_v39 }
0x10cf   :  { %4346 = vmatprep.subr.mxu1 %v7161_v40  ;;  %4417 = vmatprep.subr.mxu0 %v7162_v41 }
0x116e   :  { %v3738_v60 = vpop.f32.mrf.mxu1  ;;  %v3809_v47 = vpop.f32.mrf.mxu0 }
0x1170   :  { %v3740_v49 = vpop.f32.mrf.mxu1  ;;  %v3811_v58 = vpop.f32.mrf.mxu0 }
0x1171   :  { %v3820_v6 = vcombine.low %v3738_v60, %v3740_v49  ;;  %v3853_v10 = vcombine.low %v3809_v47, %v3811_v58 }
0x1173   :  { %v3827_v27 = vrot.slane %v3820_v6, %v6143_v11  ;;  %v3860_v62 = vrot.slane %v3853_v10, %v6143_v11 }
0x1175   :  { %v3828_v54 = vcombine.high %v3827_v27, %v3827_v27  ;;  %v3835_v46 = vrot.slane %v3827_v27, %v6143_v11  ;;  %v3861_v0 = vcombine.high %v3860_v62, %v3860_v62  ;;  %v3868_v48 = vrot.slane %v3860_v62, %v6143_v11 }
0x1177   :  { %v3842_v29 = vrot.slane %v3828_v54, %v6143_v11  ;;  %v3875_v42 = vrot.slane %v3861_v0, %v6143_v11  ;;  %v3845_v7 = vadd.f32 %v3835_v46, %v3815_v51  ;;  %v3878_v15 = vadd.f32 %v3868_v48, %v3848_v12 }
0x1179   :  { %v3846_v13 = vadd.f32 %v3842_v29, %v3817_v56  ;;  %v3879_v19 = vadd.f32 %v3875_v42, %v3850_v43 }
0x117b   :  { %v3882_v53 = vcombine.low %v3845_v7, %v3846_v13  ;;  %v3909_v25 = vcombine.low %v3878_v15, %v3879_v19 }
0x117d   :  { %v3916_v32 = vrot.slane %v3909_v25, %v6143_v11  ;;  %v3889_v34 = vrot.slane %v3882_v53, %v6143_v11 }
0x117f   :  { %v3924_v36 = vrot.slane %v3916_v32, %v6143_v11  ;;  %v3917_v38 = vcombine.high %v3916_v32, %v3916_v32  ;;  %v3890_v40 = vcombine.high %v3889_v34, %v3889_v34  ;;  %v3897_v41 = vrot.slane %v3889_v34, %v6143_v11 }
0x1181   :  { %3932 = vrot.lane.b32.xlu1 %v3924_v36, %s5555_s26  ;;  %v3931_v60 = vrot.slane %v3917_v38, %v6143_v11  ;;  %v4905_v47 = vmul.f32 -1.442695, %v3897_v41  ;;  %v3904_v49 = vrot.slane %v3890_v40, %v6143_v11 }
0x1183   :  { %3934 = vrot.lane.b32.xlu0 %v3931_v60, %s5555_s26  ;;  %5261 = vpow2.f32 %v4905_v47 }
0x1185   :  { %3958 = vrot.lane.b32.xlu1 %v3904_v49, %s5555_s26 }
0x1190   :  { %v5262_v58 = vpop.eup %5261 }
0x1191   :  { %v3949_v6 = vadd.f32 1.0, %v5262_v58 }
0x1193   :  { %5263 = vrcp.f32 %v3949_v6 }
0x11a0   :  { %v5264_v10 = vpop.eup %5263 }
0x11a1   :  { %3966 = vrot.lane.b32.xlu0 %v5264_v10, %s5555_s26 }
0x11f3   :  { %v3933_v27 = vpop.permute.xlu1 %3932 }
0x11f4   :  { %v3939_v62 = vsel %vm2248_vm5, %v3904_v49, %v3933_v27 }
0x11f5   :  { %v4906_v54 = vmul.f32 -1.442695, %v3939_v62  ;;  %v3935_v46 = vpop.permute.xlu0 %3934  ;;  %v5380_v62 = vld [vmem:[#allocation13 + $0x1a8] sm:$0xff] }
0x11f6   :  { %v3936_v0 = vsel %vm2248_vm5, %v3933_v27, %v3935_v46  ;;  %v5387_v46 = vld [vmem:[#allocation13 + $0x140] sm:$0xff] }
0x11f7   :  { %5265 = vpow2.f32 %v4906_v54  ;;  %v4907_v48 = vmul.f32 -1.442695, %v3936_v0  ;;  %v3959_v13 = vpop.permute.xlu1 %3958  ;;  %v5384_v54 = vld [vmem:[#allocation13 + $0x168] sm:$0xff] }
0x11f8   :  { %v3962_v15 = vsel %vm2248_vm5, %v3959_v13, %v3931_v60  ;;  %v5377_v60 = vld [vmem:[#allocation13 + $0x1e0] sm:$0xff]  ;;  %v4185_v13 = vld [vmem:[#allocation3 + $0x1] ss:$8 sm:$0x3] }
0x11f9   :  { %5267 = vpow2.f32 %v4907_v48 }
0x1204   :  { %v5266_v51 = vpop.eup %5265 }
0x1205   :  { %v3950_v56 = vadd.f32 1.0, %v5266_v51 }
0x1206   :  { %v5268_v29 = vpop.eup %5267 }
0x1207   :  { %v3951_v42 = vadd.f32 1.0, %v5268_v29  ;;  %5269 = vrcp.f32 %v3950_v56 }
0x1209   :  { %5271 = vrcp.f32 %v3951_v42 }
0x120a   :  { %5273 = vtanh.f32 %v3962_v15  ;;  %v4187_v15 = vld [vmem:[#allocation3 + $0x11] ss:$8 sm:$0x3] }
0x1213   :  { %v3967_v53 = vpop.permute.xlu0 %3966 }
0x1214   :  { %v5270_v12 = vpop.eup %5269 }
0x1215   :  { %v3964_v19 = vsel %vm2248_vm5, %v5264_v10, %v5270_v12  ;;  %v5378_v10 = vld [vmem:[#allocation13 + $0x1c8] sm:$0xff] }
0x1216   :  { %v5272_v43 = vpop.eup %5271 }
0x1217   :  { %3970 = vrot.lane.b32.xlu1 %v5272_v43, %s5555_s26  ;;  %v3974_v7 = vsel %vm2248_vm5, %v5270_v12, %v5272_v43  ;;  %v5274_v32 = vpop.eup %5273  ;;  %v4152_v43 = vld [vmem:[#allocation2 + $0x6] ss:$8 sm:$0x3] }
0x1218   :  { %v3976_v38 = vmul.f32 %v5274_v32, %v3964_v19 }
0x1289   :  { %v3971_v25 = vpop.permute.xlu1 %3970 }
0x128a   :  { %v3973_v34 = vsel %vm2248_vm5, %v3967_v53, %v3971_v25 }
0x128b   :  { %v3975_v36 = vmul.f32 %v3973_v34, %v6696_v2  ;;  %v5379_v2 = vld [vmem:[#allocation13 + $0x1c0] sm:$0xff] }
0x128d   :  { %v6796_v40 = vadd.f32 %v3976_v38, %v3975_v36 }
0x128f   :  { %5275 = vtanh.f32 %v6796_v40 }
0x129c   :  { %v5276_v41 = vpop.eup %5275 }
0x129d   :  { %v3979_v47 = vmul.f32 %v5276_v41, %v3974_v7 }
0x129f   :  { %v3987_v49 = vrot.slane %v3979_v47, %v6143_v11  ;;  %4074 = vmatmul.mubr.f32.vlgmr.msra.gmra.mxu1 %v3979_v47  ;;  %4145 = vmatmul.mubr.f32.vlgmr.msra.gmra.mxu0 %v3979_v47 }
0x12a0   :  { %4347 = vmatpush1.msra.mxu1 %v5377_v60  ;;  %4418 = vmatpush1.msra.mxu0 %v6437_v5  ;;  %v5381_v5 = vld [vmem:[#allocation13 + $0x1a0] sm:$0xff] }
0x12a1   :  { %v3988_v58 = vcombine.high %v3987_v49, %v3987_v49  ;;  %v3995_v6 = vrot.slane %v3987_v49, %v6143_v11  ;;  %4348 = vmatprep.subr.mxu1 %v5378_v10  ;;  %4419 = vmatprep.subr.mxu0 %v6442_v28  ;;  %v5382_v28 = vld [vmem:[#allocation13 + $0x188] sm:$0xff] }
0x12a2   :  { %4349 = vmatpush1.msra.mxu1 %v5379_v2  ;;  %4420 = vmatpush1.msra.mxu0 %v6446_v14  ;;  %v5383_v14 = vld [vmem:[#allocation13 + $0x180] sm:$0xff] }
0x12a3   :  { %v4002_v27 = vrot.slane %v3988_v58, %v6143_v11  ;;  %4005 = vst.msk [vmem:[#allocation4 + $0x5] sm:$0x1] %vm2318_vm6, %v3995_v6  ;;  %4350 = vmatprep.subr.mxu1 %v5380_v62  ;;  %4421 = vmatprep.subr.mxu0 %v6453_v8  ;;  %v5385_v8 = vld [vmem:[#allocation13 + $0x160] sm:$0xff] }
0x12a4   :  { %4007 = vst.msk [vmem:[#allocation4 + $0x2] sm:$0x1] %vm2321_vm7, %v3995_v6  ;;  %4351 = vmatpush1.msra.mxu1 %v5381_v5  ;;  %4422 = vmatpush1.msra.mxu0 %v6457_v44  ;;  %v5386_v44 = vld [vmem:[#allocation13 + $0x148] sm:$0xff] }
0x12a5   :  { %4006 = vst.msk [vmem:[#allocation4 + $0xd] sm:$0x1] %vm2318_vm6, %v4002_v27  ;;  %4352 = vmatprep.subr.mxu1 %v5382_v28  ;;  %4423 = vmatprep.subr.mxu0 %v6463_v45  ;;  %v5388_v45 = vld [vmem:[#allocation13 + $0x128] sm:$0xff] }
0x12a6   :  { %4008 = vst.msk [vmem:[#allocation4 + $0xa] sm:$0x1] %vm2321_vm7, %v4002_v27  ;;  %4353 = vmatpush1.msra.mxu1 %v5383_v14  ;;  %4424 = vmatpush1.msra.mxu0 %v6467_v55  ;;  %v5389_v55 = vld [vmem:[#allocation13 + $0x120] sm:$0xff] }
0x12a7   :  { %4354 = vmatprep.subr.mxu1 %v5384_v54  ;;  %4425 = vmatprep.subr.mxu0 %v6471_v57  ;;  %v5390_v57 = vld [vmem:[#allocation13 + $0x108] sm:$0xff] }
0x12a8   :  { %4355 = vmatpush1.msra.mxu1 %v5385_v8  ;;  %4426 = vmatpush1.msra.mxu0 %v6475_v24  ;;  %v5391_v24 = vld [vmem:[#allocation13 + $0x100] sm:$0xff] }
0x12a9   :  { %4356 = vmatprep.subr.mxu1 %v5386_v44  ;;  %4427 = vmatprep.subr.mxu0 %v6479_v59  ;;  %v5392_v59 = vld [vmem:[#allocation13 + $0xe8] sm:$0xff] }
0x12aa   :  { %4357 = vmatpush1.msra.mxu1 %v5387_v46  ;;  %4428 = vmatpush1.msra.mxu0 %v6483_v61  ;;  %v5393_v61 = vld [vmem:[#allocation13 + $0xe0] sm:$0xff] }
0x12ab   :  { %4358 = vmatprep.subr.mxu1 %v5388_v45  ;;  %4429 = vmatprep.subr.mxu0 %v6487_v63  ;;  %v5394_v63 = vld [vmem:[#allocation13 + $0xc8] sm:$0xff] }
0x12ac   :  { %4359 = vmatpush1.msra.mxu1 %v5389_v55  ;;  %4430 = vmatpush1.msra.mxu0 %v6491_v1  ;;  %v5395_v1 = vld [vmem:[#allocation13 + $0xc0] sm:$0xff] }
0x12ad   :  { %4360 = vmatprep.subr.mxu1 %v5390_v57  ;;  %4431 = vmatprep.subr.mxu0 %v6495_v4  ;;  %v5396_v4 = vld [vmem:[#allocation13 + $0xa8] sm:$0xff] }
0x12ae   :  { %4361 = vmatpush1.msra.mxu1 %v5391_v24  ;;  %4432 = vmatpush1.msra.mxu0 %v6499_v9  ;;  %v5397_v9 = vld [vmem:[#allocation13 + $0xa0] sm:$0xff] }
0x12af   :  { %4362 = vmatprep.subr.mxu1 %v5392_v59  ;;  %4433 = vmatprep.subr.mxu0 %v6503_v26  ;;  %v5398_v26 = vld [vmem:[#allocation13 + $0x88] sm:$0xff] }
0x12b0   :  { %4363 = vmatpush1.msra.mxu1 %v5393_v61  ;;  %4434 = vmatpush1.msra.mxu0 %v6507_v22  ;;  %v5399_v22 = vld [vmem:[#allocation13 + $0x80] sm:$0xff] }
0x12b1   :  { %4364 = vmatprep.subr.mxu1 %v5394_v63  ;;  %4435 = vmatprep.subr.mxu0 %v6511_v3  ;;  %v5400_v3 = vld [vmem:[#allocation13 + $0x68] sm:$0xff] }
0x12b2   :  { %4365 = vmatpush1.msra.mxu1 %v5395_v1  ;;  %4436 = vmatpush1.msra.mxu0 %v6515_v18  ;;  %v5401_v18 = vld [vmem:[#allocation13 + $0x60] sm:$0xff] }
0x12b3   :  { %4366 = vmatprep.subr.mxu1 %v5396_v4  ;;  %4437 = vmatprep.subr.mxu0 %v6519_v52  ;;  %v5402_v52 = vld [vmem:[#allocation13 + $0x48] sm:$0xff] }
0x12b4   :  { %4367 = vmatpush1.msra.mxu1 %v5397_v9  ;;  %4438 = vmatpush1.msra.mxu0 %v7139_v30  ;;  %v5403_v30 = vld [vmem:[#allocation13 + $0x40] sm:$0xff] }
0x12b5   :  { %4368 = vmatprep.subr.mxu1 %v5398_v26  ;;  %4439 = vmatprep.subr.mxu0 %v7141_v16  ;;  %v5404_v16 = vld [vmem:[#allocation13 + $0x28] sm:$0xff] }
0x12b6   :  { %4369 = vmatpush1.msra.mxu1 %v5399_v22  ;;  %4440 = vmatpush1.msra.mxu0 %v7143_v50  ;;  %v5405_v50 = vld [vmem:[#allocation13 + $0x20] sm:$0xff] }
0x12b7   :  { %4370 = vmatprep.subr.mxu1 %v5400_v3  ;;  %4441 = vmatprep.subr.mxu0 %v7145_v17  ;;  %v5406_v17 = vld [vmem:[#allocation13 + $0x8] sm:$0xff] }
0x12b8   :  { %4371 = vmatpush1.msra.mxu1 %v5401_v18  ;;  %4442 = vmatpush1.msra.mxu0 %v7147_v21  ;;  %v5407_v21 = vld [vmem:[#allocation13] sm:$0xff] }
0x12b9   :  { %4372 = vmatprep.subr.mxu1 %v5402_v52  ;;  %4443 = vmatprep.subr.mxu0 %v7149_v23 }
0x12ba   :  { %4373 = vmatpush1.msra.mxu1 %v5403_v30  ;;  %4444 = vmatpush1.msra.mxu0 %v7151_v31 }
0x12bb   :  { %4374 = vmatprep.subr.mxu1 %v5404_v16  ;;  %4445 = vmatprep.subr.mxu0 %v7153_v33 }
0x12bc   :  { %4375 = vmatpush1.msra.mxu1 %v5405_v50  ;;  %4446 = vmatpush1.msra.mxu0 %v7155_v35 }
0x12bd   :  { %4376 = vmatprep.subr.mxu1 %v5406_v17  ;;  %4447 = vmatprep.subr.mxu0 %v7157_v37 }
0x12be   :  { %4377 = vmatpush1.msra.mxu1 %v5407_v21  ;;  %4410 = vmatprep.mubr.f32.mxu1 %v7159_v39 }
0x12bf   :  { %4448 = vmatpush1.msra.mxu0 %v7160_v20  ;;  %4481 = vmatprep.mubr.f32.mxu0 %v7159_v39  ;;  %v4154_v20 = vld [vmem:[#allocation2 + $0x16] ss:$8 sm:$0x3] }
0x135f   :  { %v4075_v23 = vpop.f32.mrf.mxu1  ;;  %v4146_v31 = vpop.f32.mrf.mxu0 }
0x1361   :  { %v4077_v0 = vpop.f32.mrf.mxu1  ;;  %v4148_v33 = vpop.f32.mrf.mxu0 }
0x1362   :  { %v4157_v48 = vcombine.low %v4075_v23, %v4077_v0  ;;  %v4190_v51 = vcombine.low %v4146_v31, %v4148_v33 }
0x1364   :  { %v4164_v35 = vrot.slane %v4157_v48, %v6143_v11  ;;  %v4197_v56 = vrot.slane %v4190_v51, %v6143_v11 }
0x1366   :  { %v4165_v29 = vcombine.high %v4164_v35, %v4164_v35  ;;  %v4172_v37 = vrot.slane %v4164_v35, %v6143_v11  ;;  %v4198_v42 = vcombine.high %v4197_v56, %v4197_v56  ;;  %v4205_v12 = vrot.slane %v4197_v56, %v6143_v11 }
0x1368   :  { %v4179_v39 = vrot.slane %v4165_v29, %v6143_v11  ;;  %v4212_v7 = vrot.slane %v4198_v42, %v6143_v11  ;;  %v4182_v19 = vadd.f32 %v4172_v37, %v4152_v43  ;;  %v4215_v25 = vadd.f32 %v4205_v12, %v4185_v13 }
0x136a   :  { %v4183_v53 = vadd.f32 %v4179_v39, %v4154_v20  ;;  %v4216_v32 = vadd.f32 %v4212_v7, %v4187_v15  ;;  %v4489_v39 = vld [vmem:[#allocation2 + $0x7] ss:$8 sm:$0x3]  ;;  %v4491_v7 = vld [vmem:[#allocation2 + $0x17] ss:$8 sm:$0x3] }
0x136c   :  { %v4219_v34 = vcombine.low %v4182_v19, %v4183_v53  ;;  %v4246_v36 = vcombine.low %v4215_v25, %v4216_v32  ;;  %v4521_v19 = vld [vmem:[#allocation3] ss:$8 sm:$0x3]  ;;  %v4523_v53 = vld [vmem:[#allocation3 + $0x10] ss:$8 sm:$0x3] }
0x136e   :  { %v4253_v38 = vrot.slane %v4246_v36, %v6143_v11  ;;  %v4226_v41 = vrot.slane %v4219_v34, %v6143_v11 }
0x1370   :  { %v4261_v47 = vrot.slane %v4253_v38, %v6143_v11  ;;  %v4254_v49 = vcombine.high %v4253_v38, %v4253_v38  ;;  %v4227_v60 = vcombine.high %v4226_v41, %v4226_v41  ;;  %v4234_v58 = vrot.slane %v4226_v41, %v6143_v11 }
0x1372   :  { %4269 = vrot.lane.b32.xlu0 %v4261_v47, %s5555_s26  ;;  %v4268_v6 = vrot.slane %v4254_v49, %v6143_v11  ;;  %v4908_v10 = vmul.f32 -1.442695, %v4234_v58  ;;  %v4241_v2 = vrot.slane %v4227_v60, %v6143_v11 }
0x1374   :  { %4271 = vrot.lane.b32.xlu1 %v4268_v6, %s5555_s26  ;;  %5277 = vpow2.f32 %v4908_v10 }
0x1376   :  { %4295 = vrot.lane.b32.xlu0 %v4241_v2, %s5555_s26 }
0x1381   :  { %v5278_v27 = vpop.eup %5277 }
0x1382   :  { %v4286_v62 = vadd.f32 1.0, %v5278_v27 }
0x1384   :  { %5279 = vrcp.f32 %v4286_v62 }
0x1391   :  { %v5280_v5 = vpop.eup %5279 }
0x1392   :  { %4303 = vrot.lane.b32.xlu1 %v5280_v5, %s5555_s26 }
0x13e4   :  { %v4270_v28 = vpop.permute.xlu0 %4269 }
0x13e5   :  { %v4276_v14 = vsel %vm2248_vm5, %v4241_v2, %v4270_v28 }
0x13e6   :  { %v4909_v54 = vmul.f32 -1.442695, %v4276_v14  ;;  %v4272_v8 = vpop.permute.xlu1 %4271  ;;  %v5562_v14 = vmov 0  }
0x13e7   :  { %v4273_v44 = vsel %vm2248_vm5, %v4270_v28, %v4272_v8  ;;  %5144 = vset.pattern.permute.xlu0 %v5562_v14  ;;  %v4914_v8 = vld [vmem:[#allocation5] ss:$0 sm:$0xff] }
0x13e8   :  { %5281 = vpow2.f32 %v4909_v54  ;;  %v4910_v46 = vmul.f32 -1.442695, %v4273_v44  ;;  %v4296_v1 = vpop.permute.xlu0 %4295 }
0x13e9   :  { %v4299_v4 = vsel %vm2248_vm5, %v4296_v1, %v4268_v6 }
0x13ea   :  { %5283 = vpow2.f32 %v4910_v46 }
0x13f5   :  { %v5282_v45 = vpop.eup %5281 }
0x13f6   :  { %v4287_v55 = vadd.f32 1.0, %v5282_v45 }
0x13f7   :  { %v5284_v57 = vpop.eup %5283 }
0x13f8   :  { %v4288_v24 = vadd.f32 1.0, %v5284_v57  ;;  %5285 = vrcp.f32 %v4287_v55 }
0x13fa   :  { %5287 = vrcp.f32 %v4288_v24 }
0x13fb   :  { %5289 = vtanh.f32 %v4299_v4  ;;  %v4715_v4 = vld [vmem:[#allocation14 + $0x78] sm:$0xff] }
0x13fc   :  { %5082 = vmatprep.subr.mxu1 %v4715_v4 }
0x1404   :  { %v4304_v26 = vpop.permute.xlu1 %4303 }
0x1405   :  { %v5286_v59 = vpop.eup %5285 }
0x1406   :  { %v4301_v9 = vsel %vm2248_vm5, %v5280_v5, %v5286_v59 }
0x1407   :  { %v5288_v61 = vpop.eup %5287 }
0x1408   :  { %4307 = vrot.lane.b32.xlu0 %v5288_v61, %s5555_s26  ;;  %v4311_v63 = vsel %vm2248_vm5, %v5286_v59, %v5288_v61  ;;  %v5290_v3 = vpop.eup %5289 }
0x1409   :  { %v4313_v30 = vmul.f32 %v5290_v3, %v4301_v9  ;;  %v4714_v9 = vld [vmem:[#allocation14 + $0x70] sm:$0xff]  ;;  %v4713_v3 = vld [vmem:[#allocation14 + $0x68] sm:$0xff] }
0x147a   :  { %v4308_v22 = vpop.permute.xlu0 %4307 }
0x147b   :  { %v4310_v18 = vsel %vm2248_vm5, %v4304_v26, %v4308_v22 }
0x147c   :  { %v4312_v52 = vmul.f32 %v4310_v18, %v6796_v40 }
0x147e   :  { %v6863_v16 = vadd.f32 %v4313_v30, %v4312_v52  ;;  %v4712_v52 = vld [vmem:[#allocation14 + $0x60] sm:$0xff]  ;;  %v4711_v30 = vld [vmem:[#allocation14 + $0x58] sm:$0xff] }
0x1480   :  { %5291 = vtanh.f32 %v6863_v16 }
0x148d   :  { %v5292_v50 = vpop.eup %5291 }
0x148e   :  { %v4316_v17 = vmul.f32 %v5292_v50, %v4311_v63  ;;  %v4710_v50 = vld [vmem:[#allocation14 + $0x50] sm:$0xff] }
0x1490   :  { %v4324_v21 = vrot.slane %v4316_v17, %v6143_v11  ;;  %4411 = vmatmul.mubr.f32.vlgmr.msra.gmra.mxu1 %v4316_v17  ;;  %4482 = vmatmul.mubr.f32.vlgmr.msra.gmra.mxu0 %v4316_v17  ;;  %v4709_v17 = vld [vmem:[#allocation14 + $0x48] sm:$0xff] }
0x1491   :  { %5083 = vmatpush3.msra.mxu1 %v4715_v4 }
0x1492   :  { %v4325_v23 = vcombine.high %v4324_v21, %v4324_v21  ;;  %v4332_v31 = vrot.slane %v4324_v21, %v6143_v11  ;;  %5084 = vmatprep.subr.mxu1 %v4714_v9  ;;  %v4708_v21 = vld [vmem:[#allocation14 + $0x40] sm:$0xff] }
0x1493   :  { %5085 = vmatpush3.msra.mxu1 %v4714_v9 }
0x1494   :  { %v4339_v0 = vrot.slane %v4325_v23, %v6143_v11  ;;  %4342 = vst.msk [vmem:[#allocation4 + $0x6] sm:$0x1] %vm2318_vm6, %v4332_v31  ;;  %5086 = vmatprep.subr.mxu1 %v4713_v3  ;;  %v4707_v23 = vld [vmem:[#allocation14 + $0x38] sm:$0xff] }
0x1495   :  { %4344 = vst.msk [vmem:[#allocation4 + $0x1] sm:$0x1] %vm2321_vm7, %v4332_v31  ;;  %5087 = vmatpush3.msra.mxu1 %v4713_v3  ;;  %v4706_v31 = vld [vmem:[#allocation14 + $0x30] sm:$0xff] }
0x1496   :  { %4343 = vst.msk [vmem:[#allocation4 + $0xe] sm:$0x1] %vm2318_vm6, %v4339_v0  ;;  %5088 = vmatprep.subr.mxu1 %v4712_v52 }
0x1497   :  { %4345 = vst.msk [vmem:[#allocation4 + $0x9] sm:$0x1] %vm2321_vm7, %v4339_v0  ;;  %5089 = vmatpush3.msra.mxu1 %v4712_v52  ;;  %v4705_v0 = vld [vmem:[#allocation14 + $0x28] sm:$0xff] }
0x1498   :  { %5090 = vmatprep.subr.mxu1 %v4711_v30  ;;  %v4916_v52 = vld [vmem:[%s6948_s13] ss:$0 sm:$0xff] }
0x1499   :  { %5091 = vmatpush3.msra.mxu1 %v4711_v30 }
0x149a   :  { %5092 = vmatprep.subr.mxu1 %v4710_v50 }
0x149b   :  { %5093 = vmatpush3.msra.mxu1 %v4710_v50 }
0x149c   :  { %5094 = vmatprep.subr.mxu1 %v4709_v17 }
0x149d   :  { %5095 = vmatpush3.msra.mxu1 %v4709_v17  ;;  %v4917_v17 = vld [vmem:[%s6949_s14] ss:$0 sm:$0xff] }
0x149e   :  { %5096 = vmatprep.subr.mxu1 %v4708_v21 }
0x149f   :  { %5097 = vmatpush3.msra.mxu1 %v4708_v21 }
0x14a0   :  { %5098 = vmatprep.subr.mxu1 %v4707_v23 }
0x14a1   :  { %5099 = vmatpush3.msra.mxu1 %v4707_v23 }
0x14a2   :  { %5100 = vmatprep.subr.mxu1 %v4706_v31 }
0x14a3   :  { %5101 = vmatpush3.msra.mxu1 %v4706_v31 }
0x14a4   :  { %5102 = vmatprep.subr.mxu1 %v4705_v0 }
0x14a5   :  { %5103 = vmatpush3.msra.mxu1 %v4705_v0 }
0x1550   :  { %v4412_v40 = vpop.f32.mrf.mxu1  ;;  %v4483_v33 = vpop.f32.mrf.mxu0 }
0x1552   :  { %v4414_v48 = vpop.f32.mrf.mxu1  ;;  %v4485_v51 = vpop.f32.mrf.mxu0 }
0x1553   :  { %v4494_v35 = vcombine.low %v4412_v40, %v4414_v48  ;;  %v4526_v56 = vcombine.low %v4483_v33, %v4485_v51  ;;  %v4704_v40 = vld [vmem:[#allocation14 + $0x20] sm:$0xff]  ;;  %v4703_v33 = vld [vmem:[#allocation14 + $0x18] sm:$0xff]  ;;  %v4702_v48 = vld [vmem:[#allocation14 + $0x10] sm:$0xff] }
0x1554   :  { %5104 = vmatprep.subr.mxu1 %v4704_v40  ;;  %v4701_v51 = vld [vmem:[#allocation14 + $0x8] sm:$0xff] }
0x1555   :  { %v4501_v29 = vrot.slane %v4494_v35, %v6143_v11  ;;  %v4533_v37 = vrot.slane %v4526_v56, %v6143_v11  ;;  %5105 = vmatpush3.msra.mxu1 %v4704_v40  ;;  %v4700_v35 = vld [vmem:[#allocation14] sm:$0xff] }
0x1556   :  { %5106 = vmatprep.subr.mxu1 %v4703_v33 }
0x1557   :  { %v4502_v42 = vcombine.high %v4501_v29, %v4501_v29  ;;  %v4509_v12 = vrot.slane %v4501_v29, %v6143_v11  ;;  %v4534_v43 = vcombine.high %v4533_v37, %v4533_v37  ;;  %v4541_v20 = vrot.slane %v4533_v37, %v6143_v11  ;;  %5107 = vmatpush3.msra.mxu1 %v4703_v33 }
0x1558   :  { %5108 = vmatprep.subr.mxu1 %v4702_v48 }
0x1559   :  { %v4516_v13 = vrot.slane %v4502_v42, %v6143_v11  ;;  %v4548_v15 = vrot.slane %v4534_v43, %v6143_v11  ;;  %v4519_v25 = vadd.f32 %v4509_v12, %v4489_v39  ;;  %v4551_v34 = vadd.f32 %v4541_v20, %v4521_v19  ;;  %5109 = vmatpush3.msra.mxu1 %v4702_v48 }
0x155a   :  { %5110 = vmatprep.subr.mxu1 %v4701_v51 }
0x155b   :  { %v4520_v32 = vadd.f32 %v4516_v13, %v4491_v7  ;;  %v4552_v36 = vadd.f32 %v4548_v15, %v4523_v53  ;;  %5111 = vmatpush3.msra.mxu1 %v4701_v51 }
0x155c   :  { %5112 = vmatprep.subr.mxu1 %v4700_v35 }
0x155d   :  { %v4555_v38 = vcombine.low %v4519_v25, %v4520_v32  ;;  %v4582_v41 = vcombine.low %v4551_v34, %v4552_v36  ;;  %5113 = vmatpush3.msra.mxu1 %v4700_v35 }
0x155f   :  { %v4589_v47 = vrot.slane %v4582_v41, %v6143_v11  ;;  %v4562_v49 = vrot.slane %v4555_v38, %v6143_v11 }
0x1561   :  { %v4597_v60 = vrot.slane %v4589_v47, %v6143_v11  ;;  %v4590_v58 = vcombine.high %v4589_v47, %v4589_v47  ;;  %v4563_v6 = vcombine.high %v4562_v49, %v4562_v49  ;;  %v4570_v10 = vrot.slane %v4562_v49, %v6143_v11 }
0x1563   :  { %4605 = vrot.lane.b32.xlu1 %v4597_v60, %s5555_s26  ;;  %v6885_v2 = vrot.slane %v4590_v58, %v6143_v11  ;;  %v4911_v27 = vmul.f32 -1.442695, %v4570_v10  ;;  %v4577_v62 = vrot.slane %v4563_v6, %v6143_v11 }
0x1565   :  { %4607 = vrot.lane.b32.xlu0 %v6885_v2, %s5555_s26  ;;  %5293 = vpow2.f32 %v4911_v27  ;;  %v7163_v27 = vld [vmem:[#allocation33_spill] sm:$0xff] }
0x1567   :  { %4631 = vrot.lane.b32.xlu1 %v4577_v62, %s5555_s26 }
0x1572   :  { %v5294_v5 = vpop.eup %5293 }
0x1573   :  { %v4622_v28 = vadd.f32 1.0, %v5294_v5 }
0x1575   :  { %5295 = vrcp.f32 %v4622_v28  ;;  %v7164_v28 = vld [vmem:[#allocation32_spill] sm:$0xff] }
0x1582   :  { %v6891_v54 = vpop.eup %5295 }
0x1583   :  { %4639 = vrot.lane.b32.xlu0 %v6891_v54, %s5555_s26 }
0x1587   :  { %4693 = vperm.xlu0 %5144, %v4914_v8  }
0x15d5   :  { %v4606_v44 = vpop.permute.xlu1 %4605 }
0x15d6   :  { %v4612_v46 = vsel %vm2248_vm5, %v4577_v62, %v4606_v44 }
0x15d7   :  { %v4912_v45 = vmul.f32 -1.442695, %v4612_v46  ;;  %v4608_v55 = vpop.permute.xlu0 %4607 }
0x15d8   :  { %v4609_v57 = vsel %vm2248_vm5, %v4606_v44, %v4608_v55 }
0x15d9   :  { %5297 = vpow2.f32 %v4912_v45  ;;  %v4913_v24 = vmul.f32 -1.442695, %v4609_v57  ;;  %v4632_v56 = vpop.permute.xlu1 %4631 }
0x15da   :  { %v4635_v29 = vsel %vm2248_vm5, %v4632_v56, %v6885_v2 }
0x15db   :  { %5299 = vpow2.f32 %v4913_v24 }
0x15e6   :  { %v5298_v59 = vpop.eup %5297 }
0x15e7   :  { %v4623_v61 = vadd.f32 1.0, %v5298_v59 }
0x15e8   :  { %v5300_v63 = vpop.eup %5299 }
0x15e9   :  { %v4624_v1 = vadd.f32 1.0, %v5300_v63  ;;  %5301 = vrcp.f32 %v4623_v61 }
0x15eb   :  { %5303 = vrcp.f32 %v4624_v1 }
0x15ec   :  { %5305 = vtanh.f32 %v4635_v29 }
0x15f5   :  { %v4640_v42 = vpop.permute.xlu0 %4639 }
0x15f6   :  { %v5302_v26 = vpop.eup %5301 }
0x15f7   :  { %v4637_v37 = vsel %vm2248_vm5, %v6891_v54, %v5302_v26 }
0x15f8   :  { %v5304_v22 = vpop.eup %5303 }
0x15f9   :  { %4643 = vrot.lane.b32.xlu1 %v5304_v22, %s5555_s26  ;;  %v4647_v18 = vsel %vm2248_vm5, %v5302_v26, %v5304_v22  ;;  %v5306_v43 = vpop.eup %5305 }
0x15fa   :  { %v4649_v7 = vmul.f32 %v5306_v43, %v4637_v37 }
0x166b   :  { %v4644_v12 = vpop.permute.xlu1 %4643 }
0x166c   :  { %v4646_v20 = vsel %vm2248_vm5, %v4640_v42, %v4644_v12 }
0x166d   :  { %v4648_v39 = vmul.f32 %v4646_v20, %v6863_v16  ;;  %v4694_v16 = vpop.permute.xlu0 %4693 }
0x166f   :  { %v4650_v13 = vadd.f32 %v4649_v7, %v4648_v39 }
0x1671   :  { %5307 = vtanh.f32 %v4650_v13 }
0x167e   :  { %v5308_v15 = vpop.eup %5307 }
0x167f   :  { %v4652_v19 = vmul.f32 %v5308_v15, %v4647_v18 }
0x1681   :  { %v4660_v53 = vrot.slane %v4652_v19, %v6143_v11 }
0x1683   :  { %v4661_v25 = vcombine.high %v4660_v53, %v4660_v53  ;;  %v4668_v32 = vrot.slane %v4660_v53, %v6143_v11 }
0x1685   :  { %v4675_v34 = vrot.slane %v4661_v25, %v6143_v11  ;;  %4678 = vst.msk [vmem:[#allocation4 + $0x7] sm:$0x1] %vm2318_vm6, %v4668_v32  ;;  %v4915_v11 = vld [vmem:[%s6947_s12] ss:$0 sm:$0xff] }
0x1686   :  { %4680 = vst.msk [vmem:[#allocation4] sm:$0x1] %vm2321_vm7, %v4668_v32 }
0x1687   :  { %4679 = vst.msk [vmem:[#allocation4 + $0xf] sm:$0x1] %vm2318_vm6, %v4675_v34 }
0x1688   :  { %4681 = vst.msk [vmem:[#allocation4 + $0x8] sm:$0x1] %vm2321_vm7, %v4675_v34 }
0x168d   :  { %v4682_v36 = vld [vmem:[#allocation4] sm:$0xff] }
0x168e   :  { %v4696_v38 = vmul.f32 %v4694_v16, %v4682_v36  ;;  %vm4685_vm8 = vcmp.ge.f32.partialorder %v4682_v36, 0.0 }
0x168f   :  { %v4683_v41 = vld [vmem:[#allocation4 + $0x8] sm:$0xff] }
0x1690   :  { %v4697_v47 = vmul.f32 %v4694_v16, %v4683_v41  ;;  %v4698_v49 = vsel %vm4685_vm8, %v4682_v36, %v4696_v38  ;;  %vm4686_vm9 = vcmp.ge.f32.partialorder %v4683_v41, 0.0 }
0x1691   :  { %5114 = vmatprep.mubr.f32.mxu1 %v4698_v49 }
0x1692   :  { %v4699_v60 = vsel %vm4686_vm9, %v4683_v41, %v4697_v47 }
0x1693   :  { %5115 = vmatmul.mubr.f32.vlgmr.msra.gmra.mxu1 %v4699_v60 }
0x1753   :  { %v5116_v58 = vpop.f32.mrf.mxu1 }
0x1754   :  { %v4795_v6 = vadd.f32 %v5116_v58, %v4915_v11 }
0x1755   :  { %v4789_v10 = vpop.f32.mrf.mxu1 }
0x1756   :  { %v4790_v2 = vadd.f32 %v4915_v11, %v4789_v10  ;;  %v4799_v62 = vadd.f32 %v4795_v6, %v7163_v27 }
0x1758   :  { %v4805_v5 = vsel %vm143_vm0, %v4799_v62, 0.0  ;;  %v4798_v14 = vadd.f32 %v4790_v2, %v7164_v28 }
0x1759   :  { %4806 = vadd.xlane.f32.xlu0 %v4805_v5 }
0x175a   :  { %v4802_v54 = vsel %vm143_vm0, %v4798_v14, 0.0 }
0x175b   :  { %4803 = vadd.xlane.f32.xlu1 %v4802_v54 }
0x17e2   :  { %v4807_v8 = vpop.xlane.xlu0 %4806 }
0x17e3   :  { %v4809_v44 = vmul.f32 0.03125, %v4807_v8 }
0x17e4   :  { %v4804_v46 = vpop.xlane.xlu1 %4803 }
0x17e5   :  { %v4811_v45 = vsub.f32 %v4799_v62, %v4809_v44  ;;  %v4808_v55 = vmul.f32 0.03125, %v4804_v46 }
0x17e7   :  { %v4810_v57 = vsub.f32 %v4798_v14, %v4808_v55  ;;  %v4813_v24 = vmul.f32 %v4811_v45, %v4811_v45 }
0x17e9   :  { %v4817_v59 = vsel %vm143_vm0, %v4813_v24, 0.0  ;;  %v4812_v61 = vmul.f32 %v4810_v57, %v4810_v57 }
0x17ea   :  { %4818 = vadd.xlane.f32.xlu0 %v4817_v59 }
0x17eb   :  { %v4814_v63 = vsel %vm143_vm0, %v4812_v61, 0.0 }
0x17ec   :  { %4815 = vadd.xlane.f32.xlu1 %v4814_v63 }
0x1873   :  { %v4819_v1 = vpop.xlane.xlu0 %4818 }
0x1874   :  { %v4821_v4 = vmul.f32 0.03125, %v4819_v1 }
0x1875   :  { %v4816_v9 = vpop.xlane.xlu1 %4815 }
0x1876   :  { %v4823_v26 = vadd.f32 1e-05, %v4821_v4  ;;  %v4820_v22 = vmul.f32 0.03125, %v4816_v9 }
0x1878   :  { %5309 = vrsqrt.f32 %v4823_v26  ;;  %v4822_v3 = vadd.f32 1e-05, %v4820_v22 }
0x187a   :  { %5311 = vrsqrt.f32 %v4822_v3 }
0x1885   :  { %v5310_v18 = vpop.eup %5309 }
0x1886   :  { %v4827_v30 = vmul.f32 %v5310_v18, %v4811_v45 }
0x1887   :  { %v5312_v50 = vpop.eup %5311 }
0x1888   :  { %v4835_v21 = vmul.f32 %v4916_v52, %v4827_v30  ;;  %v4826_v23 = vmul.f32 %v5312_v50, %v4810_v57 }
0x188a   :  { %v4843_v31 = vadd.f32 %v4917_v17, %v4835_v21  ;;  %v4834_v0 = vmul.f32 %v4916_v52, %v4826_v23 }
0x188c   :  { %4845 = vst.msk [vmem:[%s6950_s15 + $0x8] sm:$0xff] %vm143_vm0, %v4843_v31  ;;  %v4842_v40 = vadd.f32 %v4917_v17, %v4834_v0 }
0x188e   :  { %4844 = vst.msk [vmem:[%s6950_s15] sm:$0xff] %vm143_vm0, %v4842_v40 }
0x188f   :  { %4850 = vsyncpa [#allocation7], 1 }
0x1890   :  { %4851 = vsyncpa [#allocation9], 1 }
0x1891   :  { %4852 = vsyncpa [#allocation12], 1 }
0x1892   :  { %4853 = vsyncpa [#allocation15], 1 }

</bundles_post_ra>
